<compile_context>
chip_gen: v5e
topology: v5e:2x2
jax: 0.10.0
libtpu: 0.0.40
codegen_flags: <defaults>
</compile_context>

<pallas_src>
import functools

import jax
import jax.numpy as jnp
from jax.experimental import pallas as pl
from jax.experimental.pallas import tpu as pltpu


def _msf_kernel(x_ref, mask_ref, w3_ref, w5_ref, w7_ref, wpt_ref, beff_ref,
                out_ref, xs_ref, facc_ref, *, H, W, C):
    HW = H * W

    # Build the zero-halo tile in VMEM (no padded copy in HBM).  xs holds the image with 3 zero
    # rows above/below, flattened as (C, (H+6)*W) plus a 3-element guard at each end so every
    # tap's window is a contiguous in-bounds lane slice.  Re-zeroed every grid step so the halo
    # stays correct even when the batch axis is sharded across TensorCores.
    xs_ref[...] = jnp.zeros_like(xs_ref)
    xs_ref[:, 3 + 3 * W: 3 + 3 * W + HW] = x_ref[0]

    acc3 = jnp.zeros((C, HW), jnp.float32)
    acc5 = jnp.zeros((C, HW), jnp.float32)
    acc7 = jnp.zeros((C, HW), jnp.float32)

    # Single shared 7x7 tap loop (statically unrolled).  Each shifted window is loaded once
    # from the scratch ref (shifted vector load) and accumulated into every branch that covers
    # the tap.  mask_ref[dj] zeroes the columns whose source pixel lies outside the row
    # (horizontal SAME padding); vertical padding is physical zeros in xs.
    for di in range(7):
        for dj in range(7):
            start = di * W + dj
            patch = xs_ref[:, start:start + HW]            # (C, H*W)
            if dj != 3:
                patch = patch * mask_ref[dj]               # lane mask, shared by all branches
            acc7 = acc7 + patch * w7_ref[di * 7 + dj]      # (C,1) per-channel weight broadcast
            if 1 <= di <= 5 and 1 <= dj <= 5:
                acc5 = acc5 + patch * w5_ref[(di - 1) * 5 + (dj - 1)]
            if 2 <= di <= 4 and 2 <= dj <= 4:
                acc3 = acc3 + patch * w3_ref[(di - 2) * 3 + (dj - 2)]

    # Implicit concat + 1x1 projection as ONE (C, 3C) @ (3C, H*W) MXU matmul.  Depthwise biases
    # are pre-folded into beff by the wrapper.
    facc_ref[0 * C:1 * C, :] = acc3
    facc_ref[1 * C:2 * C, :] = acc5
    facc_ref[2 * C:3 * C, :] = acc7
    y = jnp.dot(wpt_ref[...], facc_ref[...], preferred_element_type=jnp.float32)
    out_ref[0] = (y + beff_ref[...]).astype(out_ref.dtype)


def multiscale_feature_module(x_nchw, params):
    """x_nchw: (B, C, H, W) float32. Returns (B, C, H, W) float32."""
    w3, b3, w5, b5, w7, b7, wp, bp = params
    B, C, H, W = x_nchw.shape
    HW = H * W

    # Free layout change: NCHW -> (B, C, H*W).  No transpose, no pad, no extra HBM pass.
    x_flat = x_nchw.reshape(B, C, HW).astype(jnp.float32)

    # Per-tap depthwise weights as (k*k, C, 1) so each tap loads a (C,1) sublane vector that
    # broadcasts along the lane (H*W) axis.
    w3t = w3.reshape(9, C).astype(jnp.float32)[:, :, None]
    w5t = w5.reshape(25, C).astype(jnp.float32)[:, :, None]
    w7t = w7.reshape(49, C).astype(jnp.float32)[:, :, None]

    # Column-validity masks for the 7 horizontal tap offsets (SAME padding along W).
    col = jnp.arange(W)
    base = jnp.stack([((col + dj - 3 >= 0) & (col + dj - 3 < W)).astype(jnp.float32)
                      for dj in range(7)])                       # (7, W)
    masks = jnp.tile(base, (1, H))                               # (7, H*W), period W

    # Projection weight transposed for the (C,3C)@(3C,HW) matmul; depthwise biases folded in.
    wpt = wp.T.astype(jnp.float32)                               # (C, 3C)
    beff = (bp + b3 @ wp[0 * C:1 * C] + b5 @ wp[1 * C:2 * C] + b7 @ wp[2 * C:3 * C])
    beff = beff.reshape(C, 1).astype(jnp.float32)                # (C, 1)

    kernel = functools.partial(_msf_kernel, H=H, W=W, C=C)
    ns = (H + 6) * W + 6                                         # padded+guarded lane extent

    def _const_spec(shape):
        return pl.BlockSpec(shape, lambda b: (0,) * len(shape))

    # VMEM budget: double-buffered in/out tiles + resident constants + scratches + live accs.
    tile_b = 4 * C * HW
    const_b = 4 * (masks.size + w3t.size + w5t.size + w7t.size + wpt.size + beff.size)
    scratch_b = 4 * (C * ns + 3 * C * HW)
    working = 4 * tile_b + 2 * const_b + scratch_b + 6 * tile_b
    vmem_limit = int(min(64 * 1024 * 1024, max(8 * 1024 * 1024, 2 * working)))

    taps = 9 + 25 + 49
    cost = pl.CostEstimate(
        flops=int(B * C * HW * (2 * taps + 42) + B * 2 * C * 3 * C * HW + B * C * HW),
        transcendentals=0,
        bytes_accessed=int(4 * (2 * B * C * HW) + const_b),
    )

    out_flat = pl.pallas_call(
        kernel,
        out_shape=jax.ShapeDtypeStruct((B, C, HW), jnp.float32),
        grid_spec=pltpu.PrefetchScalarGridSpec(
            num_scalar_prefetch=0,
            grid=(B,),
            in_specs=[
                pl.BlockSpec((1, C, HW), lambda b: (b, 0, 0)),   # x (B, C, H*W)
                _const_spec((7, HW)),                            # column masks
                _const_spec((9, C, 1)),                          # 3x3 depthwise taps
                _const_spec((25, C, 1)),                         # 5x5 depthwise taps
                _const_spec((49, C, 1)),                         # 7x7 depthwise taps
                _const_spec((C, 3 * C)),                         # projection weight^T
                _const_spec((C, 1)),                             # folded bias
            ],
            out_specs=pl.BlockSpec((1, C, HW), lambda b: (b, 0, 0)),
            scratch_shapes=[
                pltpu.VMEM((C, ns), jnp.float32),                # zero-halo input tile
                pltpu.VMEM((3 * C, HW), jnp.float32),            # concatenated branch features
            ],
        ),
        compiler_params=pltpu.CompilerParams(
            dimension_semantics=("parallel",),
            vmem_limit_bytes=vmem_limit,
        ),
        cost_estimate=cost,
    )(x_flat, masks, w3t, w5t, w7t, wpt, beff)

    return out_flat.reshape(B, C, H, W)


def init_params(key, C):
    """Deterministic parameter init. Shapes follow the PyTorch module:
       depthwise conv weight (C,1,k,k) stored here as (k,k,C);
       projection weight (C,3C,1,1) stored here as (3C, C) (i.e. transposed)."""
    ks = jax.random.split(key, 8)
    scale = 0.1
    w3 = jax.random.normal(ks[0], (3, 3, C), jnp.float32) * scale
    b3 = jax.random.normal(ks[1], (1, C), jnp.float32) * scale
    w5 = jax.random.normal(ks[2], (5, 5, C), jnp.float32) * scale
    b5 = jax.random.normal(ks[3], (1, C), jnp.float32) * scale
    w7 = jax.random.normal(ks[4], (7, 7, C), jnp.float32) * scale
    b7 = jax.random.normal(ks[5], (1, C), jnp.float32) * scale
    wp = jax.random.normal(ks[6], (3 * C, C), jnp.float32) * scale
    bp = jax.random.normal(ks[7], (1, C), jnp.float32) * scale
    return (w3, b3, w5, b5, w7, b7, wp, bp)


def reference_forward(x_nchw, params):
    """Pure-JAX reference (lax conv) mirroring the PyTorch semantics, NHWC internally."""
    w3, b3, w5, b5, w7, b7, wp, bp = params
    B, C, H, W = x_nchw.shape
    x = jnp.transpose(x_nchw, (0, 2, 3, 1))
    dn = ("NHWC", "HWIO", "NHWC")

    def dw(x, w, b, k):
        rhs = w.reshape(k, k, 1, C)
        y = jax.lax.conv_general_dilated(
            x, rhs, window_strides=(1, 1), padding="SAME",
            dimension_numbers=dn, feature_group_count=C)
        return y + b[0]

    f = jnp.concatenate([dw(x, w3, b3, 3), dw(x, w5, b5, 5), dw(x, w7, b7, 7)], axis=-1)
    y = jax.lax.conv_general_dilated(
        f, wp.reshape(1, 1, 3 * C, C), window_strides=(1, 1), padding="SAME",
        dimension_numbers=dn) + bp[0]
    return jnp.transpose(y, (0, 3, 1, 2))


if __name__ == "__main__":
    key = jax.random.PRNGKey(0)
    k_x, k_p = jax.random.split(key)

    B, C, H, W = 2, 4, 16, 16
    x = jax.random.normal(k_x, (B, C, H, W), jnp.float32)
    params = init_params(k_p, C)

    out = multiscale_feature_module(x, params)
    out = jax.block_until_ready(out)

    ref = jax.block_until_ready(reference_forward(x, params))
    assert out.shape == (B, C, H, W)
    assert jnp.allclose(out, ref, atol=1e-4, rtol=1e-4)

    print("KERNEL_OK")
</pallas_src>

<mosaic_0001>
module attributes {stable_mosaic.version = 11 : i64} {
  func.func @_msf_kernel(%arg0: i32, %arg1: memref<1x4x256xf32, #tpu.memory_space<vmem>>, %arg2: memref<7x256xf32, #tpu.memory_space<vmem>>, %arg3: memref<9x4x1xf32, #tpu.memory_space<vmem>>, %arg4: memref<25x4x1xf32, #tpu.memory_space<vmem>>, %arg5: memref<49x4x1xf32, #tpu.memory_space<vmem>>, %arg6: memref<4x12xf32, #tpu.memory_space<vmem>>, %arg7: memref<4x1xf32, #tpu.memory_space<vmem>>, %arg8: memref<1x4x256xf32, #tpu.memory_space<vmem>>, %arg9: memref<4x358xf32, #tpu.memory_space<vmem>>, %arg10: memref<12x256xf32, #tpu.memory_space<vmem>>) attributes {dimension_semantics = [#tpu.dimension_semantics<parallel>], iteration_bounds = array<i64: 2>, scalar_prefetch = 0 : i64, scratch_operands = 2 : i64, tpu.core_type = #tpu.core_type<tc>, window_params = [{transform_indices = @transform_0, window_bounds = array<i64: 1, 4, 256>}, {pipeline_mode = #tpu.pipeline_mode<synchronous>, transform_indices = @transform_1, window_bounds = array<i64: 7, 256>}, {pipeline_mode = #tpu.pipeline_mode<synchronous>, transform_indices = @transform_2, window_bounds = array<i64: 9, 4, 1>}, {pipeline_mode = #tpu.pipeline_mode<synchronous>, transform_indices = @transform_3, window_bounds = array<i64: 25, 4, 1>}, {pipeline_mode = #tpu.pipeline_mode<synchronous>, transform_indices = @transform_4, window_bounds = array<i64: 49, 4, 1>}, {pipeline_mode = #tpu.pipeline_mode<synchronous>, transform_indices = @transform_5, window_bounds = array<i64: 4, 12>}, {pipeline_mode = #tpu.pipeline_mode<synchronous>, transform_indices = @transform_6, window_bounds = array<i64: 4, 1>}, {transform_indices = @transform_7, window_bounds = array<i64: 1, 4, 256>}]} {
    %cst = arith.constant 0.000000e+00 : f32
    %0 = vector.broadcast %cst : f32 to vector<4x358xf32>
    %c0 = arith.constant 0 : index
    %c0_0 = arith.constant 0 : index
    %1 = vector.load %arg9[%c0, %c0_0] : memref<4x358xf32, #tpu.memory_space<vmem>>, vector<4x358xf32>
    tpu.vector_store %arg9[%c0, %c0_0], %0 {strides = array<i32>} : memref<4x358xf32, #tpu.memory_space<vmem>>, vector<4x358xf32>,
    %c0_1 = arith.constant 0 : index
    %c0_2 = arith.constant 0 : index
    %c0_3 = arith.constant 0 : index
    %2 = vector.load %arg1[%c0_1, %c0_2, %c0_3] : memref<1x4x256xf32, #tpu.memory_space<vmem>>, vector<1x4x256xf32>
    %3 = vector.shape_cast %2 : vector<1x4x256xf32> to vector<4x256xf32>
    %c0_4 = arith.constant 0 : index
    %c51 = arith.constant 51 : index
    %4 = vector.load %arg9[%c0_4, %c51] : memref<4x358xf32, #tpu.memory_space<vmem>>, vector<4x256xf32>
    tpu.vector_store %arg9[%c0_4, %c51], %3 {strides = array<i32>} : memref<4x358xf32, #tpu.memory_space<vmem>>, vector<4x256xf32>,
    %cst_5 = arith.constant 0.000000e+00 : f32
    %5 = vector.broadcast %cst_5 : f32 to vector<4x256xf32>
    %cst_6 = arith.constant 0.000000e+00 : f32
    %6 = vector.broadcast %cst_6 : f32 to vector<4x256xf32>
    %cst_7 = arith.constant 0.000000e+00 : f32
    %7 = vector.broadcast %cst_7 : f32 to vector<4x256xf32>
    %c0_8 = arith.constant 0 : index
    %c0_9 = arith.constant 0 : index
    %8 = vector.load %arg9[%c0_8, %c0_9] : memref<4x358xf32, #tpu.memory_space<vmem>>, vector<4x256xf32>
    %c0_10 = arith.constant 0 : index
    %c0_11 = arith.constant 0 : index
    %9 = vector.load %arg2[%c0_10, %c0_11] : memref<7x256xf32, #tpu.memory_space<vmem>>, vector<1x256xf32>
    %10 = vector.shape_cast %9 : vector<1x256xf32> to vector<256xf32>
    %11 = vector.shape_cast %10 : vector<256xf32> to vector<1x256xf32>
    %12 = vector.broadcast %11 : vector<1x256xf32> to vector<4x256xf32>
    %13 = arith.mulf %8, %12 : vector<4x256xf32>
    %c0_12 = arith.constant 0 : index
    %c0_13 = arith.constant 0 : index
    %c0_14 = arith.constant 0 : index
    %14 = vector.load %arg5[%c0_12, %c0_13, %c0_14] : memref<49x4x1xf32, #tpu.memory_space<vmem>>, vector<1x4x1xf32>
    %15 = vector.shape_cast %14 : vector<1x4x1xf32> to vector<4x1xf32>
    %16 = vector.broadcast %15 : vector<4x1xf32> to vector<4x256xf32>
    %17 = arith.mulf %13, %16 : vector<4x256xf32>
    %18 = arith.addf %7, %17 : vector<4x256xf32>
    %c0_15 = arith.constant 0 : index
    %c1 = arith.constant 1 : index
    %19 = vector.load %arg9[%c0_15, %c1] : memref<4x358xf32, #tpu.memory_space<vmem>>, vector<4x256xf32>
    %c1_16 = arith.constant 1 : index
    %c0_17 = arith.constant 0 : index
    %20 = vector.load %arg2[%c1_16, %c0_17] : memref<7x256xf32, #tpu.memory_space<vmem>>, vector<1x256xf32>
    %21 = vector.shape_cast %20 : vector<1x256xf32> to vector<256xf32>
    %22 = vector.shape_cast %21 : vector<256xf32> to vector<1x256xf32>
    %23 = vector.broadcast %22 : vector<1x256xf32> to vector<4x256xf32>
    %24 = arith.mulf %19, %23 : vector<4x256xf32>
    %c1_18 = arith.constant 1 : index
    %c0_19 = arith.constant 0 : index
    %c0_20 = arith.constant 0 : index
    %25 = vector.load %arg5[%c1_18, %c0_19, %c0_20] : memref<49x4x1xf32, #tpu.memory_space<vmem>>, vector<1x4x1xf32>
    %26 = vector.shape_cast %25 : vector<1x4x1xf32> to vector<4x1xf32>
    %27 = vector.broadcast %26 : vector<4x1xf32> to vector<4x256xf32>
    %28 = arith.mulf %24, %27 : vector<4x256xf32>
    %29 = arith.addf %18, %28 : vector<4x256xf32>
    %c0_21 = arith.constant 0 : index
    %c2 = arith.constant 2 : index
    %30 = vector.load %arg9[%c0_21, %c2] : memref<4x358xf32, #tpu.memory_space<vmem>>, vector<4x256xf32>
    %c2_22 = arith.constant 2 : index
    %c0_23 = arith.constant 0 : index
    %31 = vector.load %arg2[%c2_22, %c0_23] : memref<7x256xf32, #tpu.memory_space<vmem>>, vector<1x256xf32>
    %32 = vector.shape_cast %31 : vector<1x256xf32> to vector<256xf32>
    %33 = vector.shape_cast %32 : vector<256xf32> to vector<1x256xf32>
    %34 = vector.broadcast %33 : vector<1x256xf32> to vector<4x256xf32>
    %35 = arith.mulf %30, %34 : vector<4x256xf32>
    %c2_24 = arith.constant 2 : index
    %c0_25 = arith.constant 0 : index
    %c0_26 = arith.constant 0 : index
    %36 = vector.load %arg5[%c2_24, %c0_25, %c0_26] : memref<49x4x1xf32, #tpu.memory_space<vmem>>, vector<1x4x1xf32>
    %37 = vector.shape_cast %36 : vector<1x4x1xf32> to vector<4x1xf32>
    %38 = vector.broadcast %37 : vector<4x1xf32> to vector<4x256xf32>
    %39 = arith.mulf %35, %38 : vector<4x256xf32>
    %40 = arith.addf %29, %39 : vector<4x256xf32>
    %c0_27 = arith.constant 0 : index
    %c3 = arith.constant 3 : index
    %41 = vector.load %arg9[%c0_27, %c3] : memref<4x358xf32, #tpu.memory_space<vmem>>, vector<4x256xf32>
    %c3_28 = arith.constant 3 : index
    %c0_29 = arith.constant 0 : index
    %c0_30 = arith.constant 0 : index
    %42 = vector.load %arg5[%c3_28, %c0_29, %c0_30] : memref<49x4x1xf32, #tpu.memory_space<vmem>>, vector<1x4x1xf32>
    %43 = vector.shape_cast %42 : vector<1x4x1xf32> to vector<4x1xf32>
    %44 = vector.broadcast %43 : vector<4x1xf32> to vector<4x256xf32>
    %45 = arith.mulf %41, %44 : vector<4x256xf32>
    %46 = arith.addf %40, %45 : vector<4x256xf32>
    %c0_31 = arith.constant 0 : index
    %c4 = arith.constant 4 : index
    %47 = vector.load %arg9[%c0_31, %c4] : memref<4x358xf32, #tpu.memory_space<vmem>>, vector<4x256xf32>
    %c4_32 = arith.constant 4 : index
    %c0_33 = arith.constant 0 : index
    %48 = vector.load %arg2[%c4_32, %c0_33] : memref<7x256xf32, #tpu.memory_space<vmem>>, vector<1x256xf32>
    %49 = vector.shape_cast %48 : vector<1x256xf32> to vector<256xf32>
    %50 = vector.shape_cast %49 : vector<256xf32> to vector<1x256xf32>
    %51 = vector.broadcast %50 : vector<1x256xf32> to vector<4x256xf32>
    %52 = arith.mulf %47, %51 : vector<4x256xf32>
    %c4_34 = arith.constant 4 : index
    %c0_35 = arith.constant 0 : index
    %c0_36 = arith.constant 0 : index
    %53 = vector.load %arg5[%c4_34, %c0_35, %c0_36] : memref<49x4x1xf32, #tpu.memory_space<vmem>>, vector<1x4x1xf32>
    %54 = vector.shape_cast %53 : vector<1x4x1xf32> to vector<4x1xf32>
    %55 = vector.broadcast %54 : vector<4x1xf32> to vector<4x256xf32>
    %56 = arith.mulf %52, %55 : vector<4x256xf32>
    %57 = arith.addf %46, %56 : vector<4x256xf32>
    %c0_37 = arith.constant 0 : index
    %c5 = arith.constant 5 : index
    %58 = vector.load %arg9[%c0_37, %c5] : memref<4x358xf32, #tpu.memory_space<vmem>>, vector<4x256xf32>
    %c5_38 = arith.constant 5 : index
    %c0_39 = arith.constant 0 : index
    %59 = vector.load %arg2[%c5_38, %c0_39] : memref<7x256xf32, #tpu.memory_space<vmem>>, vector<1x256xf32>
    %60 = vector.shape_cast %59 : vector<1x256xf32> to vector<256xf32>
    %61 = vector.shape_cast %60 : vector<256xf32> to vector<1x256xf32>
    %62 = vector.broadcast %61 : vector<1x256xf32> to vector<4x256xf32>
    %63 = arith.mulf %58, %62 : vector<4x256xf32>
    %c5_40 = arith.constant 5 : index
    %c0_41 = arith.constant 0 : index
    %c0_42 = arith.constant 0 : index
    %64 = vector.load %arg5[%c5_40, %c0_41, %c0_42] : memref<49x4x1xf32, #tpu.memory_space<vmem>>, vector<1x4x1xf32>
    %65 = vector.shape_cast %64 : vector<1x4x1xf32> to vector<4x1xf32>
    %66 = vector.broadcast %65 : vector<4x1xf32> to vector<4x256xf32>
    %67 = arith.mulf %63, %66 : vector<4x256xf32>
    %68 = arith.addf %57, %67 : vector<4x256xf32>
    %c0_43 = arith.constant 0 : index
    %c6 = arith.constant 6 : index
    %69 = vector.load %arg9[%c0_43, %c6] : memref<4x358xf32, #tpu.memory_space<vmem>>, vector<4x256xf32>
    %c6_44 = arith.constant 6 : index
    %c0_45 = arith.constant 0 : index
    %70 = vector.load %arg2[%c6_44, %c0_45] : memref<7x256xf32, #tpu.memory_space<vmem>>, vector<1x256xf32>
    %71 = vector.shape_cast %70 : vector<1x256xf32> to vector<256xf32>
    %72 = vector.shape_cast %71 : vector<256xf32> to vector<1x256xf32>
    %73 = vector.broadcast %72 : vector<1x256xf32> to vector<4x256xf32>
    %74 = arith.mulf %69, %73 : vector<4x256xf32>
    %c6_46 = arith.constant 6 : index
    %c0_47 = arith.constant 0 : index
    %c0_48 = arith.constant 0 : index
    %75 = vector.load %arg5[%c6_46, %c0_47, %c0_48] : memref<49x4x1xf32, #tpu.memory_space<vmem>>, vector<1x4x1xf32>
    %76 = vector.shape_cast %75 : vector<1x4x1xf32> to vector<4x1xf32>
    %77 = vector.broadcast %76 : vector<4x1xf32> to vector<4x256xf32>
    %78 = arith.mulf %74, %77 : vector<4x256xf32>
    %79 = arith.addf %68, %78 : vector<4x256xf32>
    %c0_49 = arith.constant 0 : index
    %c16 = arith.constant 16 : index
    %80 = vector.load %arg9[%c0_49, %c16] : memref<4x358xf32, #tpu.memory_space<vmem>>, vector<4x256xf32>
    %c0_50 = arith.constant 0 : index
    %c0_51 = arith.constant 0 : index
    %81 = vector.load %arg2[%c0_50, %c0_51] : memref<7x256xf32, #tpu.memory_space<vmem>>, vector<1x256xf32>
    %82 = vector.shape_cast %81 : vector<1x256xf32> to vector<256xf32>
    %83 = vector.shape_cast %82 : vector<256xf32> to vector<1x256xf32>
    %84 = vector.broadcast %83 : vector<1x256xf32> to vector<4x256xf32>
    %85 = arith.mulf %80, %84 : vector<4x256xf32>
    %c7 = arith.constant 7 : index
    %c0_52 = arith.constant 0 : index
    %c0_53 = arith.constant 0 : index
    %86 = vector.load %arg5[%c7, %c0_52, %c0_53] : memref<49x4x1xf32, #tpu.memory_space<vmem>>, vector<1x4x1xf32>
    %87 = vector.shape_cast %86 : vector<1x4x1xf32> to vector<4x1xf32>
    %88 = vector.broadcast %87 : vector<4x1xf32> to vector<4x256xf32>
    %89 = arith.mulf %85, %88 : vector<4x256xf32>
    %90 = arith.addf %79, %89 : vector<4x256xf32>
    %c0_54 = arith.constant 0 : index
    %c17 = arith.constant 17 : index
    %91 = vector.load %arg9[%c0_54, %c17] : memref<4x358xf32, #tpu.memory_space<vmem>>, vector<4x256xf32>
    %c1_55 = arith.constant 1 : index
    %c0_56 = arith.constant 0 : index
    %92 = vector.load %arg2[%c1_55, %c0_56] : memref<7x256xf32, #tpu.memory_space<vmem>>, vector<1x256xf32>
    %93 = vector.shape_cast %92 : vector<1x256xf32> to vector<256xf32>
    %94 = vector.shape_cast %93 : vector<256xf32> to vector<1x256xf32>
    %95 = vector.broadcast %94 : vector<1x256xf32> to vector<4x256xf32>
    %96 = arith.mulf %91, %95 : vector<4x256xf32>
    %c8 = arith.constant 8 : index
    %c0_57 = arith.constant 0 : index
    %c0_58 = arith.constant 0 : index
    %97 = vector.load %arg5[%c8, %c0_57, %c0_58] : memref<49x4x1xf32, #tpu.memory_space<vmem>>, vector<1x4x1xf32>
    %98 = vector.shape_cast %97 : vector<1x4x1xf32> to vector<4x1xf32>
    %99 = vector.broadcast %98 : vector<4x1xf32> to vector<4x256xf32>
    %100 = arith.mulf %96, %99 : vector<4x256xf32>
    %101 = arith.addf %90, %100 : vector<4x256xf32>
    %c0_59 = arith.constant 0 : index
    %c0_60 = arith.constant 0 : index
    %c0_61 = arith.constant 0 : index
    %102 = vector.load %arg4[%c0_59, %c0_60, %c0_61] : memref<25x4x1xf32, #tpu.memory_space<vmem>>, vector<1x4x1xf32>
    %103 = vector.shape_cast %102 : vector<1x4x1xf32> to vector<4x1xf32>
    %104 = vector.broadcast %103 : vector<4x1xf32> to vector<4x256xf32>
    %105 = arith.mulf %96, %104 : vector<4x256xf32>
    %106 = arith.addf %6, %105 : vector<4x256xf32>
    %c0_62 = arith.constant 0 : index
    %c18 = arith.constant 18 : index
    %107 = vector.load %arg9[%c0_62, %c18] : memref<4x358xf32, #tpu.memory_space<vmem>>, vector<4x256xf32>
    %c2_63 = arith.constant 2 : index
    %c0_64 = arith.constant 0 : index
    %108 = vector.load %arg2[%c2_63, %c0_64] : memref<7x256xf32, #tpu.memory_space<vmem>>, vector<1x256xf32>
    %109 = vector.shape_cast %108 : vector<1x256xf32> to vector<256xf32>
    %110 = vector.shape_cast %109 : vector<256xf32> to vector<1x256xf32>
    %111 = vector.broadcast %110 : vector<1x256xf32> to vector<4x256xf32>
    %112 = arith.mulf %107, %111 : vector<4x256xf32>
    %c9 = arith.constant 9 : index
    %c0_65 = arith.constant 0 : index
    %c0_66 = arith.constant 0 : index
    %113 = vector.load %arg5[%c9, %c0_65, %c0_66] : memref<49x4x1xf32, #tpu.memory_space<vmem>>, vector<1x4x1xf32>
    %114 = vector.shape_cast %113 : vector<1x4x1xf32> to vector<4x1xf32>
    %115 = vector.broadcast %114 : vector<4x1xf32> to vector<4x256xf32>
    %116 = arith.mulf %112, %115 : vector<4x256xf32>
    %117 = arith.addf %101, %116 : vector<4x256xf32>
    %c1_67 = arith.constant 1 : index
    %c0_68 = arith.constant 0 : index
    %c0_69 = arith.constant 0 : index
    %118 = vector.load %arg4[%c1_67, %c0_68, %c0_69] : memref<25x4x1xf32, #tpu.memory_space<vmem>>, vector<1x4x1xf32>
    %119 = vector.shape_cast %118 : vector<1x4x1xf32> to vector<4x1xf32>
    %120 = vector.broadcast %119 : vector<4x1xf32> to vector<4x256xf32>
    %121 = arith.mulf %112, %120 : vector<4x256xf32>
    %122 = arith.addf %106, %121 : vector<4x256xf32>
    %c0_70 = arith.constant 0 : index
    %c19 = arith.constant 19 : index
    %123 = vector.load %arg9[%c0_70, %c19] : memref<4x358xf32, #tpu.memory_space<vmem>>, vector<4x256xf32>
    %c10 = arith.constant 10 : index
    %c0_71 = arith.constant 0 : index
    %c0_72 = arith.constant 0 : index
    %124 = vector.load %arg5[%c10, %c0_71, %c0_72] : memref<49x4x1xf32, #tpu.memory_space<vmem>>, vector<1x4x1xf32>
    %125 = vector.shape_cast %124 : vector<1x4x1xf32> to vector<4x1xf32>
    %126 = vector.broadcast %125 : vector<4x1xf32> to vector<4x256xf32>
    %127 = arith.mulf %123, %126 : vector<4x256xf32>
    %128 = arith.addf %117, %127 : vector<4x256xf32>
    %c2_73 = arith.constant 2 : index
    %c0_74 = arith.constant 0 : index
    %c0_75 = arith.constant 0 : index
    %129 = vector.load %arg4[%c2_73, %c0_74, %c0_75] : memref<25x4x1xf32, #tpu.memory_space<vmem>>, vector<1x4x1xf32>
    %130 = vector.shape_cast %129 : vector<1x4x1xf32> to vector<4x1xf32>
    %131 = vector.broadcast %130 : vector<4x1xf32> to vector<4x256xf32>
    %132 = arith.mulf %123, %131 : vector<4x256xf32>
    %133 = arith.addf %122, %132 : vector<4x256xf32>
    %c0_76 = arith.constant 0 : index
    %c20 = arith.constant 20 : index
    %134 = vector.load %arg9[%c0_76, %c20] : memref<4x358xf32, #tpu.memory_space<vmem>>, vector<4x256xf32>
    %c4_77 = arith.constant 4 : index
    %c0_78 = arith.constant 0 : index
    %135 = vector.load %arg2[%c4_77, %c0_78] : memref<7x256xf32, #tpu.memory_space<vmem>>, vector<1x256xf32>
    %136 = vector.shape_cast %135 : vector<1x256xf32> to vector<256xf32>
    %137 = vector.shape_cast %136 : vector<256xf32> to vector<1x256xf32>
    %138 = vector.broadcast %137 : vector<1x256xf32> to vector<4x256xf32>
    %139 = arith.mulf %134, %138 : vector<4x256xf32>
    %c11 = arith.constant 11 : index
    %c0_79 = arith.constant 0 : index
    %c0_80 = arith.constant 0 : index
    %140 = vector.load %arg5[%c11, %c0_79, %c0_80] : memref<49x4x1xf32, #tpu.memory_space<vmem>>, vector<1x4x1xf32>
    %141 = vector.shape_cast %140 : vector<1x4x1xf32> to vector<4x1xf32>
    %142 = vector.broadcast %141 : vector<4x1xf32> to vector<4x256xf32>
    %143 = arith.mulf %139, %142 : vector<4x256xf32>
    %144 = arith.addf %128, %143 : vector<4x256xf32>
    %c3_81 = arith.constant 3 : index
    %c0_82 = arith.constant 0 : index
    %c0_83 = arith.constant 0 : index
    %145 = vector.load %arg4[%c3_81, %c0_82, %c0_83] : memref<25x4x1xf32, #tpu.memory_space<vmem>>, vector<1x4x1xf32>
    %146 = vector.shape_cast %145 : vector<1x4x1xf32> to vector<4x1xf32>
    %147 = vector.broadcast %146 : vector<4x1xf32> to vector<4x256xf32>
    %148 = arith.mulf %139, %147 : vector<4x256xf32>
    %149 = arith.addf %133, %148 : vector<4x256xf32>
    %c0_84 = arith.constant 0 : index
    %c21 = arith.constant 21 : index
    %150 = vector.load %arg9[%c0_84, %c21] : memref<4x358xf32, #tpu.memory_space<vmem>>, vector<4x256xf32>
    %c5_85 = arith.constant 5 : index
    %c0_86 = arith.constant 0 : index
    %151 = vector.load %arg2[%c5_85, %c0_86] : memref<7x256xf32, #tpu.memory_space<vmem>>, vector<1x256xf32>
    %152 = vector.shape_cast %151 : vector<1x256xf32> to vector<256xf32>
    %153 = vector.shape_cast %152 : vector<256xf32> to vector<1x256xf32>
    %154 = vector.broadcast %153 : vector<1x256xf32> to vector<4x256xf32>
    %155 = arith.mulf %150, %154 : vector<4x256xf32>
    %c12 = arith.constant 12 : index
    %c0_87 = arith.constant 0 : index
    %c0_88 = arith.constant 0 : index
    %156 = vector.load %arg5[%c12, %c0_87, %c0_88] : memref<49x4x1xf32, #tpu.memory_space<vmem>>, vector<1x4x1xf32>
    %157 = vector.shape_cast %156 : vector<1x4x1xf32> to vector<4x1xf32>
    %158 = vector.broadcast %157 : vector<4x1xf32> to vector<4x256xf32>
    %159 = arith.mulf %155, %158 : vector<4x256xf32>
    %160 = arith.addf %144, %159 : vector<4x256xf32>
    %c4_89 = arith.constant 4 : index
    %c0_90 = arith.constant 0 : index
    %c0_91 = arith.constant 0 : index
    %161 = vector.load %arg4[%c4_89, %c0_90, %c0_91] : memref<25x4x1xf32, #tpu.memory_space<vmem>>, vector<1x4x1xf32>
    %162 = vector.shape_cast %161 : vector<1x4x1xf32> to vector<4x1xf32>
    %163 = vector.broadcast %162 : vector<4x1xf32> to vector<4x256xf32>
    %164 = arith.mulf %155, %163 : vector<4x256xf32>
    %165 = arith.addf %149, %164 : vector<4x256xf32>
    %c0_92 = arith.constant 0 : index
    %c22 = arith.constant 22 : index
    %166 = vector.load %arg9[%c0_92, %c22] : memref<4x358xf32, #tpu.memory_space<vmem>>, vector<4x256xf32>
    %c6_93 = arith.constant 6 : index
    %c0_94 = arith.constant 0 : index
    %167 = vector.load %arg2[%c6_93, %c0_94] : memref<7x256xf32, #tpu.memory_space<vmem>>, vector<1x256xf32>
    %168 = vector.shape_cast %167 : vector<1x256xf32> to vector<256xf32>
    %169 = vector.shape_cast %168 : vector<256xf32> to vector<1x256xf32>
    %170 = vector.broadcast %169 : vector<1x256xf32> to vector<4x256xf32>
    %171 = arith.mulf %166, %170 : vector<4x256xf32>
    %c13 = arith.constant 13 : index
    %c0_95 = arith.constant 0 : index
    %c0_96 = arith.constant 0 : index
    %172 = vector.load %arg5[%c13, %c0_95, %c0_96] : memref<49x4x1xf32, #tpu.memory_space<vmem>>, vector<1x4x1xf32>
    %173 = vector.shape_cast %172 : vector<1x4x1xf32> to vector<4x1xf32>
    %174 = vector.broadcast %173 : vector<4x1xf32> to vector<4x256xf32>
    %175 = arith.mulf %171, %174 : vector<4x256xf32>
    %176 = arith.addf %160, %175 : vector<4x256xf32>
    %c0_97 = arith.constant 0 : index
    %c32 = arith.constant 32 : index
    %177 = vector.load %arg9[%c0_97, %c32] : memref<4x358xf32, #tpu.memory_space<vmem>>, vector<4x256xf32>
    %c0_98 = arith.constant 0 : index
    %c0_99 = arith.constant 0 : index
    %178 = vector.load %arg2[%c0_98, %c0_99] : memref<7x256xf32, #tpu.memory_space<vmem>>, vector<1x256xf32>
    %179 = vector.shape_cast %178 : vector<1x256xf32> to vector<256xf32>
    %180 = vector.shape_cast %179 : vector<256xf32> to vector<1x256xf32>
    %181 = vector.broadcast %180 : vector<1x256xf32> to vector<4x256xf32>
    %182 = arith.mulf %177, %181 : vector<4x256xf32>
    %c14 = arith.constant 14 : index
    %c0_100 = arith.constant 0 : index
    %c0_101 = arith.constant 0 : index
    %183 = vector.load %arg5[%c14, %c0_100, %c0_101] : memref<49x4x1xf32, #tpu.memory_space<vmem>>, vector<1x4x1xf32>
    %184 = vector.shape_cast %183 : vector<1x4x1xf32> to vector<4x1xf32>
    %185 = vector.broadcast %184 : vector<4x1xf32> to vector<4x256xf32>
    %186 = arith.mulf %182, %185 : vector<4x256xf32>
    %187 = arith.addf %176, %186 : vector<4x256xf32>
    %c0_102 = arith.constant 0 : index
    %c33 = arith.constant 33 : index
    %188 = vector.load %arg9[%c0_102, %c33] : memref<4x358xf32, #tpu.memory_space<vmem>>, vector<4x256xf32>
    %c1_103 = arith.constant 1 : index
    %c0_104 = arith.constant 0 : index
    %189 = vector.load %arg2[%c1_103, %c0_104] : memref<7x256xf32, #tpu.memory_space<vmem>>, vector<1x256xf32>
    %190 = vector.shape_cast %189 : vector<1x256xf32> to vector<256xf32>
    %191 = vector.shape_cast %190 : vector<256xf32> to vector<1x256xf32>
    %192 = vector.broadcast %191 : vector<1x256xf32> to vector<4x256xf32>
    %193 = arith.mulf %188, %192 : vector<4x256xf32>
    %c15 = arith.constant 15 : index
    %c0_105 = arith.constant 0 : index
    %c0_106 = arith.constant 0 : index
    %194 = vector.load %arg5[%c15, %c0_105, %c0_106] : memref<49x4x1xf32, #tpu.memory_space<vmem>>, vector<1x4x1xf32>
    %195 = vector.shape_cast %194 : vector<1x4x1xf32> to vector<4x1xf32>
    %196 = vector.broadcast %195 : vector<4x1xf32> to vector<4x256xf32>
    %197 = arith.mulf %193, %196 : vector<4x256xf32>
    %198 = arith.addf %187, %197 : vector<4x256xf32>
    %c5_107 = arith.constant 5 : index
    %c0_108 = arith.constant 0 : index
    %c0_109 = arith.constant 0 : index
    %199 = vector.load %arg4[%c5_107, %c0_108, %c0_109] : memref<25x4x1xf32, #tpu.memory_space<vmem>>, vector<1x4x1xf32>
    %200 = vector.shape_cast %199 : vector<1x4x1xf32> to vector<4x1xf32>
    %201 = vector.broadcast %200 : vector<4x1xf32> to vector<4x256xf32>
    %202 = arith.mulf %193, %201 : vector<4x256xf32>
    %203 = arith.addf %165, %202 : vector<4x256xf32>
    %c0_110 = arith.constant 0 : index
    %c34 = arith.constant 34 : index
    %204 = vector.load %arg9[%c0_110, %c34] : memref<4x358xf32, #tpu.memory_space<vmem>>, vector<4x256xf32>
    %c2_111 = arith.constant 2 : index
    %c0_112 = arith.constant 0 : index
    %205 = vector.load %arg2[%c2_111, %c0_112] : memref<7x256xf32, #tpu.memory_space<vmem>>, vector<1x256xf32>
    %206 = vector.shape_cast %205 : vector<1x256xf32> to vector<256xf32>
    %207 = vector.shape_cast %206 : vector<256xf32> to vector<1x256xf32>
    %208 = vector.broadcast %207 : vector<1x256xf32> to vector<4x256xf32>
    %209 = arith.mulf %204, %208 : vector<4x256xf32>
    %c16_113 = arith.constant 16 : index
    %c0_114 = arith.constant 0 : index
    %c0_115 = arith.constant 0 : index
    %210 = vector.load %arg5[%c16_113, %c0_114, %c0_115] : memref<49x4x1xf32, #tpu.memory_space<vmem>>, vector<1x4x1xf32>
    %211 = vector.shape_cast %210 : vector<1x4x1xf32> to vector<4x1xf32>
    %212 = vector.broadcast %211 : vector<4x1xf32> to vector<4x256xf32>
    %213 = arith.mulf %209, %212 : vector<4x256xf32>
    %214 = arith.addf %198, %213 : vector<4x256xf32>
    %c6_116 = arith.constant 6 : index
    %c0_117 = arith.constant 0 : index
    %c0_118 = arith.constant 0 : index
    %215 = vector.load %arg4[%c6_116, %c0_117, %c0_118] : memref<25x4x1xf32, #tpu.memory_space<vmem>>, vector<1x4x1xf32>
    %216 = vector.shape_cast %215 : vector<1x4x1xf32> to vector<4x1xf32>
    %217 = vector.broadcast %216 : vector<4x1xf32> to vector<4x256xf32>
    %218 = arith.mulf %209, %217 : vector<4x256xf32>
    %219 = arith.addf %203, %218 : vector<4x256xf32>
    %c0_119 = arith.constant 0 : index
    %c0_120 = arith.constant 0 : index
    %c0_121 = arith.constant 0 : index
    %220 = vector.load %arg3[%c0_119, %c0_120, %c0_121] : memref<9x4x1xf32, #tpu.memory_space<vmem>>, vector<1x4x1xf32>
    %221 = vector.shape_cast %220 : vector<1x4x1xf32> to vector<4x1xf32>
    %222 = vector.broadcast %221 : vector<4x1xf32> to vector<4x256xf32>
    %223 = arith.mulf %209, %222 : vector<4x256xf32>
    %224 = arith.addf %5, %223 : vector<4x256xf32>
    %c0_122 = arith.constant 0 : index
    %c35 = arith.constant 35 : index
    %225 = vector.load %arg9[%c0_122, %c35] : memref<4x358xf32, #tpu.memory_space<vmem>>, vector<4x256xf32>
    %c17_123 = arith.constant 17 : index
    %c0_124 = arith.constant 0 : index
    %c0_125 = arith.constant 0 : index
    %226 = vector.load %arg5[%c17_123, %c0_124, %c0_125] : memref<49x4x1xf32, #tpu.memory_space<vmem>>, vector<1x4x1xf32>
    %227 = vector.shape_cast %226 : vector<1x4x1xf32> to vector<4x1xf32>
    %228 = vector.broadcast %227 : vector<4x1xf32> to vector<4x256xf32>
    %229 = arith.mulf %225, %228 : vector<4x256xf32>
    %230 = arith.addf %214, %229 : vector<4x256xf32>
    %c7_126 = arith.constant 7 : index
    %c0_127 = arith.constant 0 : index
    %c0_128 = arith.constant 0 : index
    %231 = vector.load %arg4[%c7_126, %c0_127, %c0_128] : memref<25x4x1xf32, #tpu.memory_space<vmem>>, vector<1x4x1xf32>
    %232 = vector.shape_cast %231 : vector<1x4x1xf32> to vector<4x1xf32>
    %233 = vector.broadcast %232 : vector<4x1xf32> to vector<4x256xf32>
    %234 = arith.mulf %225, %233 : vector<4x256xf32>
    %235 = arith.addf %219, %234 : vector<4x256xf32>
    %c1_129 = arith.constant 1 : index
    %c0_130 = arith.constant 0 : index
    %c0_131 = arith.constant 0 : index
    %236 = vector.load %arg3[%c1_129, %c0_130, %c0_131] : memref<9x4x1xf32, #tpu.memory_space<vmem>>, vector<1x4x1xf32>
    %237 = vector.shape_cast %236 : vector<1x4x1xf32> to vector<4x1xf32>
    %238 = vector.broadcast %237 : vector<4x1xf32> to vector<4x256xf32>
    %239 = arith.mulf %225, %238 : vector<4x256xf32>
    %240 = arith.addf %224, %239 : vector<4x256xf32>
    %c0_132 = arith.constant 0 : index
    %c36 = arith.constant 36 : index
    %241 = vector.load %arg9[%c0_132, %c36] : memref<4x358xf32, #tpu.memory_space<vmem>>, vector<4x256xf32>
    %c4_133 = arith.constant 4 : index
    %c0_134 = arith.constant 0 : index
    %242 = vector.load %arg2[%c4_133, %c0_134] : memref<7x256xf32, #tpu.memory_space<vmem>>, vector<1x256xf32>
    %243 = vector.shape_cast %242 : vector<1x256xf32> to vector<256xf32>
    %244 = vector.shape_cast %243 : vector<256xf32> to vector<1x256xf32>
    %245 = vector.broadcast %244 : vector<1x256xf32> to vector<4x256xf32>
    %246 = arith.mulf %241, %245 : vector<4x256xf32>
    %c18_135 = arith.constant 18 : index
    %c0_136 = arith.constant 0 : index
    %c0_137 = arith.constant 0 : index
    %247 = vector.load %arg5[%c18_135, %c0_136, %c0_137] : memref<49x4x1xf32, #tpu.memory_space<vmem>>, vector<1x4x1xf32>
    %248 = vector.shape_cast %247 : vector<1x4x1xf32> to vector<4x1xf32>
    %249 = vector.broadcast %248 : vector<4x1xf32> to vector<4x256xf32>
    %250 = arith.mulf %246, %249 : vector<4x256xf32>
    %251 = arith.addf %230, %250 : vector<4x256xf32>
    %c8_138 = arith.constant 8 : index
    %c0_139 = arith.constant 0 : index
    %c0_140 = arith.constant 0 : index
    %252 = vector.load %arg4[%c8_138, %c0_139, %c0_140] : memref<25x4x1xf32, #tpu.memory_space<vmem>>, vector<1x4x1xf32>
    %253 = vector.shape_cast %252 : vector<1x4x1xf32> to vector<4x1xf32>
    %254 = vector.broadcast %253 : vector<4x1xf32> to vector<4x256xf32>
    %255 = arith.mulf %246, %254 : vector<4x256xf32>
    %256 = arith.addf %235, %255 : vector<4x256xf32>
    %c2_141 = arith.constant 2 : index
    %c0_142 = arith.constant 0 : index
    %c0_143 = arith.constant 0 : index
    %257 = vector.load %arg3[%c2_141, %c0_142, %c0_143] : memref<9x4x1xf32, #tpu.memory_space<vmem>>, vector<1x4x1xf32>
    %258 = vector.shape_cast %257 : vector<1x4x1xf32> to vector<4x1xf32>
    %259 = vector.broadcast %258 : vector<4x1xf32> to vector<4x256xf32>
    %260 = arith.mulf %246, %259 : vector<4x256xf32>
    %261 = arith.addf %240, %260 : vector<4x256xf32>
    %c0_144 = arith.constant 0 : index
    %c37 = arith.constant 37 : index
    %262 = vector.load %arg9[%c0_144, %c37] : memref<4x358xf32, #tpu.memory_space<vmem>>, vector<4x256xf32>
    %c5_145 = arith.constant 5 : index
    %c0_146 = arith.constant 0 : index
    %263 = vector.load %arg2[%c5_145, %c0_146] : memref<7x256xf32, #tpu.memory_space<vmem>>, vector<1x256xf32>
    %264 = vector.shape_cast %263 : vector<1x256xf32> to vector<256xf32>
    %265 = vector.shape_cast %264 : vector<256xf32> to vector<1x256xf32>
    %266 = vector.broadcast %265 : vector<1x256xf32> to vector<4x256xf32>
    %267 = arith.mulf %262, %266 : vector<4x256xf32>
    %c19_147 = arith.constant 19 : index
    %c0_148 = arith.constant 0 : index
    %c0_149 = arith.constant 0 : index
    %268 = vector.load %arg5[%c19_147, %c0_148, %c0_149] : memref<49x4x1xf32, #tpu.memory_space<vmem>>, vector<1x4x1xf32>
    %269 = vector.shape_cast %268 : vector<1x4x1xf32> to vector<4x1xf32>
    %270 = vector.broadcast %269 : vector<4x1xf32> to vector<4x256xf32>
    %271 = arith.mulf %267, %270 : vector<4x256xf32>
    %272 = arith.addf %251, %271 : vector<4x256xf32>
    %c9_150 = arith.constant 9 : index
    %c0_151 = arith.constant 0 : index
    %c0_152 = arith.constant 0 : index
    %273 = vector.load %arg4[%c9_150, %c0_151, %c0_152] : memref<25x4x1xf32, #tpu.memory_space<vmem>>, vector<1x4x1xf32>
    %274 = vector.shape_cast %273 : vector<1x4x1xf32> to vector<4x1xf32>
    %275 = vector.broadcast %274 : vector<4x1xf32> to vector<4x256xf32>
    %276 = arith.mulf %267, %275 : vector<4x256xf32>
    %277 = arith.addf %256, %276 : vector<4x256xf32>
    %c0_153 = arith.constant 0 : index
    %c38 = arith.constant 38 : index
    %278 = vector.load %arg9[%c0_153, %c38] : memref<4x358xf32, #tpu.memory_space<vmem>>, vector<4x256xf32>
    %c6_154 = arith.constant 6 : index
    %c0_155 = arith.constant 0 : index
    %279 = vector.load %arg2[%c6_154, %c0_155] : memref<7x256xf32, #tpu.memory_space<vmem>>, vector<1x256xf32>
    %280 = vector.shape_cast %279 : vector<1x256xf32> to vector<256xf32>
    %281 = vector.shape_cast %280 : vector<256xf32> to vector<1x256xf32>
    %282 = vector.broadcast %281 : vector<1x256xf32> to vector<4x256xf32>
    %283 = arith.mulf %278, %282 : vector<4x256xf32>
    %c20_156 = arith.constant 20 : index
    %c0_157 = arith.constant 0 : index
    %c0_158 = arith.constant 0 : index
    %284 = vector.load %arg5[%c20_156, %c0_157, %c0_158] : memref<49x4x1xf32, #tpu.memory_space<vmem>>, vector<1x4x1xf32>
    %285 = vector.shape_cast %284 : vector<1x4x1xf32> to vector<4x1xf32>
    %286 = vector.broadcast %285 : vector<4x1xf32> to vector<4x256xf32>
    %287 = arith.mulf %283, %286 : vector<4x256xf32>
    %288 = arith.addf %272, %287 : vector<4x256xf32>
    %c0_159 = arith.constant 0 : index
    %c48 = arith.constant 48 : index
    %289 = vector.load %arg9[%c0_159, %c48] : memref<4x358xf32, #tpu.memory_space<vmem>>, vector<4x256xf32>
    %c0_160 = arith.constant 0 : index
    %c0_161 = arith.constant 0 : index
    %290 = vector.load %arg2[%c0_160, %c0_161] : memref<7x256xf32, #tpu.memory_space<vmem>>, vector<1x256xf32>
    %291 = vector.shape_cast %290 : vector<1x256xf32> to vector<256xf32>
    %292 = vector.shape_cast %291 : vector<256xf32> to vector<1x256xf32>
    %293 = vector.broadcast %292 : vector<1x256xf32> to vector<4x256xf32>
    %294 = arith.mulf %289, %293 : vector<4x256xf32>
    %c21_162 = arith.constant 21 : index
    %c0_163 = arith.constant 0 : index
    %c0_164 = arith.constant 0 : index
    %295 = vector.load %arg5[%c21_162, %c0_163, %c0_164] : memref<49x4x1xf32, #tpu.memory_space<vmem>>, vector<1x4x1xf32>
    %296 = vector.shape_cast %295 : vector<1x4x1xf32> to vector<4x1xf32>
    %297 = vector.broadcast %296 : vector<4x1xf32> to vector<4x256xf32>
    %298 = arith.mulf %294, %297 : vector<4x256xf32>
    %299 = arith.addf %288, %298 : vector<4x256xf32>
    %c0_165 = arith.constant 0 : index
    %c49 = arith.constant 49 : index
    %300 = vector.load %arg9[%c0_165, %c49] : memref<4x358xf32, #tpu.memory_space<vmem>>, vector<4x256xf32>
    %c1_166 = arith.constant 1 : index
    %c0_167 = arith.constant 0 : index
    %301 = vector.load %arg2[%c1_166, %c0_167] : memref<7x256xf32, #tpu.memory_space<vmem>>, vector<1x256xf32>
    %302 = vector.shape_cast %301 : vector<1x256xf32> to vector<256xf32>
    %303 = vector.shape_cast %302 : vector<256xf32> to vector<1x256xf32>
    %304 = vector.broadcast %303 : vector<1x256xf32> to vector<4x256xf32>
    %305 = arith.mulf %300, %304 : vector<4x256xf32>
    %c22_168 = arith.constant 22 : index
    %c0_169 = arith.constant 0 : index
    %c0_170 = arith.constant 0 : index
    %306 = vector.load %arg5[%c22_168, %c0_169, %c0_170] : memref<49x4x1xf32, #tpu.memory_space<vmem>>, vector<1x4x1xf32>
    %307 = vector.shape_cast %306 : vector<1x4x1xf32> to vector<4x1xf32>
    %308 = vector.broadcast %307 : vector<4x1xf32> to vector<4x256xf32>
    %309 = arith.mulf %305, %308 : vector<4x256xf32>
    %310 = arith.addf %299, %309 : vector<4x256xf32>
    %c10_171 = arith.constant 10 : index
    %c0_172 = arith.constant 0 : index
    %c0_173 = arith.constant 0 : index
    %311 = vector.load %arg4[%c10_171, %c0_172, %c0_173] : memref<25x4x1xf32, #tpu.memory_space<vmem>>, vector<1x4x1xf32>
    %312 = vector.shape_cast %311 : vector<1x4x1xf32> to vector<4x1xf32>
    %313 = vector.broadcast %312 : vector<4x1xf32> to vector<4x256xf32>
    %314 = arith.mulf %305, %313 : vector<4x256xf32>
    %315 = arith.addf %277, %314 : vector<4x256xf32>
    %c0_174 = arith.constant 0 : index
    %c50 = arith.constant 50 : index
    %316 = vector.load %arg9[%c0_174, %c50] : memref<4x358xf32, #tpu.memory_space<vmem>>, vector<4x256xf32>
    %c2_175 = arith.constant 2 : index
    %c0_176 = arith.constant 0 : index
    %317 = vector.load %arg2[%c2_175, %c0_176] : memref<7x256xf32, #tpu.memory_space<vmem>>, vector<1x256xf32>
    %318 = vector.shape_cast %317 : vector<1x256xf32> to vector<256xf32>
    %319 = vector.shape_cast %318 : vector<256xf32> to vector<1x256xf32>
    %320 = vector.broadcast %319 : vector<1x256xf32> to vector<4x256xf32>
    %321 = arith.mulf %316, %320 : vector<4x256xf32>
    %c23 = arith.constant 23 : index
    %c0_177 = arith.constant 0 : index
    %c0_178 = arith.constant 0 : index
    %322 = vector.load %arg5[%c23, %c0_177, %c0_178] : memref<49x4x1xf32, #tpu.memory_space<vmem>>, vector<1x4x1xf32>
    %323 = vector.shape_cast %322 : vector<1x4x1xf32> to vector<4x1xf32>
    %324 = vector.broadcast %323 : vector<4x1xf32> to vector<4x256xf32>
    %325 = arith.mulf %321, %324 : vector<4x256xf32>
    %326 = arith.addf %310, %325 : vector<4x256xf32>
    %c11_179 = arith.constant 11 : index
    %c0_180 = arith.constant 0 : index
    %c0_181 = arith.constant 0 : index
    %327 = vector.load %arg4[%c11_179, %c0_180, %c0_181] : memref<25x4x1xf32, #tpu.memory_space<vmem>>, vector<1x4x1xf32>
    %328 = vector.shape_cast %327 : vector<1x4x1xf32> to vector<4x1xf32>
    %329 = vector.broadcast %328 : vector<4x1xf32> to vector<4x256xf32>
    %330 = arith.mulf %321, %329 : vector<4x256xf32>
    %331 = arith.addf %315, %330 : vector<4x256xf32>
    %c3_182 = arith.constant 3 : index
    %c0_183 = arith.constant 0 : index
    %c0_184 = arith.constant 0 : index
    %332 = vector.load %arg3[%c3_182, %c0_183, %c0_184] : memref<9x4x1xf32, #tpu.memory_space<vmem>>, vector<1x4x1xf32>
    %333 = vector.shape_cast %332 : vector<1x4x1xf32> to vector<4x1xf32>
    %334 = vector.broadcast %333 : vector<4x1xf32> to vector<4x256xf32>
    %335 = arith.mulf %321, %334 : vector<4x256xf32>
    %336 = arith.addf %261, %335 : vector<4x256xf32>
    %c0_185 = arith.constant 0 : index
    %c51_186 = arith.constant 51 : index
    %337 = vector.load %arg9[%c0_185, %c51_186] : memref<4x358xf32, #tpu.memory_space<vmem>>, vector<4x256xf32>
    %c24 = arith.constant 24 : index
    %c0_187 = arith.constant 0 : index
    %c0_188 = arith.constant 0 : index
    %338 = vector.load %arg5[%c24, %c0_187, %c0_188] : memref<49x4x1xf32, #tpu.memory_space<vmem>>, vector<1x4x1xf32>
    %339 = vector.shape_cast %338 : vector<1x4x1xf32> to vector<4x1xf32>
    %340 = vector.broadcast %339 : vector<4x1xf32> to vector<4x256xf32>
    %341 = arith.mulf %337, %340 : vector<4x256xf32>
    %342 = arith.addf %326, %341 : vector<4x256xf32>
    %c12_189 = arith.constant 12 : index
    %c0_190 = arith.constant 0 : index
    %c0_191 = arith.constant 0 : index
    %343 = vector.load %arg4[%c12_189, %c0_190, %c0_191] : memref<25x4x1xf32, #tpu.memory_space<vmem>>, vector<1x4x1xf32>
    %344 = vector.shape_cast %343 : vector<1x4x1xf32> to vector<4x1xf32>
    %345 = vector.broadcast %344 : vector<4x1xf32> to vector<4x256xf32>
    %346 = arith.mulf %337, %345 : vector<4x256xf32>
    %347 = arith.addf %331, %346 : vector<4x256xf32>
    %c4_192 = arith.constant 4 : index
    %c0_193 = arith.constant 0 : index
    %c0_194 = arith.constant 0 : index
    %348 = vector.load %arg3[%c4_192, %c0_193, %c0_194] : memref<9x4x1xf32, #tpu.memory_space<vmem>>, vector<1x4x1xf32>
    %349 = vector.shape_cast %348 : vector<1x4x1xf32> to vector<4x1xf32>
    %350 = vector.broadcast %349 : vector<4x1xf32> to vector<4x256xf32>
    %351 = arith.mulf %337, %350 : vector<4x256xf32>
    %352 = arith.addf %336, %351 : vector<4x256xf32>
    %c0_195 = arith.constant 0 : index
    %c52 = arith.constant 52 : index
    %353 = vector.load %arg9[%c0_195, %c52] : memref<4x358xf32, #tpu.memory_space<vmem>>, vector<4x256xf32>
    %c4_196 = arith.constant 4 : index
    %c0_197 = arith.constant 0 : index
    %354 = vector.load %arg2[%c4_196, %c0_197] : memref<7x256xf32, #tpu.memory_space<vmem>>, vector<1x256xf32>
    %355 = vector.shape_cast %354 : vector<1x256xf32> to vector<256xf32>
    %356 = vector.shape_cast %355 : vector<256xf32> to vector<1x256xf32>
    %357 = vector.broadcast %356 : vector<1x256xf32> to vector<4x256xf32>
    %358 = arith.mulf %353, %357 : vector<4x256xf32>
    %c25 = arith.constant 25 : index
    %c0_198 = arith.constant 0 : index
    %c0_199 = arith.constant 0 : index
    %359 = vector.load %arg5[%c25, %c0_198, %c0_199] : memref<49x4x1xf32, #tpu.memory_space<vmem>>, vector<1x4x1xf32>
    %360 = vector.shape_cast %359 : vector<1x4x1xf32> to vector<4x1xf32>
    %361 = vector.broadcast %360 : vector<4x1xf32> to vector<4x256xf32>
    %362 = arith.mulf %358, %361 : vector<4x256xf32>
    %363 = arith.addf %342, %362 : vector<4x256xf32>
    %c13_200 = arith.constant 13 : index
    %c0_201 = arith.constant 0 : index
    %c0_202 = arith.constant 0 : index
    %364 = vector.load %arg4[%c13_200, %c0_201, %c0_202] : memref<25x4x1xf32, #tpu.memory_space<vmem>>, vector<1x4x1xf32>
    %365 = vector.shape_cast %364 : vector<1x4x1xf32> to vector<4x1xf32>
    %366 = vector.broadcast %365 : vector<4x1xf32> to vector<4x256xf32>
    %367 = arith.mulf %358, %366 : vector<4x256xf32>
    %368 = arith.addf %347, %367 : vector<4x256xf32>
    %c5_203 = arith.constant 5 : index
    %c0_204 = arith.constant 0 : index
    %c0_205 = arith.constant 0 : index
    %369 = vector.load %arg3[%c5_203, %c0_204, %c0_205] : memref<9x4x1xf32, #tpu.memory_space<vmem>>, vector<1x4x1xf32>
    %370 = vector.shape_cast %369 : vector<1x4x1xf32> to vector<4x1xf32>
    %371 = vector.broadcast %370 : vector<4x1xf32> to vector<4x256xf32>
    %372 = arith.mulf %358, %371 : vector<4x256xf32>
    %373 = arith.addf %352, %372 : vector<4x256xf32>
    %c0_206 = arith.constant 0 : index
    %c53 = arith.constant 53 : index
    %374 = vector.load %arg9[%c0_206, %c53] : memref<4x358xf32, #tpu.memory_space<vmem>>, vector<4x256xf32>
    %c5_207 = arith.constant 5 : index
    %c0_208 = arith.constant 0 : index
    %375 = vector.load %arg2[%c5_207, %c0_208] : memref<7x256xf32, #tpu.memory_space<vmem>>, vector<1x256xf32>
    %376 = vector.shape_cast %375 : vector<1x256xf32> to vector<256xf32>
    %377 = vector.shape_cast %376 : vector<256xf32> to vector<1x256xf32>
    %378 = vector.broadcast %377 : vector<1x256xf32> to vector<4x256xf32>
    %379 = arith.mulf %374, %378 : vector<4x256xf32>
    %c26 = arith.constant 26 : index
    %c0_209 = arith.constant 0 : index
    %c0_210 = arith.constant 0 : index
    %380 = vector.load %arg5[%c26, %c0_209, %c0_210] : memref<49x4x1xf32, #tpu.memory_space<vmem>>, vector<1x4x1xf32>
    %381 = vector.shape_cast %380 : vector<1x4x1xf32> to vector<4x1xf32>
    %382 = vector.broadcast %381 : vector<4x1xf32> to vector<4x256xf32>
    %383 = arith.mulf %379, %382 : vector<4x256xf32>
    %384 = arith.addf %363, %383 : vector<4x256xf32>
    %c14_211 = arith.constant 14 : index
    %c0_212 = arith.constant 0 : index
    %c0_213 = arith.constant 0 : index
    %385 = vector.load %arg4[%c14_211, %c0_212, %c0_213] : memref<25x4x1xf32, #tpu.memory_space<vmem>>, vector<1x4x1xf32>
    %386 = vector.shape_cast %385 : vector<1x4x1xf32> to vector<4x1xf32>
    %387 = vector.broadcast %386 : vector<4x1xf32> to vector<4x256xf32>
    %388 = arith.mulf %379, %387 : vector<4x256xf32>
    %389 = arith.addf %368, %388 : vector<4x256xf32>
    %c0_214 = arith.constant 0 : index
    %c54 = arith.constant 54 : index
    %390 = vector.load %arg9[%c0_214, %c54] : memref<4x358xf32, #tpu.memory_space<vmem>>, vector<4x256xf32>
    %c6_215 = arith.constant 6 : index
    %c0_216 = arith.constant 0 : index
    %391 = vector.load %arg2[%c6_215, %c0_216] : memref<7x256xf32, #tpu.memory_space<vmem>>, vector<1x256xf32>
    %392 = vector.shape_cast %391 : vector<1x256xf32> to vector<256xf32>
    %393 = vector.shape_cast %392 : vector<256xf32> to vector<1x256xf32>
    %394 = vector.broadcast %393 : vector<1x256xf32> to vector<4x256xf32>
    %395 = arith.mulf %390, %394 : vector<4x256xf32>
    %c27 = arith.constant 27 : index
    %c0_217 = arith.constant 0 : index
    %c0_218 = arith.constant 0 : index
    %396 = vector.load %arg5[%c27, %c0_217, %c0_218] : memref<49x4x1xf32, #tpu.memory_space<vmem>>, vector<1x4x1xf32>
    %397 = vector.shape_cast %396 : vector<1x4x1xf32> to vector<4x1xf32>
    %398 = vector.broadcast %397 : vector<4x1xf32> to vector<4x256xf32>
    %399 = arith.mulf %395, %398 : vector<4x256xf32>
    %400 = arith.addf %384, %399 : vector<4x256xf32>
    %c0_219 = arith.constant 0 : index
    %c64 = arith.constant 64 : index
    %401 = vector.load %arg9[%c0_219, %c64] : memref<4x358xf32, #tpu.memory_space<vmem>>, vector<4x256xf32>
    %c0_220 = arith.constant 0 : index
    %c0_221 = arith.constant 0 : index
    %402 = vector.load %arg2[%c0_220, %c0_221] : memref<7x256xf32, #tpu.memory_space<vmem>>, vector<1x256xf32>
    %403 = vector.shape_cast %402 : vector<1x256xf32> to vector<256xf32>
    %404 = vector.shape_cast %403 : vector<256xf32> to vector<1x256xf32>
    %405 = vector.broadcast %404 : vector<1x256xf32> to vector<4x256xf32>
    %406 = arith.mulf %401, %405 : vector<4x256xf32>
    %c28 = arith.constant 28 : index
    %c0_222 = arith.constant 0 : index
    %c0_223 = arith.constant 0 : index
    %407 = vector.load %arg5[%c28, %c0_222, %c0_223] : memref<49x4x1xf32, #tpu.memory_space<vmem>>, vector<1x4x1xf32>
    %408 = vector.shape_cast %407 : vector<1x4x1xf32> to vector<4x1xf32>
    %409 = vector.broadcast %408 : vector<4x1xf32> to vector<4x256xf32>
    %410 = arith.mulf %406, %409 : vector<4x256xf32>
    %411 = arith.addf %400, %410 : vector<4x256xf32>
    %c0_224 = arith.constant 0 : index
    %c65 = arith.constant 65 : index
    %412 = vector.load %arg9[%c0_224, %c65] : memref<4x358xf32, #tpu.memory_space<vmem>>, vector<4x256xf32>
    %c1_225 = arith.constant 1 : index
    %c0_226 = arith.constant 0 : index
    %413 = vector.load %arg2[%c1_225, %c0_226] : memref<7x256xf32, #tpu.memory_space<vmem>>, vector<1x256xf32>
    %414 = vector.shape_cast %413 : vector<1x256xf32> to vector<256xf32>
    %415 = vector.shape_cast %414 : vector<256xf32> to vector<1x256xf32>
    %416 = vector.broadcast %415 : vector<1x256xf32> to vector<4x256xf32>
    %417 = arith.mulf %412, %416 : vector<4x256xf32>
    %c29 = arith.constant 29 : index
    %c0_227 = arith.constant 0 : index
    %c0_228 = arith.constant 0 : index
    %418 = vector.load %arg5[%c29, %c0_227, %c0_228] : memref<49x4x1xf32, #tpu.memory_space<vmem>>, vector<1x4x1xf32>
    %419 = vector.shape_cast %418 : vector<1x4x1xf32> to vector<4x1xf32>
    %420 = vector.broadcast %419 : vector<4x1xf32> to vector<4x256xf32>
    %421 = arith.mulf %417, %420 : vector<4x256xf32>
    %422 = arith.addf %411, %421 : vector<4x256xf32>
    %c15_229 = arith.constant 15 : index
    %c0_230 = arith.constant 0 : index
    %c0_231 = arith.constant 0 : index
    %423 = vector.load %arg4[%c15_229, %c0_230, %c0_231] : memref<25x4x1xf32, #tpu.memory_space<vmem>>, vector<1x4x1xf32>
    %424 = vector.shape_cast %423 : vector<1x4x1xf32> to vector<4x1xf32>
    %425 = vector.broadcast %424 : vector<4x1xf32> to vector<4x256xf32>
    %426 = arith.mulf %417, %425 : vector<4x256xf32>
    %427 = arith.addf %389, %426 : vector<4x256xf32>
    %c0_232 = arith.constant 0 : index
    %c66 = arith.constant 66 : index
    %428 = vector.load %arg9[%c0_232, %c66] : memref<4x358xf32, #tpu.memory_space<vmem>>, vector<4x256xf32>
    %c2_233 = arith.constant 2 : index
    %c0_234 = arith.constant 0 : index
    %429 = vector.load %arg2[%c2_233, %c0_234] : memref<7x256xf32, #tpu.memory_space<vmem>>, vector<1x256xf32>
    %430 = vector.shape_cast %429 : vector<1x256xf32> to vector<256xf32>
    %431 = vector.shape_cast %430 : vector<256xf32> to vector<1x256xf32>
    %432 = vector.broadcast %431 : vector<1x256xf32> to vector<4x256xf32>
    %433 = arith.mulf %428, %432 : vector<4x256xf32>
    %c30 = arith.constant 30 : index
    %c0_235 = arith.constant 0 : index
    %c0_236 = arith.constant 0 : index
    %434 = vector.load %arg5[%c30, %c0_235, %c0_236] : memref<49x4x1xf32, #tpu.memory_space<vmem>>, vector<1x4x1xf32>
    %435 = vector.shape_cast %434 : vector<1x4x1xf32> to vector<4x1xf32>
    %436 = vector.broadcast %435 : vector<4x1xf32> to vector<4x256xf32>
    %437 = arith.mulf %433, %436 : vector<4x256xf32>
    %438 = arith.addf %422, %437 : vector<4x256xf32>
    %c16_237 = arith.constant 16 : index
    %c0_238 = arith.constant 0 : index
    %c0_239 = arith.constant 0 : index
    %439 = vector.load %arg4[%c16_237, %c0_238, %c0_239] : memref<25x4x1xf32, #tpu.memory_space<vmem>>, vector<1x4x1xf32>
    %440 = vector.shape_cast %439 : vector<1x4x1xf32> to vector<4x1xf32>
    %441 = vector.broadcast %440 : vector<4x1xf32> to vector<4x256xf32>
    %442 = arith.mulf %433, %441 : vector<4x256xf32>
    %443 = arith.addf %427, %442 : vector<4x256xf32>
    %c6_240 = arith.constant 6 : index
    %c0_241 = arith.constant 0 : index
    %c0_242 = arith.constant 0 : index
    %444 = vector.load %arg3[%c6_240, %c0_241, %c0_242] : memref<9x4x1xf32, #tpu.memory_space<vmem>>, vector<1x4x1xf32>
    %445 = vector.shape_cast %444 : vector<1x4x1xf32> to vector<4x1xf32>
    %446 = vector.broadcast %445 : vector<4x1xf32> to vector<4x256xf32>
    %447 = arith.mulf %433, %446 : vector<4x256xf32>
    %448 = arith.addf %373, %447 : vector<4x256xf32>
    %c0_243 = arith.constant 0 : index
    %c67 = arith.constant 67 : index
    %449 = vector.load %arg9[%c0_243, %c67] : memref<4x358xf32, #tpu.memory_space<vmem>>, vector<4x256xf32>
    %c31 = arith.constant 31 : index
    %c0_244 = arith.constant 0 : index
    %c0_245 = arith.constant 0 : index
    %450 = vector.load %arg5[%c31, %c0_244, %c0_245] : memref<49x4x1xf32, #tpu.memory_space<vmem>>, vector<1x4x1xf32>
    %451 = vector.shape_cast %450 : vector<1x4x1xf32> to vector<4x1xf32>
    %452 = vector.broadcast %451 : vector<4x1xf32> to vector<4x256xf32>
    %453 = arith.mulf %449, %452 : vector<4x256xf32>
    %454 = arith.addf %438, %453 : vector<4x256xf32>
    %c17_246 = arith.constant 17 : index
    %c0_247 = arith.constant 0 : index
    %c0_248 = arith.constant 0 : index
    %455 = vector.load %arg4[%c17_246, %c0_247, %c0_248] : memref<25x4x1xf32, #tpu.memory_space<vmem>>, vector<1x4x1xf32>
    %456 = vector.shape_cast %455 : vector<1x4x1xf32> to vector<4x1xf32>
    %457 = vector.broadcast %456 : vector<4x1xf32> to vector<4x256xf32>
    %458 = arith.mulf %449, %457 : vector<4x256xf32>
    %459 = arith.addf %443, %458 : vector<4x256xf32>
    %c7_249 = arith.constant 7 : index
    %c0_250 = arith.constant 0 : index
    %c0_251 = arith.constant 0 : index
    %460 = vector.load %arg3[%c7_249, %c0_250, %c0_251] : memref<9x4x1xf32, #tpu.memory_space<vmem>>, vector<1x4x1xf32>
    %461 = vector.shape_cast %460 : vector<1x4x1xf32> to vector<4x1xf32>
    %462 = vector.broadcast %461 : vector<4x1xf32> to vector<4x256xf32>
    %463 = arith.mulf %449, %462 : vector<4x256xf32>
    %464 = arith.addf %448, %463 : vector<4x256xf32>
    %c0_252 = arith.constant 0 : index
    %c68 = arith.constant 68 : index
    %465 = vector.load %arg9[%c0_252, %c68] : memref<4x358xf32, #tpu.memory_space<vmem>>, vector<4x256xf32>
    %c4_253 = arith.constant 4 : index
    %c0_254 = arith.constant 0 : index
    %466 = vector.load %arg2[%c4_253, %c0_254] : memref<7x256xf32, #tpu.memory_space<vmem>>, vector<1x256xf32>
    %467 = vector.shape_cast %466 : vector<1x256xf32> to vector<256xf32>
    %468 = vector.shape_cast %467 : vector<256xf32> to vector<1x256xf32>
    %469 = vector.broadcast %468 : vector<1x256xf32> to vector<4x256xf32>
    %470 = arith.mulf %465, %469 : vector<4x256xf32>
    %c32_255 = arith.constant 32 : index
    %c0_256 = arith.constant 0 : index
    %c0_257 = arith.constant 0 : index
    %471 = vector.load %arg5[%c32_255, %c0_256, %c0_257] : memref<49x4x1xf32, #tpu.memory_space<vmem>>, vector<1x4x1xf32>
    %472 = vector.shape_cast %471 : vector<1x4x1xf32> to vector<4x1xf32>
    %473 = vector.broadcast %472 : vector<4x1xf32> to vector<4x256xf32>
    %474 = arith.mulf %470, %473 : vector<4x256xf32>
    %475 = arith.addf %454, %474 : vector<4x256xf32>
    %c18_258 = arith.constant 18 : index
    %c0_259 = arith.constant 0 : index
    %c0_260 = arith.constant 0 : index
    %476 = vector.load %arg4[%c18_258, %c0_259, %c0_260] : memref<25x4x1xf32, #tpu.memory_space<vmem>>, vector<1x4x1xf32>
    %477 = vector.shape_cast %476 : vector<1x4x1xf32> to vector<4x1xf32>
    %478 = vector.broadcast %477 : vector<4x1xf32> to vector<4x256xf32>
    %479 = arith.mulf %470, %478 : vector<4x256xf32>
    %480 = arith.addf %459, %479 : vector<4x256xf32>
    %c8_261 = arith.constant 8 : index
    %c0_262 = arith.constant 0 : index
    %c0_263 = arith.constant 0 : index
    %481 = vector.load %arg3[%c8_261, %c0_262, %c0_263] : memref<9x4x1xf32, #tpu.memory_space<vmem>>, vector<1x4x1xf32>
    %482 = vector.shape_cast %481 : vector<1x4x1xf32> to vector<4x1xf32>
    %483 = vector.broadcast %482 : vector<4x1xf32> to vector<4x256xf32>
    %484 = arith.mulf %470, %483 : vector<4x256xf32>
    %485 = arith.addf %464, %484 : vector<4x256xf32>
    %c0_264 = arith.constant 0 : index
    %c69 = arith.constant 69 : index
    %486 = vector.load %arg9[%c0_264, %c69] : memref<4x358xf32, #tpu.memory_space<vmem>>, vector<4x256xf32>
    %c5_265 = arith.constant 5 : index
    %c0_266 = arith.constant 0 : index
    %487 = vector.load %arg2[%c5_265, %c0_266] : memref<7x256xf32, #tpu.memory_space<vmem>>, vector<1x256xf32>
    %488 = vector.shape_cast %487 : vector<1x256xf32> to vector<256xf32>
    %489 = vector.shape_cast %488 : vector<256xf32> to vector<1x256xf32>
    %490 = vector.broadcast %489 : vector<1x256xf32> to vector<4x256xf32>
    %491 = arith.mulf %486, %490 : vector<4x256xf32>
    %c33_267 = arith.constant 33 : index
    %c0_268 = arith.constant 0 : index
    %c0_269 = arith.constant 0 : index
    %492 = vector.load %arg5[%c33_267, %c0_268, %c0_269] : memref<49x4x1xf32, #tpu.memory_space<vmem>>, vector<1x4x1xf32>
    %493 = vector.shape_cast %492 : vector<1x4x1xf32> to vector<4x1xf32>
    %494 = vector.broadcast %493 : vector<4x1xf32> to vector<4x256xf32>
    %495 = arith.mulf %491, %494 : vector<4x256xf32>
    %496 = arith.addf %475, %495 : vector<4x256xf32>
    %c19_270 = arith.constant 19 : index
    %c0_271 = arith.constant 0 : index
    %c0_272 = arith.constant 0 : index
    %497 = vector.load %arg4[%c19_270, %c0_271, %c0_272] : memref<25x4x1xf32, #tpu.memory_space<vmem>>, vector<1x4x1xf32>
    %498 = vector.shape_cast %497 : vector<1x4x1xf32> to vector<4x1xf32>
    %499 = vector.broadcast %498 : vector<4x1xf32> to vector<4x256xf32>
    %500 = arith.mulf %491, %499 : vector<4x256xf32>
    %501 = arith.addf %480, %500 : vector<4x256xf32>
    %c0_273 = arith.constant 0 : index
    %c70 = arith.constant 70 : index
    %502 = vector.load %arg9[%c0_273, %c70] : memref<4x358xf32, #tpu.memory_space<vmem>>, vector<4x256xf32>
    %c6_274 = arith.constant 6 : index
    %c0_275 = arith.constant 0 : index
    %503 = vector.load %arg2[%c6_274, %c0_275] : memref<7x256xf32, #tpu.memory_space<vmem>>, vector<1x256xf32>
    %504 = vector.shape_cast %503 : vector<1x256xf32> to vector<256xf32>
    %505 = vector.shape_cast %504 : vector<256xf32> to vector<1x256xf32>
    %506 = vector.broadcast %505 : vector<1x256xf32> to vector<4x256xf32>
    %507 = arith.mulf %502, %506 : vector<4x256xf32>
    %c34_276 = arith.constant 34 : index
    %c0_277 = arith.constant 0 : index
    %c0_278 = arith.constant 0 : index
    %508 = vector.load %arg5[%c34_276, %c0_277, %c0_278] : memref<49x4x1xf32, #tpu.memory_space<vmem>>, vector<1x4x1xf32>
    %509 = vector.shape_cast %508 : vector<1x4x1xf32> to vector<4x1xf32>
    %510 = vector.broadcast %509 : vector<4x1xf32> to vector<4x256xf32>
    %511 = arith.mulf %507, %510 : vector<4x256xf32>
    %512 = arith.addf %496, %511 : vector<4x256xf32>
    %c0_279 = arith.constant 0 : index
    %c80 = arith.constant 80 : index
    %513 = vector.load %arg9[%c0_279, %c80] : memref<4x358xf32, #tpu.memory_space<vmem>>, vector<4x256xf32>
    %c0_280 = arith.constant 0 : index
    %c0_281 = arith.constant 0 : index
    %514 = vector.load %arg2[%c0_280, %c0_281] : memref<7x256xf32, #tpu.memory_space<vmem>>, vector<1x256xf32>
    %515 = vector.shape_cast %514 : vector<1x256xf32> to vector<256xf32>
    %516 = vector.shape_cast %515 : vector<256xf32> to vector<1x256xf32>
    %517 = vector.broadcast %516 : vector<1x256xf32> to vector<4x256xf32>
    %518 = arith.mulf %513, %517 : vector<4x256xf32>
    %c35_282 = arith.constant 35 : index
    %c0_283 = arith.constant 0 : index
    %c0_284 = arith.constant 0 : index
    %519 = vector.load %arg5[%c35_282, %c0_283, %c0_284] : memref<49x4x1xf32, #tpu.memory_space<vmem>>, vector<1x4x1xf32>
    %520 = vector.shape_cast %519 : vector<1x4x1xf32> to vector<4x1xf32>
    %521 = vector.broadcast %520 : vector<4x1xf32> to vector<4x256xf32>
    %522 = arith.mulf %518, %521 : vector<4x256xf32>
    %523 = arith.addf %512, %522 : vector<4x256xf32>
    %c0_285 = arith.constant 0 : index
    %c81 = arith.constant 81 : index
    %524 = vector.load %arg9[%c0_285, %c81] : memref<4x358xf32, #tpu.memory_space<vmem>>, vector<4x256xf32>
    %c1_286 = arith.constant 1 : index
    %c0_287 = arith.constant 0 : index
    %525 = vector.load %arg2[%c1_286, %c0_287] : memref<7x256xf32, #tpu.memory_space<vmem>>, vector<1x256xf32>
    %526 = vector.shape_cast %525 : vector<1x256xf32> to vector<256xf32>
    %527 = vector.shape_cast %526 : vector<256xf32> to vector<1x256xf32>
    %528 = vector.broadcast %527 : vector<1x256xf32> to vector<4x256xf32>
    %529 = arith.mulf %524, %528 : vector<4x256xf32>
    %c36_288 = arith.constant 36 : index
    %c0_289 = arith.constant 0 : index
    %c0_290 = arith.constant 0 : index
    %530 = vector.load %arg5[%c36_288, %c0_289, %c0_290] : memref<49x4x1xf32, #tpu.memory_space<vmem>>, vector<1x4x1xf32>
    %531 = vector.shape_cast %530 : vector<1x4x1xf32> to vector<4x1xf32>
    %532 = vector.broadcast %531 : vector<4x1xf32> to vector<4x256xf32>
    %533 = arith.mulf %529, %532 : vector<4x256xf32>
    %534 = arith.addf %523, %533 : vector<4x256xf32>
    %c20_291 = arith.constant 20 : index
    %c0_292 = arith.constant 0 : index
    %c0_293 = arith.constant 0 : index
    %535 = vector.load %arg4[%c20_291, %c0_292, %c0_293] : memref<25x4x1xf32, #tpu.memory_space<vmem>>, vector<1x4x1xf32>
    %536 = vector.shape_cast %535 : vector<1x4x1xf32> to vector<4x1xf32>
    %537 = vector.broadcast %536 : vector<4x1xf32> to vector<4x256xf32>
    %538 = arith.mulf %529, %537 : vector<4x256xf32>
    %539 = arith.addf %501, %538 : vector<4x256xf32>
    %c0_294 = arith.constant 0 : index
    %c82 = arith.constant 82 : index
    %540 = vector.load %arg9[%c0_294, %c82] : memref<4x358xf32, #tpu.memory_space<vmem>>, vector<4x256xf32>
    %c2_295 = arith.constant 2 : index
    %c0_296 = arith.constant 0 : index
    %541 = vector.load %arg2[%c2_295, %c0_296] : memref<7x256xf32, #tpu.memory_space<vmem>>, vector<1x256xf32>
    %542 = vector.shape_cast %541 : vector<1x256xf32> to vector<256xf32>
    %543 = vector.shape_cast %542 : vector<256xf32> to vector<1x256xf32>
    %544 = vector.broadcast %543 : vector<1x256xf32> to vector<4x256xf32>
    %545 = arith.mulf %540, %544 : vector<4x256xf32>
    %c37_297 = arith.constant 37 : index
    %c0_298 = arith.constant 0 : index
    %c0_299 = arith.constant 0 : index
    %546 = vector.load %arg5[%c37_297, %c0_298, %c0_299] : memref<49x4x1xf32, #tpu.memory_space<vmem>>, vector<1x4x1xf32>
    %547 = vector.shape_cast %546 : vector<1x4x1xf32> to vector<4x1xf32>
    %548 = vector.broadcast %547 : vector<4x1xf32> to vector<4x256xf32>
    %549 = arith.mulf %545, %548 : vector<4x256xf32>
    %550 = arith.addf %534, %549 : vector<4x256xf32>
    %c21_300 = arith.constant 21 : index
    %c0_301 = arith.constant 0 : index
    %c0_302 = arith.constant 0 : index
    %551 = vector.load %arg4[%c21_300, %c0_301, %c0_302] : memref<25x4x1xf32, #tpu.memory_space<vmem>>, vector<1x4x1xf32>
    %552 = vector.shape_cast %551 : vector<1x4x1xf32> to vector<4x1xf32>
    %553 = vector.broadcast %552 : vector<4x1xf32> to vector<4x256xf32>
    %554 = arith.mulf %545, %553 : vector<4x256xf32>
    %555 = arith.addf %539, %554 : vector<4x256xf32>
    %c0_303 = arith.constant 0 : index
    %c83 = arith.constant 83 : index
    %556 = vector.load %arg9[%c0_303, %c83] : memref<4x358xf32, #tpu.memory_space<vmem>>, vector<4x256xf32>
    %c38_304 = arith.constant 38 : index
    %c0_305 = arith.constant 0 : index
    %c0_306 = arith.constant 0 : index
    %557 = vector.load %arg5[%c38_304, %c0_305, %c0_306] : memref<49x4x1xf32, #tpu.memory_space<vmem>>, vector<1x4x1xf32>
    %558 = vector.shape_cast %557 : vector<1x4x1xf32> to vector<4x1xf32>
    %559 = vector.broadcast %558 : vector<4x1xf32> to vector<4x256xf32>
    %560 = arith.mulf %556, %559 : vector<4x256xf32>
    %561 = arith.addf %550, %560 : vector<4x256xf32>
    %c22_307 = arith.constant 22 : index
    %c0_308 = arith.constant 0 : index
    %c0_309 = arith.constant 0 : index
    %562 = vector.load %arg4[%c22_307, %c0_308, %c0_309] : memref<25x4x1xf32, #tpu.memory_space<vmem>>, vector<1x4x1xf32>
    %563 = vector.shape_cast %562 : vector<1x4x1xf32> to vector<4x1xf32>
    %564 = vector.broadcast %563 : vector<4x1xf32> to vector<4x256xf32>
    %565 = arith.mulf %556, %564 : vector<4x256xf32>
    %566 = arith.addf %555, %565 : vector<4x256xf32>
    %c0_310 = arith.constant 0 : index
    %c84 = arith.constant 84 : index
    %567 = vector.load %arg9[%c0_310, %c84] : memref<4x358xf32, #tpu.memory_space<vmem>>, vector<4x256xf32>
    %c4_311 = arith.constant 4 : index
    %c0_312 = arith.constant 0 : index
    %568 = vector.load %arg2[%c4_311, %c0_312] : memref<7x256xf32, #tpu.memory_space<vmem>>, vector<1x256xf32>
    %569 = vector.shape_cast %568 : vector<1x256xf32> to vector<256xf32>
    %570 = vector.shape_cast %569 : vector<256xf32> to vector<1x256xf32>
    %571 = vector.broadcast %570 : vector<1x256xf32> to vector<4x256xf32>
    %572 = arith.mulf %567, %571 : vector<4x256xf32>
    %c39 = arith.constant 39 : index
    %c0_313 = arith.constant 0 : index
    %c0_314 = arith.constant 0 : index
    %573 = vector.load %arg5[%c39, %c0_313, %c0_314] : memref<49x4x1xf32, #tpu.memory_space<vmem>>, vector<1x4x1xf32>
    %574 = vector.shape_cast %573 : vector<1x4x1xf32> to vector<4x1xf32>
    %575 = vector.broadcast %574 : vector<4x1xf32> to vector<4x256xf32>
    %576 = arith.mulf %572, %575 : vector<4x256xf32>
    %577 = arith.addf %561, %576 : vector<4x256xf32>
    %c23_315 = arith.constant 23 : index
    %c0_316 = arith.constant 0 : index
    %c0_317 = arith.constant 0 : index
    %578 = vector.load %arg4[%c23_315, %c0_316, %c0_317] : memref<25x4x1xf32, #tpu.memory_space<vmem>>, vector<1x4x1xf32>
    %579 = vector.shape_cast %578 : vector<1x4x1xf32> to vector<4x1xf32>
    %580 = vector.broadcast %579 : vector<4x1xf32> to vector<4x256xf32>
    %581 = arith.mulf %572, %580 : vector<4x256xf32>
    %582 = arith.addf %566, %581 : vector<4x256xf32>
    %c0_318 = arith.constant 0 : index
    %c85 = arith.constant 85 : index
    %583 = vector.load %arg9[%c0_318, %c85] : memref<4x358xf32, #tpu.memory_space<vmem>>, vector<4x256xf32>
    %c5_319 = arith.constant 5 : index
    %c0_320 = arith.constant 0 : index
    %584 = vector.load %arg2[%c5_319, %c0_320] : memref<7x256xf32, #tpu.memory_space<vmem>>, vector<1x256xf32>
    %585 = vector.shape_cast %584 : vector<1x256xf32> to vector<256xf32>
    %586 = vector.shape_cast %585 : vector<256xf32> to vector<1x256xf32>
    %587 = vector.broadcast %586 : vector<1x256xf32> to vector<4x256xf32>
    %588 = arith.mulf %583, %587 : vector<4x256xf32>
    %c40 = arith.constant 40 : index
    %c0_321 = arith.constant 0 : index
    %c0_322 = arith.constant 0 : index
    %589 = vector.load %arg5[%c40, %c0_321, %c0_322] : memref<49x4x1xf32, #tpu.memory_space<vmem>>, vector<1x4x1xf32>
    %590 = vector.shape_cast %589 : vector<1x4x1xf32> to vector<4x1xf32>
    %591 = vector.broadcast %590 : vector<4x1xf32> to vector<4x256xf32>
    %592 = arith.mulf %588, %591 : vector<4x256xf32>
    %593 = arith.addf %577, %592 : vector<4x256xf32>
    %c24_323 = arith.constant 24 : index
    %c0_324 = arith.constant 0 : index
    %c0_325 = arith.constant 0 : index
    %594 = vector.load %arg4[%c24_323, %c0_324, %c0_325] : memref<25x4x1xf32, #tpu.memory_space<vmem>>, vector<1x4x1xf32>
    %595 = vector.shape_cast %594 : vector<1x4x1xf32> to vector<4x1xf32>
    %596 = vector.broadcast %595 : vector<4x1xf32> to vector<4x256xf32>
    %597 = arith.mulf %588, %596 : vector<4x256xf32>
    %598 = arith.addf %582, %597 : vector<4x256xf32>
    %c0_326 = arith.constant 0 : index
    %c86 = arith.constant 86 : index
    %599 = vector.load %arg9[%c0_326, %c86] : memref<4x358xf32, #tpu.memory_space<vmem>>, vector<4x256xf32>
    %c6_327 = arith.constant 6 : index
    %c0_328 = arith.constant 0 : index
    %600 = vector.load %arg2[%c6_327, %c0_328] : memref<7x256xf32, #tpu.memory_space<vmem>>, vector<1x256xf32>
    %601 = vector.shape_cast %600 : vector<1x256xf32> to vector<256xf32>
    %602 = vector.shape_cast %601 : vector<256xf32> to vector<1x256xf32>
    %603 = vector.broadcast %602 : vector<1x256xf32> to vector<4x256xf32>
    %604 = arith.mulf %599, %603 : vector<4x256xf32>
    %c41 = arith.constant 41 : index
    %c0_329 = arith.constant 0 : index
    %c0_330 = arith.constant 0 : index
    %605 = vector.load %arg5[%c41, %c0_329, %c0_330] : memref<49x4x1xf32, #tpu.memory_space<vmem>>, vector<1x4x1xf32>
    %606 = vector.shape_cast %605 : vector<1x4x1xf32> to vector<4x1xf32>
    %607 = vector.broadcast %606 : vector<4x1xf32> to vector<4x256xf32>
    %608 = arith.mulf %604, %607 : vector<4x256xf32>
    %609 = arith.addf %593, %608 : vector<4x256xf32>
    %c0_331 = arith.constant 0 : index
    %c96 = arith.constant 96 : index
    %610 = vector.load %arg9[%c0_331, %c96] : memref<4x358xf32, #tpu.memory_space<vmem>>, vector<4x256xf32>
    %c0_332 = arith.constant 0 : index
    %c0_333 = arith.constant 0 : index
    %611 = vector.load %arg2[%c0_332, %c0_333] : memref<7x256xf32, #tpu.memory_space<vmem>>, vector<1x256xf32>
    %612 = vector.shape_cast %611 : vector<1x256xf32> to vector<256xf32>
    %613 = vector.shape_cast %612 : vector<256xf32> to vector<1x256xf32>
    %614 = vector.broadcast %613 : vector<1x256xf32> to vector<4x256xf32>
    %615 = arith.mulf %610, %614 : vector<4x256xf32>
    %c42 = arith.constant 42 : index
    %c0_334 = arith.constant 0 : index
    %c0_335 = arith.constant 0 : index
    %616 = vector.load %arg5[%c42, %c0_334, %c0_335] : memref<49x4x1xf32, #tpu.memory_space<vmem>>, vector<1x4x1xf32>
    %617 = vector.shape_cast %616 : vector<1x4x1xf32> to vector<4x1xf32>
    %618 = vector.broadcast %617 : vector<4x1xf32> to vector<4x256xf32>
    %619 = arith.mulf %615, %618 : vector<4x256xf32>
    %620 = arith.addf %609, %619 : vector<4x256xf32>
    %c0_336 = arith.constant 0 : index
    %c97 = arith.constant 97 : index
    %621 = vector.load %arg9[%c0_336, %c97] : memref<4x358xf32, #tpu.memory_space<vmem>>, vector<4x256xf32>
    %c1_337 = arith.constant 1 : index
    %c0_338 = arith.constant 0 : index
    %622 = vector.load %arg2[%c1_337, %c0_338] : memref<7x256xf32, #tpu.memory_space<vmem>>, vector<1x256xf32>
    %623 = vector.shape_cast %622 : vector<1x256xf32> to vector<256xf32>
    %624 = vector.shape_cast %623 : vector<256xf32> to vector<1x256xf32>
    %625 = vector.broadcast %624 : vector<1x256xf32> to vector<4x256xf32>
    %626 = arith.mulf %621, %625 : vector<4x256xf32>
    %c43 = arith.constant 43 : index
    %c0_339 = arith.constant 0 : index
    %c0_340 = arith.constant 0 : index
    %627 = vector.load %arg5[%c43, %c0_339, %c0_340] : memref<49x4x1xf32, #tpu.memory_space<vmem>>, vector<1x4x1xf32>
    %628 = vector.shape_cast %627 : vector<1x4x1xf32> to vector<4x1xf32>
    %629 = vector.broadcast %628 : vector<4x1xf32> to vector<4x256xf32>
    %630 = arith.mulf %626, %629 : vector<4x256xf32>
    %631 = arith.addf %620, %630 : vector<4x256xf32>
    %c0_341 = arith.constant 0 : index
    %c98 = arith.constant 98 : index
    %632 = vector.load %arg9[%c0_341, %c98] : memref<4x358xf32, #tpu.memory_space<vmem>>, vector<4x256xf32>
    %c2_342 = arith.constant 2 : index
    %c0_343 = arith.constant 0 : index
    %633 = vector.load %arg2[%c2_342, %c0_343] : memref<7x256xf32, #tpu.memory_space<vmem>>, vector<1x256xf32>
    %634 = vector.shape_cast %633 : vector<1x256xf32> to vector<256xf32>
    %635 = vector.shape_cast %634 : vector<256xf32> to vector<1x256xf32>
    %636 = vector.broadcast %635 : vector<1x256xf32> to vector<4x256xf32>
    %637 = arith.mulf %632, %636 : vector<4x256xf32>
    %c44 = arith.constant 44 : index
    %c0_344 = arith.constant 0 : index
    %c0_345 = arith.constant 0 : index
    %638 = vector.load %arg5[%c44, %c0_344, %c0_345] : memref<49x4x1xf32, #tpu.memory_space<vmem>>, vector<1x4x1xf32>
    %639 = vector.shape_cast %638 : vector<1x4x1xf32> to vector<4x1xf32>
    %640 = vector.broadcast %639 : vector<4x1xf32> to vector<4x256xf32>
    %641 = arith.mulf %637, %640 : vector<4x256xf32>
    %642 = arith.addf %631, %641 : vector<4x256xf32>
    %c0_346 = arith.constant 0 : index
    %c99 = arith.constant 99 : index
    %643 = vector.load %arg9[%c0_346, %c99] : memref<4x358xf32, #tpu.memory_space<vmem>>, vector<4x256xf32>
    %c45 = arith.constant 45 : index
    %c0_347 = arith.constant 0 : index
    %c0_348 = arith.constant 0 : index
    %644 = vector.load %arg5[%c45, %c0_347, %c0_348] : memref<49x4x1xf32, #tpu.memory_space<vmem>>, vector<1x4x1xf32>
    %645 = vector.shape_cast %644 : vector<1x4x1xf32> to vector<4x1xf32>
    %646 = vector.broadcast %645 : vector<4x1xf32> to vector<4x256xf32>
    %647 = arith.mulf %643, %646 : vector<4x256xf32>
    %648 = arith.addf %642, %647 : vector<4x256xf32>
    %c0_349 = arith.constant 0 : index
    %c100 = arith.constant 100 : index
    %649 = vector.load %arg9[%c0_349, %c100] : memref<4x358xf32, #tpu.memory_space<vmem>>, vector<4x256xf32>
    %c4_350 = arith.constant 4 : index
    %c0_351 = arith.constant 0 : index
    %650 = vector.load %arg2[%c4_350, %c0_351] : memref<7x256xf32, #tpu.memory_space<vmem>>, vector<1x256xf32>
    %651 = vector.shape_cast %650 : vector<1x256xf32> to vector<256xf32>
    %652 = vector.shape_cast %651 : vector<256xf32> to vector<1x256xf32>
    %653 = vector.broadcast %652 : vector<1x256xf32> to vector<4x256xf32>
    %654 = arith.mulf %649, %653 : vector<4x256xf32>
    %c46 = arith.constant 46 : index
    %c0_352 = arith.constant 0 : index
    %c0_353 = arith.constant 0 : index
    %655 = vector.load %arg5[%c46, %c0_352, %c0_353] : memref<49x4x1xf32, #tpu.memory_space<vmem>>, vector<1x4x1xf32>
    %656 = vector.shape_cast %655 : vector<1x4x1xf32> to vector<4x1xf32>
    %657 = vector.broadcast %656 : vector<4x1xf32> to vector<4x256xf32>
    %658 = arith.mulf %654, %657 : vector<4x256xf32>
    %659 = arith.addf %648, %658 : vector<4x256xf32>
    %c0_354 = arith.constant 0 : index
    %c101 = arith.constant 101 : index
    %660 = vector.load %arg9[%c0_354, %c101] : memref<4x358xf32, #tpu.memory_space<vmem>>, vector<4x256xf32>
    %c5_355 = arith.constant 5 : index
    %c0_356 = arith.constant 0 : index
    %661 = vector.load %arg2[%c5_355, %c0_356] : memref<7x256xf32, #tpu.memory_space<vmem>>, vector<1x256xf32>
    %662 = vector.shape_cast %661 : vector<1x256xf32> to vector<256xf32>
    %663 = vector.shape_cast %662 : vector<256xf32> to vector<1x256xf32>
    %664 = vector.broadcast %663 : vector<1x256xf32> to vector<4x256xf32>
    %665 = arith.mulf %660, %664 : vector<4x256xf32>
    %c47 = arith.constant 47 : index
    %c0_357 = arith.constant 0 : index
    %c0_358 = arith.constant 0 : index
    %666 = vector.load %arg5[%c47, %c0_357, %c0_358] : memref<49x4x1xf32, #tpu.memory_space<vmem>>, vector<1x4x1xf32>
    %667 = vector.shape_cast %666 : vector<1x4x1xf32> to vector<4x1xf32>
    %668 = vector.broadcast %667 : vector<4x1xf32> to vector<4x256xf32>
    %669 = arith.mulf %665, %668 : vector<4x256xf32>
    %670 = arith.addf %659, %669 : vector<4x256xf32>
    %c0_359 = arith.constant 0 : index
    %c102 = arith.constant 102 : index
    %671 = vector.load %arg9[%c0_359, %c102] : memref<4x358xf32, #tpu.memory_space<vmem>>, vector<4x256xf32>
    %c6_360 = arith.constant 6 : index
    %c0_361 = arith.constant 0 : index
    %672 = vector.load %arg2[%c6_360, %c0_361] : memref<7x256xf32, #tpu.memory_space<vmem>>, vector<1x256xf32>
    %673 = vector.shape_cast %672 : vector<1x256xf32> to vector<256xf32>
    %674 = vector.shape_cast %673 : vector<256xf32> to vector<1x256xf32>
    %675 = vector.broadcast %674 : vector<1x256xf32> to vector<4x256xf32>
    %676 = arith.mulf %671, %675 : vector<4x256xf32>
    %c48_362 = arith.constant 48 : index
    %c0_363 = arith.constant 0 : index
    %c0_364 = arith.constant 0 : index
    %677 = vector.load %arg5[%c48_362, %c0_363, %c0_364] : memref<49x4x1xf32, #tpu.memory_space<vmem>>, vector<1x4x1xf32>
    %678 = vector.shape_cast %677 : vector<1x4x1xf32> to vector<4x1xf32>
    %679 = vector.broadcast %678 : vector<4x1xf32> to vector<4x256xf32>
    %680 = arith.mulf %676, %679 : vector<4x256xf32>
    %681 = arith.addf %670, %680 : vector<4x256xf32>
    %c0_365 = arith.constant 0 : index
    %c0_366 = arith.constant 0 : index
    %682 = vector.load %arg10[%c0_365, %c0_366] : memref<12x256xf32, #tpu.memory_space<vmem>>, vector<4x256xf32>
    tpu.vector_store %arg10[%c0_365, %c0_366], %485 {strides = array<i32>} : memref<12x256xf32, #tpu.memory_space<vmem>>, vector<4x256xf32>,
    %c4_367 = arith.constant 4 : index
    %c0_368 = arith.constant 0 : index
    %683 = vector.load %arg10[%c4_367, %c0_368] : memref<12x256xf32, #tpu.memory_space<vmem>>, vector<4x256xf32>
    tpu.vector_store %arg10[%c4_367, %c0_368], %598 {strides = array<i32>} : memref<12x256xf32, #tpu.memory_space<vmem>>, vector<4x256xf32>,
    %c8_369 = arith.constant 8 : index
    %c0_370 = arith.constant 0 : index
    %684 = vector.load %arg10[%c8_369, %c0_370] : memref<12x256xf32, #tpu.memory_space<vmem>>, vector<4x256xf32>
    tpu.vector_store %arg10[%c8_369, %c0_370], %681 {strides = array<i32>} : memref<12x256xf32, #tpu.memory_space<vmem>>, vector<4x256xf32>,
    %c0_371 = arith.constant 0 : index
    %c0_372 = arith.constant 0 : index
    %685 = vector.load %arg6[%c0_371, %c0_372] : memref<4x12xf32, #tpu.memory_space<vmem>>, vector<4x12xf32>
    %c0_373 = arith.constant 0 : index
    %c0_374 = arith.constant 0 : index
    %686 = vector.load %arg10[%c0_373, %c0_374] : memref<12x256xf32, #tpu.memory_space<vmem>>, vector<12x256xf32>
    %cst_375 = arith.constant dense<0.000000e+00> : vector<4x256xf32>
    %687 = tpu.matmul %685, %686, %cst_375 {dimension_numbers = #tpu.dot_dimension_numbers<[1], [0], [0], [1], [0, 0, 1, 1], [], []>} : vector<4x12xf32>, vector<12x256xf32>, vector<4x256xf32> -> vector<4x256xf32>
    %c0_376 = arith.constant 0 : index
    %c0_377 = arith.constant 0 : index
    %688 = vector.load %arg7[%c0_376, %c0_377] : memref<4x1xf32, #tpu.memory_space<vmem>>, vector<4x1xf32>
    %689 = vector.broadcast %688 : vector<4x1xf32> to vector<4x256xf32>
    %690 = arith.addf %687, %689 : vector<4x256xf32>
    %c0_378 = arith.constant 0 : index
    %c0_379 = arith.constant 0 : index
    %c0_380 = arith.constant 0 : index
    %691 = vector.load %arg8[%c0_378, %c0_379, %c0_380] : memref<1x4x256xf32, #tpu.memory_space<vmem>>, vector<1x4x256xf32>
    %692 = vector.shape_cast %691 : vector<1x4x256xf32> to vector<4x256xf32>
    %693 = vector.shape_cast %690 : vector<4x256xf32> to vector<1x4x256xf32>
    tpu.vector_store %arg8[%c0_378, %c0_379, %c0_380], %693 {strides = array<i32>} : memref<1x4x256xf32, #tpu.memory_space<vmem>>, vector<1x4x256xf32>,
    return
  }
  func.func @transform_0(%arg0: i32) -> (i32, i32, i32) {
    %c0_i32 = arith.constant 0 : i32
    %c0_i32_0 = arith.constant 0 : i32
    %c0_i32_1 = arith.constant 0 : i32
    return %arg0, %c0_i32, %c0_i32_0 : i32, i32, i32
  }
  func.func @transform_1(%arg0: i32) -> (i32, i32) {
    %c0_i32 = arith.constant 0 : i32
    %c0_i32_0 = arith.constant 0 : i32
    %c0_i32_1 = arith.constant 0 : i32
    return %c0_i32, %c0_i32_0 : i32, i32
  }
  func.func @transform_2(%arg0: i32) -> (i32, i32, i32) {
    %c0_i32 = arith.constant 0 : i32
    %c0_i32_0 = arith.constant 0 : i32
    %c0_i32_1 = arith.constant 0 : i32
    %c0_i32_2 = arith.constant 0 : i32
    return %c0_i32, %c0_i32_0, %c0_i32_1 : i32, i32, i32
  }
  func.func @transform_3(%arg0: i32) -> (i32, i32, i32) {
    %c0_i32 = arith.constant 0 : i32
    %c0_i32_0 = arith.constant 0 : i32
    %c0_i32_1 = arith.constant 0 : i32
    %c0_i32_2 = arith.constant 0 : i32
    return %c0_i32, %c0_i32_0, %c0_i32_1 : i32, i32, i32
  }
  func.func @transform_4(%arg0: i32) -> (i32, i32, i32) {
    %c0_i32 = arith.constant 0 : i32
    %c0_i32_0 = arith.constant 0 : i32
    %c0_i32_1 = arith.constant 0 : i32
    %c0_i32_2 = arith.constant 0 : i32
    return %c0_i32, %c0_i32_0, %c0_i32_1 : i32, i32, i32
  }
  func.func @transform_5(%arg0: i32) -> (i32, i32) {
    %c0_i32 = arith.constant 0 : i32
    %c0_i32_0 = arith.constant 0 : i32
    %c0_i32_1 = arith.constant 0 : i32
    return %c0_i32, %c0_i32_0 : i32, i32
  }
  func.func @transform_6(%arg0: i32) -> (i32, i32) {
    %c0_i32 = arith.constant 0 : i32
    %c0_i32_0 = arith.constant 0 : i32
    %c0_i32_1 = arith.constant 0 : i32
    return %c0_i32, %c0_i32_0 : i32, i32
  }
  func.func @transform_7(%arg0: i32) -> (i32, i32, i32) {
    %c0_i32 = arith.constant 0 : i32
    %c0_i32_0 = arith.constant 0 : i32
    %c0_i32_1 = arith.constant 0 : i32
    return %arg0, %c0_i32, %c0_i32_0 : i32, i32, i32
  }
}

</mosaic_0001>

<bundles_post_ra>
// kernel: tpu_custom_call.1
= control target key start
LH: loop header
LB: loop body
LE: loop exit
PB: predicated region body
PF: predicated region fallthrough
CT: control target
= control target key end

     0   :  { %12 = vsyncpa [#allocation5], 0  ;;  %s4864_s0 = inlined_call_operand.vmem [shape: f32[2,4,256], index: 0, kind: input, shape index: {}]   ;;  %s4865_s1 = inlined_call_operand.vmem [shape: f32[7,256], index: 1, kind: input, shape index: {}]   ;;  %s4866_s2 = inlined_call_operand.vmem [shape: f32[9,4,1], index: 2, kind: input, shape index: {}]   ;;  %s4867_s3 = inlined_call_operand.vmem [shape: f32[25,4,1], index: 3, kind: input, shape index: {}]   ;;  %s4868_s4 = inlined_call_operand.vmem [shape: f32[49,4,1], index: 4, kind: input, shape index: {}]   ;;  %s4869_s5 = inlined_call_operand.vmem [shape: f32[4,12], index: 5, kind: input, shape index: {}]   ;;  %s4870_s6 = inlined_call_operand.vmem [shape: f32[4,1], index: 6, kind: input, shape index: {}]   ;;  %s4871_s7 = inlined_call_operand.hbm [shape: f32[2,4,256], index: 7, kind: output, shape index: {}]  }
   0x1   :  { %14 = vsyncpa [#allocation5 + $0x1], 0  ;;  %s3479_s24 = smov 0   ;;  %s3481_s25 = smov 0  }
   0x2   :  { %s3483_s26 = smov 0   ;;  %s3485_s27 = smov 0  }
   0x3 LB: > { %s3500_s28 = sadd.s32 4294967295, %s3349_s27   ;;  %s3050_s29 = sadd.s32 4294967294, %s3349_s27   ;;  %s3349_s27 = sphi %s3485_s27, %s5040_s27   ;;  %s3345_s26 = sphi %s3483_s26, %s5039_s26   ;;  %s3341_s25 = sphi %s3481_s25, %s5038_s25   ;;  %s3337_s24 = sphi %s3479_s24, %s5037_s24  }
   0x4   : > { %s3504_s30 = sadd.s32 1, %s3349_s27   ;;  %s179_s8 = sadd.s32 1, %s3345_s26 }
   0x5   : > { %s176_s9 = ssub.s32 %s3349_s27, %s3504_s30  ;;  %p189_p0 = scmp.ne.s32.totalorder %s3345_s26, %s3341_s25 }
   0x6   : > { %p177_p1 = scmp.eq.s32.totalorder %s176_s9, 0  ;;  %p190_p2 = scmp.eq.s32.totalorder %s3500_s28, 1 }
   0x7   : > { %p195_p3 = scmp.ne.s32.totalorder %s3341_s25, %s3337_s24  ;;  %p196_p4 = scmp.eq.s32.totalorder %s3050_s29, 1 }
   0x8   : > { %s3515_s10 = scalar_select %p177_p1, %s3345_s26, %s179_s8  }
   0x9   : > { %p3517_p5 = por %p190_p2, %p189_p0  ;;  %p3521_p6 = por %p196_p4, %p195_p3 }
   0xa   : > { %p3053_p7 = scmp.ge.s32.totalorder %s3349_s27, 1  ;;  %p240_p8 = scmp.lt.s32.totalorder %s3349_s27, 3 }
   0xc   : > { %p241_p9 = pnand %p3053_p7, %p240_p8 }
   0xe   : > { %244 = sbr.rel (%p241_p9) target bundleno = 3552 (0xde0), region = 48 }
  0x13   : > { %v3060_v0 = vld [vmem:[%s4868_s4 + $0x8] sm:$0xf]  ;;  %p272_p10 = scmp.lt.s32.totalorder %s3500_s28, 1  ;;  %v3351_v1 = vmov 0   ;;  %vm301_vm0 = vcmask 1043456   ;;  %s3352_s29 = smov 1  }
  0x14   : > { %3282 = vset.pattern.permute.xlu2 %v3351_v1  ;;  %v3057_v2 = vld [vmem:[%s4865_s1 + $0x1] ss:$8 sm:$0x3]  ;;  %3281 = vset.pattern.permute.xlu1 %v3351_v1  ;;  %v3062_v6 = vld [vmem:[%s4865_s1 + $0x4] ss:$8 sm:$0x3] }
  0x15   : > { %381 = vperm.xlu2 %3282, %v3060_v0   ;;  %v322_v3 = vperm.slane %v3057_v2, 0  ;;  %v323_v4 = vperm.slane %v3057_v2, 1  ;;  %s273_s17 = scalar_select %p272_p10, %s3500_s28, 1  ;;  %3280 = vset.pattern.permute.xlu0 %v3351_v1  ;;  %v3061_v9 = vld [vmem:[%s4868_s4 + $0xc] sm:$0xf]  ;;  %v433_v10 = vperm.slane %v3062_v6, 1 }
  0x16   : > { %s3353_s8 = smov 51   ;;  %v3059_v11 = vld [vmem:[%s4865_s1 + $0x2] ss:$8 sm:$0x3]  ;;  %v432_v12 = vperm.slane %v3062_v6, 0  ;;  %s3354_s22 = smov 4  }
  0x17   : > { %v324_v5 = vrot.slane %v323_v4, 4  ;;  %s3151_s18 = sshll.u32 %s273_s17, 3  ;;  %v434_v13 = vrot.slane %v433_v10, 4  ;;  %v3058_v14 = vld [vmem:[%s4868_s4 + $0x4] sm:$0xf]  ;;  %v365_v16 = vperm.slane %v3059_v11, 1 }
  0x18   : > { %s276_s23 = scalar_lea.vmem %s4864_s0, %s3151_s18  ;;  %v305_v15 = vld [vmem:[%s4868_s4] sm:$0xf]  ;;  %v364_v18 = vperm.slane %v3059_v11, 0  ;;  %v3064_v20 = vld [vmem:[%s4865_s1 + $0x5] ss:$8 sm:$0x3] }
  0x19   : > { %v3542_v7 = vsel %vm301_vm0, %v322_v3, %v324_v5  ;;  %v280_v8 = vld [vmem:[%s276_s23] sm:$0xff]  ;;  %v3558_v17 = vsel %vm301_vm0, %v432_v12, %v434_v13  ;;  %v366_v19 = vrot.slane %v365_v16, 4  ;;  %v3063_v22 = vld [vmem:[%s4868_s4 + $0x10] sm:$0xf]  ;;  %v475_v23 = vperm.slane %v3064_v20, 1  ;;  %s3355_s13 = smov 2  }
  0x1a   : > { %4933 = vst [vmem:[#allocation7_spill] sm:$0xff] %v3542_v7  ;;  %326 = vrot.lane.b32.xlu1 %v3542_v7, %s3352_s29  ;;  %282 = vrot.lane.b32.xlu0 %v280_v8, %s3353_s8  ;;  %v296_v24 = vld [vmem:[%s4865_s1] ss:$8 sm:$0x3]  ;;  %v3067_v25 = vld [vmem:[%s4868_s4 + $0x18] sm:$0xf] }
  0x1b   : > { %4934 = vst [vmem:[#allocation8_spill] sm:$0xff] %v3558_v17  ;;  %v3565_v21 = vsel %vm301_vm0, %v364_v18, %v366_v19  ;;  %v299_v26 = vperm.slane %v296_v24, 1  ;;  %v474_v27 = vperm.slane %v3064_v20, 0  ;;  %v476_v28 = vrot.slane %v475_v23, 4  ;;  %v3065_v32 = vld [vmem:[%s4868_s4 + $0x14] sm:$0xf] }
  0x1c   : > { %4935 = vst [vmem:[#allocation9_spill] sm:$0xff] %v3565_v21  ;;  %v3066_v29 = vld [vmem:[%s4865_s1 + $0x6] ss:$8 sm:$0x3]  ;;  %v298_v30 = vperm.slane %v296_v24, 0  ;;  %s3356_s20 = smov 5  }
  0x1d   : > { %407 = vperm.xlu2 %3282, %v3061_v9   ;;  %v300_v31 = vrot.slane %v299_v26, 4  ;;  %v3584_v33 = vsel %vm301_vm0, %v474_v27, %v476_v28  ;;  %v517_v34 = vperm.slane %v3066_v29, 1  ;;  %v516_v36 = vperm.slane %v3066_v29, 0  ;;  %s3357_s21 = smov 16   ;;  %v3068_v39 = vld [vmem:[%s4868_s4 + $0x1c] sm:$0xf] }
  0x1e   : > { %4936 = vst [vmem:[#allocation10_spill] sm:$0xff] %v3584_v33  ;;  %s3358_s29 = smov 6   ;;  %s3359_s8 = smov 18   ;;  %v3069_v40 = vld [vmem:[%s4868_s4 + $0x20] sm:$0xf]  ;;  %vm278_vm1 = vcmask 830464  }
  0x1f   : > { %v3588_v35 = vsel %vm301_vm0, %v298_v30, %v300_v31  ;;  %v518_v37 = vrot.slane %v517_v34, 4  ;;  %s3360_s14 = smov 17   ;;  %v625_v41 = vld [vmem:[%s4867_s3] sm:$0xf]  ;;  %v3070_v42 = vld [vmem:[%s4868_s4 + $0x24] sm:$0xf] }
  0x20   : > { %v3071_v43 = vld [vmem:[%s4867_s3 + $0x4] sm:$0xf]  ;;  %v3074_v44 = vld [vmem:[%s4868_s4 + $0x2c] sm:$0xf]  ;;  %v3072_v45 = vld [vmem:[%s4868_s4 + $0x28] sm:$0xf] }
  0x21   : > { %v3592_v38 = vsel %vm301_vm0, %v516_v36, %v518_v37  ;;  %v3075_v46 = vld [vmem:[%s4867_s3 + $0xc] sm:$0xf]  ;;  %v3073_v47 = vld [vmem:[%s4867_s3 + $0x8] sm:$0xf]  ;;  %s3361_s15 = smov 20   ;;  %v3362_v48 = vmov 0.0  }
  0x22   : > { %339 = vperm.xlu1 %3281, %v3058_v14   ;;  %308 = vperm.xlu0 %3280, %v305_v15   ;;  %4937 = vst [vmem:[#allocation11_spill] sm:$0xff] %v3592_v38  ;;  %vm289_vm2 = vcmask 1043864   ;;  %vm290_vm3 = vcmask 1047556   ;;  %v3363_v50 = vmov 839922192   ;;  %vm285_vm4 = vcmask 416768  }
  0x23   : > { %277 = vst [vmem:[#allocation2] sm:$0xff] %v3362_v48  ;;  %v311_v51 = vunpack.c.l.s4 %v3363_v50  ;;  %vm293_vm5 = vcmask 412672   ;;  %vm291_vm6 = vmor %vm290_vm3, %vm289_vm2  ;;  %s3364_s16 = smov 125   ;;  %vm481_vm7 = vcmask 39936   ;;  %s3365_s17 = smov 123   ;;  %vm593_vm8 = vcmask 138240  }
  0x24   : > { %279 = vst.msk [vmem:[#allocation2 + $0x8] sm:$0xf] %vm278_vm1, %v3362_v48  ;;  %s4922_s18 = smov 111   ;;  %s3367_s19 = smov 109   ;;  %vm371_vm9 = vcmask 15360   ;;  %vm439_vm10 = vcmask 31744  }
  0x25   : > { %436 = vrot.lane.b32.xlu2 %v3558_v17, %s3354_s22  ;;  %v3629_v55 = vunpack.c.0.s8 %v311_v51  ;;  %s3370_s22 = smov 108   ;;  %vm523_vm11 = vcmask 48128   ;;  %s3371_s23 = smov 124   ;;  %vm558_vm12 = vcmask 130048   ;;  %vm642_vm13 = vcmask 146432  }
  0x26   : > { %s4882_s9 = smov 110   ;;  %vm329_vm14 = vcmask 7168   ;;  %vm757_vm15 = vcmask 162816   ;;  %vm819_vm1 = vcmask 171008   ;;  %vm881_vm2 = vcmask 179200  }
  0x27   : > { %vm4920_vm3 = vcmask 261120  }
  0x2a   : > { %368 = vrot.lane.b32.xlu1 %v3565_v21, %s3355_s13  ;;  %449 = vperm.xlu0 %3280, %v3063_v22   ;;  %s3375_s13 = smov 21  }
  0x2d   : > { %533 = vperm.xlu2 %3282, %v3067_v25  }
  0x32   : > { %491 = vperm.xlu1 %3281, %v3065_v32   ;;  %478 = vrot.lane.b32.xlu0 %v3584_v33, %s3356_s20  ;;  %s3368_s20 = smov 126  }
  0x35   : > { %555 = vrot.lane.b32.xlu2 %v3588_v35, %s3357_s21  ;;  %s3369_s21 = smov 127  }
  0x3a   : > { %520 = vrot.lane.b32.xlu1 %v3592_v38, %s3358_s29  ;;  %568 = vperm.xlu0 %3280, %v3068_v39   ;;  %s3372_s29 = smov 122  }
  0x3d   : > { %639 = vrot.lane.b32.xlu2 %v3565_v21, %s3359_s8  ;;  %s4878_s8 = smov 112  }
  0x42   : > { %603 = vperm.xlu1 %3281, %v3069_v40   ;;  %590 = vrot.lane.b32.xlu0 %v3542_v7, %s3360_s14  ;;  %s4902_s14 = smov 96  }
  0x4a   : > { %628 = vperm.xlu1 %3281, %v625_v41   ;;  %652 = vperm.xlu0 %3280, %v3070_v42  }
  0x52   : > { %678 = vperm.xlu0 %3280, %v3071_v43   ;;  %767 = vperm.xlu1 %3281, %v3074_v44  }
  0x5a   : > { %705 = vperm.xlu0 %3280, %v3072_v45   ;;  %793 = vperm.xlu1 %3281, %v3075_v46  }
  0x62   : > { %731 = vperm.xlu0 %3280, %v3073_v47  }
  0x6a   : > { %754 = vrot.lane.b32.xlu0 %v3558_v17, %s3361_s15  ;;  %s4874_s15 = smov 95  }
  0x6f   : > { %v3625_v49 = vpop.permute.xlu2 %381 }
  0x70   : > { %v386_v46 = vperm.slane %v3625_v49, %v3629_v55 }
  0x77   : > { %v408_v57 = vpop.permute.xlu2 %407 }
  0x78   : > { %v412_v58 = vperm.slane %v408_v57, %v3629_v55 }
  0x7f   : > { %v437_v32 = vpop.permute.xlu2 %436 }
  0x87   : > { %v534_v43 = vpop.permute.xlu2 %533 }
  0x8c   : > { %v3627_v52 = vpop.permute.xlu1 %326  ;;  %v283_v53 = vpop.permute.xlu0 %282 }
  0x8d   : > { %v284_v54 = vrot.slane %v283_v53, 4  ;;  %v328_v37 = vrot.slane %v3627_v52, 4 }
  0x8f   : > { %v286_v56 = vsel %vm285_vm4, %v284_v54, %v283_v53  ;;  %294 = vst.msk [vmem:[#allocation2 + $0x8] sm:$0xf] %vm293_vm5, %v284_v54  ;;  %vm951_vm4 = vcmask 269312   ;;  %vm1013_vm5 = vcmask 277504  }
  0x90   : > { %292 = vst.msk [vmem:[#allocation2] sm:$0xff] %vm291_vm6, %v286_v56  ;;  %vm1169_vm6 = vcmask 293888  }
  0x94   : > { %v340_v59 = vpop.permute.xlu1 %339  ;;  %v3632_v60 = vpop.permute.xlu0 %308 }
  0x95   : > { %v3690_v45 = vperm.slane %v340_v59, %v3629_v55 }
  0x96   : > { %v3634_v61 = vld [vmem:[#allocation2 + $0x8] sm:$0xf] }
  0x97   : > { %v3636_v62 = vld [vmem:[#allocation2] sm:$0xff]  ;;  %v415_v63 = vmul.f32 %v412_v58, %v3634_v61  ;;  %v334_v44 = vmul.f32 %v328_v37, %v3634_v61 }
  0x98   : > { %v414_v0 = vmul.f32 %v412_v58, %v3636_v62  ;;  %v438_v58 = vrot.slane %v437_v32, 4 }
  0x99   : > { %420 = vrot.lane.b32.xlu1 %v415_v63, %s3364_s16  ;;  %v347_v51 = vmul.f32 %v3690_v45, %v334_v44 }
  0x9a   : > { %418 = vrot.lane.b32.xlu0 %v414_v0, %s3364_s16  ;;  %v538_v0 = vperm.slane %v534_v43, %v3629_v55 }
  0x9c   : > { %v3642_v1 = vpop.permute.xlu1 %368  ;;  %v3644_v2 = vpop.permute.xlu0 %449 }
  0x9d   : > { %v370_v40 = vrot.slane %v3642_v1, 4 }
  0x9f   : > { %v376_v47 = vmul.f32 %v370_v40, %v3634_v61  ;;  %v372_v63 = vsel %vm371_vm9, %v370_v40, %v3642_v1  ;;  %vm4921_vm9 = vcmask 392192  }
  0xa1   : > { %v389_v49 = vmul.f32 %v386_v46, %v376_v47 }
  0xa4   : > { %v492_v3 = vpop.permute.xlu1 %491  ;;  %v479_v4 = vpop.permute.xlu0 %478 }
  0xa5   : > { %v496_v5 = vperm.slane %v492_v3, %v3629_v55  ;;  %v480_v6 = vrot.slane %v479_v4, 4  ;;  %v454_v3 = vperm.slane %v3644_v2, %v3629_v55 }
  0xa7   : > { %v482_v8 = vsel %vm481_vm7, %v480_v6, %v479_v4  ;;  %v486_v9 = vmul.f32 %v480_v6, %v3634_v61  ;;  %v444_v6 = vmul.f32 %v438_v58, %v3634_v61  ;;  %vm1258_vm7 = vcmask 302080  }
  0xa8   : > { %v485_v10 = vmul.f32 %v482_v8, %v3636_v62  ;;  %v375_v8 = vmul.f32 %v372_v63, %v3636_v62 }
  0xa9   : > { %v499_v11 = vmul.f32 %v496_v5, %v486_v9  ;;  %v457_v9 = vmul.f32 %v454_v3, %v444_v6 }
  0xaa   : > { %v3649_v12 = vmul.f32 %v496_v5, %v485_v10  ;;  %v556_v5 = vpop.permute.xlu2 %555  ;;  %v388_v2 = vmul.f32 %v386_v46, %v375_v8 }
  0xab   : > { %504 = vrot.lane.b32.xlu0 %v499_v11, %s3365_s17  ;;  %v557_v1 = vrot.slane %v556_v5, 4  ;;  %v440_v11 = vsel %vm439_vm10, %v438_v58, %v437_v32  ;;  %v3076_v58 = vld [vmem:[%s4868_s4 + $0x30] sm:$0xf]  ;;  %vm1390_vm10 = vcmask 400384  }
  0xac   : > { %v3652_v13 = vpop.permute.xlu1 %520  ;;  %v3654_v14 = vpop.permute.xlu0 %568 }
  0xad   : > { %v522_v54 = vrot.slane %v3652_v13, 4 }
  0xaf   : > { %v528_v4 = vmul.f32 %v522_v54, %v3634_v61 }
  0xb1   : > { %v541_v10 = vmul.f32 %v538_v0, %v528_v4 }
  0xb4   : > { %v604_v15 = vpop.permute.xlu1 %603  ;;  %v591_v16 = vpop.permute.xlu0 %590 }
  0xb5   : > { %v608_v18 = vperm.slane %v604_v15, %v3629_v55  ;;  %v592_v19 = vrot.slane %v591_v16, 4  ;;  %v524_v15 = vsel %vm523_vm11, %v522_v54, %v3652_v13  ;;  %vm1452_vm11 = vcmask 408576  }
  0xb7   : > { %v594_v20 = vsel %vm593_vm8, %v592_v19, %v591_v16  ;;  %v3658_v22 = vmul.f32 %v592_v19, %v3634_v61  ;;  %v573_v16 = vperm.slane %v3654_v14, %v3629_v55  ;;  %v563_v19 = vmul.f32 %v557_v1, %v3634_v61 }
  0xb8   : > { %v3661_v23 = vmul.f32 %v594_v20, %v3636_v62  ;;  %v527_v20 = vmul.f32 %v524_v15, %v3636_v62  ;;  %v559_v14 = vsel %vm558_vm12, %v557_v1, %v556_v5  ;;  %vm1320_vm8 = vcmask 310272  }
  0xb9   : > { %v611_v24 = vmul.f32 %v608_v18, %v3658_v22  ;;  %vm1621_vm12 = vcmask 424960  }
  0xba   : > { %v3665_v25 = vmul.f32 %v608_v18, %v3661_v23  ;;  %v443_v18 = vmul.f32 %v440_v11, %v3636_v62  ;;  %v540_v13 = vmul.f32 %v538_v0, %v527_v20 }
  0xbb   : > { %616 = vrot.lane.b32.xlu0 %v611_v24, %s4922_s18  ;;  %v640_v24 = vpop.permute.xlu2 %639 }
  0xbc   : > { %v3668_v26 = vpop.permute.xlu0 %652  ;;  %v3679_v39 = vpop.permute.xlu1 %628 }
  0xc4   : > { %v3670_v27 = vpop.permute.xlu0 %678  ;;  %v768_v53 = vpop.permute.xlu1 %767 }
  0xc5   : > { %v3701_v56 = vperm.slane %v768_v53, %v3629_v55  ;;  %v330_v53 = vsel %vm329_vm14, %v328_v37, %v3627_v52  ;;  %vm399_vm14 = vcmask 1031168  }
  0xc6   : > { %v333_v54 = vmul.f32 %v330_v53, %v3636_v62 }
  0xcc   : > { %v706_v28 = vpop.permute.xlu0 %705  ;;  %v794_v32 = vpop.permute.xlu1 %793 }
  0xcd   : > { %v710_v29 = vperm.slane %v706_v28, %v3629_v55  ;;  %v456_v28 = vmul.f32 %v454_v3, %v443_v18 }
  0xcf   : > { %v712_v30 = vmul.f32 %v710_v29, %v3636_v62  ;;  %v713_v31 = vmul.f32 %v710_v29, %v3634_v61  ;;  %v576_v29 = vmul.f32 %v573_v16, %v563_v19 }
  0xd1   : > { %718 = vrot.lane.b32.xlu2 %v713_v31, %s3367_s19  ;;  %716 = vrot.lane.b32.xlu1 %v712_v30, %s3367_s19  ;;  %v641_v30 = vrot.slane %v640_v24, 4  ;;  %v657_v31 = vperm.slane %v3668_v26, %v3629_v55  ;;  %v683_v26 = vperm.slane %v3670_v27, %v3629_v55 }
  0xd3   : > { %v643_v44 = vsel %vm642_vm13, %v641_v30, %v640_v24  ;;  %vm357_vm13 = vcmask 1039360  }
  0xd4   : > { %v732_v34 = vpop.permute.xlu0 %731  ;;  %v646_v46 = vmul.f32 %v643_v44, %v3636_v62 }
  0xd5   : > { %v736_v36 = vperm.slane %v732_v34, %v3629_v55  ;;  %v562_v34 = vmul.f32 %v559_v14, %v3636_v62 }
  0xd6   : > { %v659_v47 = vmul.f32 %v657_v31, %v646_v46  ;;  %v685_v27 = vmul.f32 %v683_v26, %v646_v46 }
  0xd7   : > { %v738_v41 = vmul.f32 %v736_v36, %v3636_v62  ;;  %v739_v42 = vmul.f32 %v736_v36, %v3634_v61  ;;  %v647_v36 = vmul.f32 %v641_v30, %v3634_v61  ;;  %v575_v40 = vmul.f32 %v573_v16, %v562_v34 }
  0xd9   : > { %744 = vrot.lane.b32.xlu2 %v739_v42, %s3368_s20  ;;  %742 = vrot.lane.b32.xlu1 %v738_v41, %s3368_s20  ;;  %v660_v41 = vmul.f32 %v657_v31, %v647_v36  ;;  %v798_v42 = vperm.slane %v794_v32, %v3629_v55 }
  0xdc   : > { %v3695_v48 = vpop.permute.xlu0 %754 }
  0xdd   : > { %v756_v50 = vrot.slane %v3695_v48, 4 }
  0xdf   : > { %v762_v57 = vmul.f32 %v756_v50, %v3634_v61  ;;  %v758_v52 = vsel %vm757_vm15, %v756_v50, %v3695_v48  ;;  %vm425_vm15 = vcmask 1022976  }
  0xe0   : > { %v761_v37 = vmul.f32 %v758_v52, %v3636_v62 }
  0xe1   : > { %352 = vrot.lane.b32.xlu2 %v347_v51, %s3369_s21  ;;  %394 = vrot.lane.b32.xlu1 %v389_v49, %s3368_s20  ;;  %v775_v59 = vmul.f32 %v3701_v56, %v762_v57  ;;  %v801_v43 = vmul.f32 %v798_v42, %v762_v57  ;;  %v686_v51 = vmul.f32 %v683_v26, %v647_v36 }
  0xe2   : > { %v346_v57 = vmul.f32 %v3690_v45, %v333_v54  ;;  %v774_v45 = vmul.f32 %v3701_v56, %v761_v37  ;;  %v800_v49 = vmul.f32 %v798_v42, %v761_v37  ;;  %v3078_v42 = vld [vmem:[%s4868_s4 + $0x34] sm:$0xf] }
  0xe3   : > { %780 = vrot.lane.b32.xlu0 %v775_v59, %s3370_s22 }
  0xe9   : > { %462 = vrot.lane.b32.xlu2 %v457_v9, %s3371_s23  ;;  %546 = vrot.lane.b32.xlu1 %v541_v10, %s3372_s29 }
  0xeb   : > { %392 = vrot.lane.b32.xlu0 %v388_v2, %s3368_s20 }
  0xf1   : > { %581 = vrot.lane.b32.xlu2 %v576_v29, %s4878_s8  ;;  %460 = vrot.lane.b32.xlu1 %v456_v28, %s3371_s23 }
  0xf3   : > { %544 = vrot.lane.b32.xlu0 %v540_v13, %s3372_s29  ;;  %s4974_s29 = smov 94  }
  0xf9   : > { %665 = vrot.lane.b32.xlu2 %v660_v41, %s4882_s9  ;;  %579 = vrot.lane.b32.xlu1 %v575_v40, %s4878_s8 }
  0xfb   : > { %806 = vrot.lane.b32.xlu0 %v801_v43, %s3364_s16 }
 0x101   : > { %691 = vrot.lane.b32.xlu2 %v686_v51, %s3369_s21  ;;  %663 = vrot.lane.b32.xlu1 %v659_v47, %s4882_s9 }
 0x109   : > { %350 = vrot.lane.b32.xlu2 %v346_v57, %s3369_s21  ;;  %689 = vrot.lane.b32.xlu1 %v685_v27, %s3369_s21 }
 0x10b   : > { %v3769_v50 = vpop.permute.xlu1 %420 }
 0x10c   : > { %v3819_v43 = vpop.permute.xlu0 %418 }
 0x111   : > { %502 = vrot.lane.b32.xlu2 %v3649_v12, %s3365_s17  ;;  %816 = vrot.lane.b32.xlu1 %v3584_v33, %s3375_s13  ;;  %s3376_s13 = smov 22   ;;  %s4872_s17 = smov 32  }
 0x119   : > { %614 = vrot.lane.b32.xlu2 %v3665_v25, %s4922_s18  ;;  %v3077_v25 = vld [vmem:[%s4867_s3 + $0x10] sm:$0xf] }
 0x11d   : > { %v3821_v44 = vpop.permute.xlu0 %504 }
 0x121   : > { %778 = vrot.lane.b32.xlu2 %v774_v45, %s3370_s22 }
 0x129   : > { %804 = vrot.lane.b32.xlu2 %v800_v49, %s3364_s16  ;;  %s3377_s16 = smov 107  }
 0x12b   : > { %v3759_v12 = vpop.permute.xlu2 %718 }
 0x12c   : > { %4938 = vst [vmem:[#allocation12_spill] sm:$0xff] %v3759_v12 }
 0x12d   : > { %v3823_v26 = vpop.permute.xlu0 %616 }
 0x12e   : > { %4947 = vst [vmem:[#allocation21_spill] sm:$0xff] %v3823_v26 }
 0x131   : > { %829 = vperm.xlu2 %3282, %v3076_v58  }
 0x133   : > { %v3764_v48 = vpop.permute.xlu2 %744 }
 0x139   : > { %855 = vperm.xlu2 %3282, %v3077_v25  }
 0x13b   : > { %v3771_v56 = vpop.permute.xlu2 %352 }
 0x141   : > { %878 = vrot.lane.b32.xlu2 %v3592_v38, %s3376_s13  ;;  %s4978_s13 = smov 110  }
 0x143   : > { %v3774_v59 = vpop.permute.xlu1 %716  ;;  %v3776_v63 = vpop.permute.xlu2 %462 }
 0x144   : > { %4939 = vst [vmem:[#allocation13_spill] sm:$0xff] %v3774_v59 }
 0x14b   : > { %v3778_v0 = vpop.permute.xlu2 %581  ;;  %v3780_v3 = vpop.permute.xlu1 %742 }
 0x14c   : > { %4940 = vst [vmem:[#allocation14_spill] sm:$0xff] %v3778_v0 }
 0x153   : > { %v3782_v4 = vpop.permute.xlu2 %665  ;;  %v3784_v5 = vpop.permute.xlu1 %394 }
 0x154   : > { %4941 = vst [vmem:[#allocation15_spill] sm:$0xff] %v3782_v4 }
 0x155   : > { %v3825_v46 = vpop.permute.xlu0 %780 }
 0x156   : > { %4948 = vst [vmem:[#allocation22_spill] sm:$0xff] %v3825_v46 }
 0x15b   : > { %v3786_v6 = vpop.permute.xlu2 %691  ;;  %v3788_v8 = vpop.permute.xlu1 %546 }
 0x15c   : > { %4942 = vst [vmem:[#allocation16_spill] sm:$0xff] %v3788_v8 }
 0x15d   : > { %v3827_v47 = vpop.permute.xlu0 %392 }
 0x163   : > { %v3790_v9 = vpop.permute.xlu2 %350  ;;  %v3792_v10 = vpop.permute.xlu1 %460 }
 0x165   : > { %v3829_v51 = vpop.permute.xlu0 %544 }
 0x166   : > { %4949 = vst [vmem:[#allocation23_spill] sm:$0xff] %v3829_v51 }
 0x16b   : > { %v3794_v1 = vpop.permute.xlu2 %502  ;;  %v3796_v2 = vpop.permute.xlu1 %579 }
 0x16c   : > { %4943 = vst [vmem:[#allocation17_spill] sm:$0xff] %v3796_v2 }
 0x16d   : > { %v3831_v53 = vpop.permute.xlu0 %806 }
 0x173   : > { %v3798_v11 = vpop.permute.xlu2 %614  ;;  %v3800_v15 = vpop.permute.xlu1 %663 }
 0x174   : > { %4944 = vst [vmem:[#allocation18_spill] sm:$0xff] %v3798_v11 }
 0x175   : > { %4945 = vst [vmem:[#allocation19_spill] sm:$0xff] %v3800_v15 }
 0x17b   : > { %v3802_v16 = vpop.permute.xlu1 %689  ;;  %v3804_v18 = vpop.permute.xlu2 %778 }
 0x17c   : > { %4946 = vst [vmem:[#allocation20_spill] sm:$0xff] %v3804_v18 }
 0x183   : > { %v817_v19 = vpop.permute.xlu1 %816  ;;  %v3806_v20 = vpop.permute.xlu2 %804 }
 0x184   : > { %v818_v24 = vrot.slane %v817_v19, 4 }
 0x186   : > { %v820_v28 = vsel %vm819_vm1, %v818_v24, %v817_v19  ;;  %v824_v13 = vmul.f32 %v818_v24, %v3634_v61  ;;  %vm467_vm1 = vcmask 1014784  }
 0x187   : > { %v823_v30 = vmul.f32 %v820_v28, %v3636_v62  ;;  %v3079_v28 = vld [vmem:[%s4868_s4 + $0x38] sm:$0xf] }
 0x18b   : > { %v830_v29 = vpop.permute.xlu2 %829 }
 0x18c   : > { %v834_v14 = vperm.slane %v830_v29, %v3629_v55 }
 0x18e   : > { %v836_v31 = vmul.f32 %v834_v14, %v823_v30  ;;  %v837_v32 = vmul.f32 %v834_v14, %v824_v13 }
 0x190   : > { %842 = vrot.lane.b32.xlu1 %v837_v32, %s3377_s16  ;;  %840 = vrot.lane.b32.xlu0 %v836_v31, %s3377_s16  ;;  %s3380_s16 = smov 33  }
 0x193   : > { %v856_v34 = vpop.permute.xlu2 %855 }
 0x194   : > { %v860_v36 = vperm.slane %v856_v34, %v3629_v55 }
 0x196   : > { %v862_v40 = vmul.f32 %v860_v36, %v823_v30  ;;  %v863_v41 = vmul.f32 %v860_v36, %v824_v13 }
 0x198   : > { %868 = vrot.lane.b32.xlu1 %v863_v41, %s3371_s23  ;;  %866 = vrot.lane.b32.xlu0 %v862_v40, %s3371_s23  ;;  %s3379_s23 = smov 106  }
 0x19b   : > { %v879_v57 = vpop.permute.xlu2 %878 }
 0x19c   : > { %v880_v52 = vrot.slane %v879_v57, 4 }
 0x19e   : > { %v882_v37 = vsel %vm881_vm2, %v880_v52, %v879_v57  ;;  %v886_v58 = vmul.f32 %v880_v52, %v3634_v61  ;;  %v3080_v52 = vld [vmem:[%s4868_s4 + $0x3c] sm:$0xf]  ;;  %vm586_vm2 = vcmask 916480  }
 0x19f   : > { %v885_v49 = vmul.f32 %v882_v37, %v3636_v62  ;;  %v3081_v37 = vld [vmem:[%s4867_s3 + $0x14] sm:$0xf] }
 0x1a0   : > { %891 = vperm.xlu0 %3280, %v3078_v42  }
 0x1a8   : > { %913 = vrot.lane.b32.xlu0 %v3588_v35, %s4872_s17  ;;  %s4876_s17 = smov 94  }
 0x202   : > { %v3833_v54 = vpop.permute.xlu0 %840  ;;  %v3844_v29 = vpop.permute.xlu1 %842 }
 0x203   : > { %4950 = vst [vmem:[#allocation24_spill] sm:$0xff] %v3833_v54 }
 0x204   : > { %4951 = vst [vmem:[#allocation25_spill] sm:$0xff] %v3844_v29 }
 0x20a   : > { %v3835_v27 = vpop.permute.xlu0 %866  ;;  %v3846_v30 = vpop.permute.xlu1 %868 }
 0x212   : > { %v892_v45 = vpop.permute.xlu0 %891 }
 0x213   : > { %v896_v25 = vperm.slane %v892_v45, %v3629_v55 }
 0x215   : > { %v898_v19 = vmul.f32 %v896_v25, %v885_v49  ;;  %v899_v24 = vmul.f32 %v896_v25, %v886_v58 }
 0x217   : > { %904 = vrot.lane.b32.xlu2 %v899_v24, %s3379_s23  ;;  %902 = vrot.lane.b32.xlu1 %v898_v19, %s3379_s23  ;;  %s4928_s23 = smov 80  }
 0x21a   : > { %v914_v13 = vpop.permute.xlu0 %913 }
 0x21b   : > { %v915_v31 = vrot.slane %v914_v13, 4 }
 0x21d   : > { %v917_v32 = vsel %vm4920_vm3, %v915_v31, %v914_v13  ;;  %v921_v40 = vmul.f32 %v915_v31, %v3634_v61  ;;  %vm1108_vm3 = vcmask 760832  }
 0x21e   : > { %v920_v36 = vmul.f32 %v917_v32, %v3636_v62 }
 0x21f   : > { %926 = vperm.xlu1 %3281, %v3079_v28  }
 0x227   : > { %948 = vrot.lane.b32.xlu1 %v3542_v7, %s3380_s16  ;;  %s3382_s16 = smov 34  }
 0x271   : > { %v3863_v45 = vpop.permute.xlu2 %904 }
 0x272   : > { %4953 = vst [vmem:[#allocation27_spill] sm:$0xff] %v3863_v45 }
 0x289   : > { %v3848_v14 = vpop.permute.xlu1 %902 }
 0x28a   : > { %4952 = vst [vmem:[#allocation26_spill] sm:$0xff] %v3848_v14 }
 0x291   : > { %v927_v34 = vpop.permute.xlu1 %926 }
 0x292   : > { %v931_v41 = vperm.slane %v927_v34, %v3629_v55 }
 0x294   : > { %v933_v42 = vmul.f32 %v931_v41, %v920_v36  ;;  %v934_v57 = vmul.f32 %v931_v41, %v921_v40 }
 0x296   : > { %939 = vrot.lane.b32.xlu0 %v934_v57, %s4902_s14  ;;  %937 = vrot.lane.b32.xlu2 %v933_v42, %s4902_s14  ;;  %v3082_v57 = vld [vmem:[%s4868_s4 + $0x40] sm:$0xf] }
 0x299   : > { %v949_v49 = vpop.permute.xlu1 %948 }
 0x29a   : > { %v950_v25 = vrot.slane %v949_v49, 4 }
 0x29c   : > { %v952_v19 = vsel %vm951_vm4, %v950_v25, %v949_v49  ;;  %v956_v13 = vmul.f32 %v950_v25, %v3634_v61  ;;  %vm621_vm4 = vcmask 908288  }
 0x29d   : > { %v955_v28 = vmul.f32 %v952_v19, %v3636_v62 }
 0x29e   : > { %961 = vperm.xlu2 %3282, %v3080_v52   ;;  %v3083_v52 = vld [vmem:[%s4867_s3 + $0x18] sm:$0xf] }
 0x2a6   : > { %987 = vperm.xlu2 %3282, %v3081_v37   ;;  %v1072_v37 = vld [vmem:[%s4866_s2] sm:$0xf] }
 0x2ae   : > { %1010 = vrot.lane.b32.xlu2 %v3565_v21, %s3382_s16  ;;  %s4900_s16 = smov 48  }
 0x2f0   : > { %v3865_v58 = vpop.permute.xlu2 %937 }
 0x2f1   : > { %4954 = vst [vmem:[#allocation28_spill] sm:$0xff] %v3865_v58 }
 0x2f8   : > { %v962_v24 = vpop.permute.xlu2 %961 }
 0x2f9   : > { %v966_v31 = vperm.slane %v962_v24, %v3629_v55 }
 0x2fb   : > { %v968_v32 = vmul.f32 %v966_v31, %v955_v28  ;;  %v969_v34 = vmul.f32 %v966_v31, %v956_v13 }
 0x2fd   : > { %974 = vrot.lane.b32.xlu1 %v969_v34, %s4874_s15  ;;  %972 = vrot.lane.b32.xlu0 %v968_v32, %s4874_s15  ;;  %s3393_s15 = smov 49  }
 0x300   : > { %v988_v36 = vpop.permute.xlu2 %987 }
 0x301   : > { %v992_v40 = vperm.slane %v988_v36, %v3629_v55 }
 0x303   : > { %v994_v41 = vmul.f32 %v992_v40, %v955_v28  ;;  %v995_v42 = vmul.f32 %v992_v40, %v956_v13 }
 0x305   : > { %1000 = vrot.lane.b32.xlu1 %v995_v42, %s4878_s8  ;;  %998 = vrot.lane.b32.xlu0 %v994_v41, %s4878_s8  ;;  %s3385_s8 = smov 36  }
 0x308   : > { %v3884_v49 = vpop.permute.xlu0 %939  ;;  %v1011_v19 = vpop.permute.xlu2 %1010 }
 0x309   : > { %4955 = vst [vmem:[#allocation29_spill] sm:$0xff] %v3884_v49  ;;  %v1012_v28 = vrot.slane %v1011_v19, 4 }
 0x30b   : > { %v1014_v13 = vsel %vm1013_vm5, %v1012_v28, %v1011_v19  ;;  %v3894_v34 = vmul.f32 %v1012_v28, %v3634_v61  ;;  %v3084_v19 = vld [vmem:[%s4868_s4 + $0x44] sm:$0xf]  ;;  %v3085_v28 = vld [vmem:[%s4867_s3 + $0x1c] sm:$0xf]  ;;  %vm670_vm5 = vcmask 900096  }
 0x30c   : > { %v3891_v32 = vmul.f32 %v1014_v13, %v3636_v62  ;;  %v3086_v13 = vld [vmem:[%s4866_s2 + $0x4] sm:$0xf] }
 0x30d   : > { %1023 = vperm.xlu0 %3280, %v3082_v57   ;;  %4957 = vst [vmem:[#allocation31_spill] sm:$0xff] %v3894_v34 }
 0x315   : > { %1049 = vperm.xlu0 %3280, %v3083_v52  }
 0x31d   : > { %1075 = vperm.xlu0 %3280, %v1072_v37  }
 0x36f   : > { %v3886_v25 = vpop.permute.xlu0 %972 }
 0x370   : > { %4956 = vst [vmem:[#allocation30_spill] sm:$0xff] %v3886_v25 }
 0x377   : > { %v3888_v24 = vpop.permute.xlu0 %998 }
 0x37f   : > { %v1024_v31 = vpop.permute.xlu0 %1023 }
 0x380   : > { %v1028_v36 = vperm.slane %v1024_v31, %v3629_v55  ;;  %v3916_v31 = vpop.permute.xlu1 %974 }
 0x381   : > { %4958 = vst [vmem:[#allocation32_spill] sm:$0xff] %v3916_v31 }
 0x382   : > { %v1030_v40 = vmul.f32 %v1028_v36, %v3891_v32  ;;  %v1031_v41 = vmul.f32 %v1028_v36, %v3894_v34 }
 0x384   : > { %1036 = vrot.lane.b32.xlu2 %v1031_v41, %s4876_s17  ;;  %1034 = vrot.lane.b32.xlu1 %v1030_v40, %s4876_s17  ;;  %s3386_s17 = smov 93  }
 0x387   : > { %v1050_v42 = vpop.permute.xlu0 %1049 }
 0x388   : > { %v1054_v57 = vperm.slane %v1050_v42, %v3629_v55  ;;  %v3918_v36 = vpop.permute.xlu1 %1000 }
 0x38a   : > { %v1056_v52 = vmul.f32 %v1054_v57, %v3891_v32  ;;  %v1057_v37 = vmul.f32 %v1054_v57, %v3894_v34 }
 0x38c   : > { %1062 = vrot.lane.b32.xlu2 %v1057_v37, %s4922_s18  ;;  %1060 = vrot.lane.b32.xlu1 %v1056_v52, %s4922_s18 }
 0x394   : > { %1090 = vperm.xlu1 %3281, %v3084_v19  }
 0x39c   : > { %1116 = vperm.xlu1 %3281, %v3085_v28  }
 0x3a4   : > { %1143 = vperm.xlu1 %3281, %v3086_v13  }
 0x3ac   : > { %1166 = vrot.lane.b32.xlu1 %v3558_v17, %s3385_s8  ;;  %s4924_s8 = smov 64  }
 0x3f6   : > { %v3920_v40 = vpop.permute.xlu1 %1034 }
 0x3f7   : > { %4959 = vst [vmem:[#allocation33_spill] sm:$0xff] %v3920_v40 }
 0x3fe   : > { %v3922_v41 = vpop.permute.xlu1 %1060 }
 0x406   : > { %v1091_v42 = vpop.permute.xlu1 %1090 }
 0x407   : > { %v1095_v57 = vperm.slane %v1091_v42, %v3629_v55 }
 0x409   : > { %v1097_v52 = vmul.f32 %v1095_v57, %v3636_v62  ;;  %v1098_v37 = vmul.f32 %v1095_v57, %v3634_v61 }
 0x40b   : > { %1103 = vrot.lane.b32.xlu0 %v1098_v37, %s3386_s17  ;;  %1101 = vrot.lane.b32.xlu2 %v1097_v52, %s3386_s17  ;;  %v3087_v52 = vld [vmem:[%s4868_s4 + $0x48] sm:$0xf] }
 0x40e   : > { %v1117_v19 = vpop.permute.xlu1 %1116 }
 0x40f   : > { %v1121_v28 = vperm.slane %v1117_v19, %v3629_v55  ;;  %v3089_v19 = vld [vmem:[%s4866_s2 + $0x8] sm:$0xf] }
 0x411   : > { %v1123_v13 = vmul.f32 %v1121_v28, %v3636_v62  ;;  %v1124_v34 = vmul.f32 %v1121_v28, %v3634_v61 }
 0x413   : > { %1129 = vrot.lane.b32.xlu0 %v1124_v34, %s4882_s9  ;;  %1127 = vrot.lane.b32.xlu2 %v1123_v13, %s4882_s9  ;;  %v3088_v34 = vld [vmem:[%s4867_s3 + $0x20] sm:$0xf]  ;;  %s3387_s9 = smov 37  }
 0x416   : > { %v1144_v42 = vpop.permute.xlu1 %1143 }
 0x417   : > { %v1148_v40 = vperm.slane %v1144_v42, %v3629_v55 }
 0x419   : > { %v1150_v57 = vmul.f32 %v1148_v40, %v3636_v62  ;;  %v1151_v37 = vmul.f32 %v1148_v40, %v3634_v61  ;;  %v3949_v40 = vpop.permute.xlu2 %1036 }
 0x41a   : > { %4960 = vst [vmem:[#allocation34_spill] sm:$0xff] %v3949_v40 }
 0x41b   : > { %1156 = vrot.lane.b32.xlu0 %v1151_v37, %s3369_s21  ;;  %1154 = vrot.lane.b32.xlu2 %v1150_v57, %s3369_s21  ;;  %s3388_s21 = smov 92  }
 0x41e   : > { %v1167_v57 = vpop.permute.xlu1 %1166 }
 0x421   : > { %v3951_v28 = vpop.permute.xlu2 %1062 }
 0x423   : > { %1179 = vperm.xlu2 %3282, %v3087_v52   ;;  %v1168_v52 = vrot.slane %v1167_v57, 4 }
 0x425   : > { %v1174_v31 = vmul.f32 %v1168_v52, %v3634_v61 }
 0x42b   : > { %1205 = vperm.xlu2 %3282, %v3088_v34   ;;  %v1170_v34 = vsel %vm1169_vm6, %v1168_v52, %v1167_v57  ;;  %vm723_vm6 = vcmask 891904  }
 0x433   : > { %1232 = vperm.xlu2 %3282, %v3089_v19   ;;  %v1173_v19 = vmul.f32 %v1170_v34, %v3636_v62 }
 0x43b   : > { %1255 = vrot.lane.b32.xlu2 %v3584_v33, %s3387_s9  ;;  %s4904_s9 = smov 79  }
 0x465   : > { %v3953_v13 = vpop.permute.xlu2 %1101 }
 0x466   : > { %4961 = vst [vmem:[#allocation35_spill] sm:$0xff] %v3953_v13 }
 0x46d   : > { %v3955_v42 = vpop.permute.xlu2 %1127 }
 0x475   : > { %v3957_v37 = vpop.permute.xlu2 %1154 }
 0x47d   : > { %v1180_v25 = vpop.permute.xlu2 %1179 }
 0x47e   : > { %v1184_v58 = vperm.slane %v1180_v25, %v3629_v55 }
 0x480   : > { %v1186_v40 = vmul.f32 %v1184_v58, %v1173_v19  ;;  %v1187_v49 = vmul.f32 %v1184_v58, %v1174_v31  ;;  %v3090_v58 = vld [vmem:[%s4868_s4 + $0x4c] sm:$0xf] }
 0x482   : > { %1192 = vrot.lane.b32.xlu1 %v1187_v49, %s3388_s21  ;;  %1190 = vrot.lane.b32.xlu0 %v1186_v40, %s3388_s21 }
 0x485   : > { %v1206_v13 = vpop.permute.xlu2 %1205 }
 0x486   : > { %v1210_v45 = vperm.slane %v1206_v13, %v3629_v55 }
 0x488   : > { %v1212_v14 = vmul.f32 %v1210_v45, %v1173_v19  ;;  %v1213_v54 = vmul.f32 %v1210_v45, %v1174_v31 }
 0x48a   : > { %1218 = vrot.lane.b32.xlu1 %v1213_v54, %s3367_s19  ;;  %1216 = vrot.lane.b32.xlu0 %v1212_v14, %s3367_s19  ;;  %v3091_v54 = vld [vmem:[%s4867_s3 + $0x24] sm:$0xf]  ;;  %s3389_s19 = smov 38   ;;  %v3977_v14 = vpop.permute.xlu0 %1075 }
 0x48d   : > { %v1233_v57 = vpop.permute.xlu2 %1232 }
 0x48e   : > { %v1237_v52 = vperm.slane %v1233_v57, %v3629_v55 }
 0x490   : > { %v1239_v25 = vmul.f32 %v1237_v52, %v1173_v19  ;;  %v1240_v34 = vmul.f32 %v1237_v52, %v1174_v31 }
 0x492   : > { %1245 = vrot.lane.b32.xlu1 %v1240_v34, %s3368_s20  ;;  %1243 = vrot.lane.b32.xlu0 %v1239_v25, %s3368_s20  ;;  %v3979_v45 = vpop.permute.xlu0 %1103  ;;  %s3390_s20 = smov 91  }
 0x493   : > { %4962 = vst [vmem:[#allocation36_spill] sm:$0xff] %v3979_v45 }
 0x495   : > { %v1256_v19 = vpop.permute.xlu2 %1255 }
 0x496   : > { %v1257_v52 = vrot.slane %v1256_v19, 4 }
 0x498   : > { %v1259_v25 = vsel %vm1258_vm7, %v1257_v52, %v1256_v19  ;;  %v3092_v19 = vld [vmem:[%s4868_s4 + $0x50] sm:$0xf]  ;;  %vm785_vm7 = vcmask 883712  }
 0x49a   : > { %1268 = vperm.xlu0 %3280, %v3090_v58   ;;  %v3981_v49 = vpop.permute.xlu0 %1129  ;;  %v1262_v58 = vmul.f32 %v1259_v25, %v3636_v62 }
 0x4a2   : > { %1294 = vperm.xlu0 %3280, %v3091_v54   ;;  %v3983_v31 = vpop.permute.xlu0 %1156  ;;  %v1263_v54 = vmul.f32 %v1257_v52, %v3634_v61 }
 0x4aa   : > { %1317 = vrot.lane.b32.xlu0 %v3592_v38, %s3389_s19  ;;  %s3397_s19 = smov 52  }
 0x4f4   : > { %v3985_v40 = vpop.permute.xlu0 %1190 }
 0x4f5   : > { %4963 = vst [vmem:[#allocation37_spill] sm:$0xff] %v3985_v40 }
 0x4fc   : > { %v3987_v13 = vpop.permute.xlu0 %1216 }
 0x504   : > { %v3989_v57 = vpop.permute.xlu0 %1243 }
 0x50c   : > { %v1269_v34 = vpop.permute.xlu0 %1268 }
 0x50d   : > { %v1273_v45 = vperm.slane %v1269_v34, %v3629_v55 }
 0x50f   : > { %v1275_v29 = vmul.f32 %v1273_v45, %v1262_v58  ;;  %v1276_v46 = vmul.f32 %v1273_v45, %v1263_v54 }
 0x511   : > { %1281 = vrot.lane.b32.xlu2 %v1276_v46, %s3390_s20  ;;  %1279 = vrot.lane.b32.xlu1 %v1275_v29, %s3390_s20  ;;  %v4002_v46 = vpop.permute.xlu1 %1192  ;;  %s4909_s20 = smov 77  }
 0x512   : > { %4964 = vst [vmem:[#allocation38_spill] sm:$0xff] %v4002_v46 }
 0x514   : > { %v1295_v40 = vpop.permute.xlu0 %1294 }
 0x515   : > { %v1299_v12 = vperm.slane %v1295_v40, %v3629_v55 }
 0x517   : > { %v1301_v18 = vmul.f32 %v1299_v12, %v1262_v58  ;;  %v1302_v59 = vmul.f32 %v1299_v12, %v1263_v54 }
 0x519   : > { %1307 = vrot.lane.b32.xlu2 %v1302_v59, %s3370_s22  ;;  %1305 = vrot.lane.b32.xlu1 %v1301_v18, %s3370_s22  ;;  %v4004_v29 = vpop.permute.xlu1 %1218  ;;  %s3392_s22 = smov 90  }
 0x51c   : > { %v1318_v59 = vpop.permute.xlu0 %1317 }
 0x51d   : > { %v1319_v18 = vrot.slane %v1318_v59, 4 }
 0x51f   : > { %v1321_v52 = vsel %vm1320_vm8, %v1319_v18, %v1318_v59  ;;  %v1325_v58 = vmul.f32 %v1319_v18, %v3634_v61  ;;  %vm944_vm8 = vcmask 785408  }
 0x520   : > { %v1324_v34 = vmul.f32 %v1321_v52, %v3636_v62 }
 0x521   : > { %1330 = vperm.xlu1 %3281, %v3092_v19   ;;  %v4006_v45 = vpop.permute.xlu1 %1245 }
 0x529   : > { %1352 = vrot.lane.b32.xlu1 %v3588_v35, %s4900_s16  ;;  %s4972_s16 = smov 95  }
 0x56b   : > { %v4019_v59 = vpop.permute.xlu2 %1281 }
 0x56c   : > { %4966 = vst [vmem:[#allocation40_spill] sm:$0xff] %v4019_v59 }
 0x573   : > { %v4021_v52 = vpop.permute.xlu2 %1307 }
 0x583   : > { %v4008_v12 = vpop.permute.xlu1 %1279 }
 0x584   : > { %4965 = vst [vmem:[#allocation39_spill] sm:$0xff] %v4008_v12  ;;  %v3093_v12 = vld [vmem:[%s4868_s4 + $0x54] sm:$0xf] }
 0x58b   : > { %v4010_v40 = vpop.permute.xlu1 %1305 }
 0x593   : > { %v1331_v25 = vpop.permute.xlu1 %1330 }
 0x594   : > { %v1335_v54 = vperm.slane %v1331_v25, %v3629_v55 }
 0x596   : > { %v1337_v19 = vmul.f32 %v1335_v54, %v1324_v34  ;;  %v1338_v46 = vmul.f32 %v1335_v54, %v1325_v58 }
 0x598   : > { %1343 = vrot.lane.b32.xlu0 %v1338_v46, %s3392_s22  ;;  %1341 = vrot.lane.b32.xlu2 %v1337_v19, %s3392_s22  ;;  %s3395_s22 = smov 50  }
 0x59b   : > { %v1353_v18 = vpop.permute.xlu1 %1352 }
 0x59c   : > { %v1354_v25 = vrot.slane %v1353_v18, 4 }
 0x59e   : > { %v1356_v46 = vsel %vm4921_vm9, %v1354_v25, %v1353_v18  ;;  %v1360_v54 = vmul.f32 %v1354_v25, %v3634_v61  ;;  %v3095_v18 = vld [vmem:[%s4867_s3 + $0x28] sm:$0xf]  ;;  %vm1710_vm9 = vcmask 433152  }
 0x59f   : > { %v1359_v58 = vmul.f32 %v1356_v46, %v3636_v62 }
 0x5a0   : > { %1365 = vperm.xlu2 %3282, %v3093_v12  }
 0x5a8   : > { %1387 = vrot.lane.b32.xlu2 %v3542_v7, %s3393_s15  ;;  %s3407_s15 = smov 66  }
 0x5f2   : > { %v4023_v4 = vpop.permute.xlu2 %1341 }
 0x5f3   : > { %4967 = vst [vmem:[#allocation41_spill] sm:$0xff] %v4023_v4  ;;  %v3094_v4 = vld [vmem:[%s4868_s4 + $0x58] sm:$0xf] }
 0x5fa   : > { %v1366_v34 = vpop.permute.xlu2 %1365 }
 0x5fb   : > { %v1370_v12 = vperm.slane %v1366_v34, %v3629_v55 }
 0x5fd   : > { %v1372_v19 = vmul.f32 %v1370_v12, %v1359_v58  ;;  %v1373_v7 = vmul.f32 %v1370_v12, %v1360_v54 }
 0x5ff   : > { %1378 = vrot.lane.b32.xlu1 %v1373_v7, %s4928_s23  ;;  %1376 = vrot.lane.b32.xlu0 %v1372_v19, %s4928_s23 }
 0x602   : > { %v1388_v46 = vpop.permute.xlu2 %1387 }
 0x603   : > { %v1389_v7 = vrot.slane %v1388_v46, 4 }
 0x605   : > { %v1391_v58 = vsel %vm1390_vm10, %v1389_v7, %v1388_v46  ;;  %v3096_v46 = vld [vmem:[%s4868_s4 + $0x5c] sm:$0xf]  ;;  %vm1649_vm10 = vcmask 621568  }
 0x606   : > { %v1394_v12 = vmul.f32 %v1391_v58, %v3636_v62 }
 0x607   : > { %1400 = vperm.xlu0 %3280, %v3094_v4   ;;  %v1395_v4 = vmul.f32 %v1389_v7, %v3634_v61  ;;  %v3097_v7 = vld [vmem:[%s4867_s3 + $0x2c] sm:$0xf] }
 0x60a   : > { %v4038_v25 = vpop.permute.xlu0 %1343 }
 0x60b   : > { %4968 = vst [vmem:[#allocation42_spill] sm:$0xff] %v4038_v25 }
 0x60f   : > { %1426 = vperm.xlu0 %3280, %v3095_v18  }
 0x617   : > { %1449 = vrot.lane.b32.xlu0 %v3565_v21, %s3395_s22  ;;  %s3416_s22 = smov 81  }
 0x671   : > { %v4040_v34 = vpop.permute.xlu0 %1376 }
 0x672   : > { %4969 = vst [vmem:[#allocation43_spill] sm:$0xff] %v4040_v34 }
 0x679   : > { %v1401_v54 = vpop.permute.xlu0 %1400 }
 0x67a   : > { %v1405_v19 = vperm.slane %v1401_v54, %v3629_v55 }
 0x67c   : > { %v1407_v59 = vmul.f32 %v1405_v19, %v1394_v12  ;;  %v1408_v18 = vmul.f32 %v1405_v19, %v1395_v4 }
 0x67e   : > { %1413 = vrot.lane.b32.xlu2 %v1408_v18, %s4904_s9  ;;  %1411 = vrot.lane.b32.xlu1 %v1407_v59, %s4904_s9  ;;  %v3100_v59 = vld [vmem:[%s4867_s3 + $0x30] sm:$0xf]  ;;  %s4973_s9 = smov 112  }
 0x681   : > { %v1427_v21 = vpop.permute.xlu0 %1426 }
 0x682   : > { %v1431_v34 = vperm.slane %v1427_v21, %v3629_v55  ;;  %v3098_v21 = vld [vmem:[%s4866_s2 + $0xc] sm:$0xf] }
 0x684   : > { %v1433_v25 = vmul.f32 %v1431_v34, %v1394_v12  ;;  %v1434_v15 = vmul.f32 %v1431_v34, %v1395_v4  ;;  %v4069_v34 = vpop.permute.xlu1 %1378 }
 0x685   : > { %4970 = vst [vmem:[#allocation44_spill] sm:$0xff] %v4069_v34 }
 0x686   : > { %1439 = vrot.lane.b32.xlu2 %v1434_v15, %s4902_s14  ;;  %1437 = vrot.lane.b32.xlu1 %v1433_v25, %s4902_s14  ;;  %v3099_v15 = vld [vmem:[%s4868_s4 + $0x60] sm:$0xf]  ;;  %v3101_v25 = vld [vmem:[%s4866_s2 + $0x10] sm:$0xf]  ;;  %s3398_s14 = smov 78  }
 0x689   : > { %v1450_v54 = vpop.permute.xlu0 %1449 }
 0x68a   : > { %v1451_v4 = vrot.slane %v1450_v54, 4 }
 0x68c   : > { %v1453_v19 = vsel %vm1452_vm11, %v1451_v4, %v1450_v54  ;;  %vm979_vm11 = vcmask 777216  }
 0x68e   : > { %1462 = vperm.xlu1 %3281, %v3096_v46   ;;  %v1456_v46 = vmul.f32 %v1453_v19, %v3636_v62 }
 0x696   : > { %1488 = vperm.xlu1 %3281, %v3097_v7   ;;  %v1457_v7 = vmul.f32 %v1451_v4, %v3634_v61 }
 0x69e   : > { %1515 = vperm.xlu1 %3281, %v3098_v21  }
 0x6a6   : > { %1542 = vperm.xlu1 %3281, %v3099_v15  }
 0x6ae   : > { %1568 = vperm.xlu1 %3281, %v3100_v59  }
 0x6b6   : > { %1595 = vperm.xlu1 %3281, %v3101_v25  }
 0x6be   : > { %1618 = vrot.lane.b32.xlu1 %v3558_v17, %s3397_s19  ;;  %s4926_s19 = smov 63  }
 0x6f0   : > { %v4071_v58 = vpop.permute.xlu1 %1411 }
 0x6f1   : > { %4971 = vst [vmem:[#allocation45_spill] sm:$0xff] %v4071_v58 }
 0x6f8   : > { %v4073_v12 = vpop.permute.xlu1 %1437 }
 0x700   : > { %v1463_v18 = vpop.permute.xlu1 %1462 }
 0x701   : > { %v1467_v21 = vperm.slane %v1463_v18, %v3629_v55 }
 0x703   : > { %v1469_v15 = vmul.f32 %v1467_v21, %v1456_v46  ;;  %v1470_v59 = vmul.f32 %v1467_v21, %v1457_v7 }
 0x705   : > { %1475 = vrot.lane.b32.xlu0 %v1470_v59, %s3398_s14  ;;  %1473 = vrot.lane.b32.xlu2 %v1469_v15, %s3398_s14  ;;  %v4088_v59 = vld [vmem:[#allocation2 + $0x8] sm:$0xf] }
 0x708   : > { %v1489_v25 = vpop.permute.xlu1 %1488 }
 0x709   : > { %v1493_v17 = vperm.slane %v1489_v25, %v3629_v55 }
 0x70b   : > { %v1495_v58 = vmul.f32 %v1493_v17, %v1456_v46  ;;  %v1496_v34 = vmul.f32 %v1493_v17, %v1457_v7 }
 0x70d   : > { %1501 = vrot.lane.b32.xlu0 %v1496_v34, %s4972_s16  ;;  %1499 = vrot.lane.b32.xlu2 %v1495_v58, %s4972_s16 }
 0x710   : > { %v1516_v54 = vpop.permute.xlu1 %1515 }
 0x711   : > { %v1520_v61 = vperm.slane %v1516_v54, %v3629_v55 }
 0x713   : > { %v1522_v4 = vmul.f32 %v1520_v61, %v1456_v46  ;;  %v1523_v19 = vmul.f32 %v1520_v61, %v1457_v7  ;;  %v4094_v46 = vld [vmem:[#allocation2] sm:$0xff] }
 0x715   : > { %1528 = vrot.lane.b32.xlu0 %v1523_v19, %s4973_s9  ;;  %1526 = vrot.lane.b32.xlu2 %v1522_v4, %s4973_s9  ;;  %v3102_v19 = vld [vmem:[%s4868_s4 + $0x64] sm:$0xf]  ;;  %s3403_s9 = smov 75  }
 0x718   : > { %v1543_v18 = vpop.permute.xlu1 %1542 }
 0x719   : > { %v1547_v21 = vperm.slane %v1543_v18, %v3629_v55  ;;  %v3103_v18 = vld [vmem:[%s4867_s3 + $0x34] sm:$0xf] }
 0x71b   : > { %v1549_v15 = vmul.f32 %v1547_v21, %v3636_v62  ;;  %v1550_v17 = vmul.f32 %v4088_v59, %v1547_v21  ;;  %v3104_v21 = vld [vmem:[%s4866_s2 + $0x14] sm:$0xf] }
 0x71d   : > { %1555 = vrot.lane.b32.xlu0 %v1550_v17, %s4909_s20  ;;  %1553 = vrot.lane.b32.xlu2 %v1549_v15, %s4909_s20  ;;  %v4114_v15 = vpop.permute.xlu2 %1413  ;;  %s3400_s20 = smov 53  }
 0x71e   : > { %4975 = vst [vmem:[#allocation46_spill] sm:$0xff] %v4114_v15 }
 0x720   : > { %v1569_v34 = vpop.permute.xlu1 %1568 }
 0x721   : > { %v1573_v58 = vperm.slane %v1569_v34, %v3629_v55 }
 0x723   : > { %v1575_v7 = vmul.f32 %v4094_v46, %v1573_v58  ;;  %v1576_v25 = vmul.f32 %v4088_v59, %v1573_v58 }
 0x725   : > { %1581 = vrot.lane.b32.xlu0 %v1576_v25, %s4974_s29  ;;  %1579 = vrot.lane.b32.xlu2 %v1575_v7, %s4974_s29  ;;  %v4117_v17 = vpop.permute.xlu2 %1439 }
 0x728   : > { %v1596_v62 = vpop.permute.xlu1 %1595 }
 0x729   : > { %v1600_v54 = vperm.slane %v1596_v62, %v3629_v55 }
 0x72b   : > { %v1602_v61 = vmul.f32 %v4094_v46, %v1600_v54  ;;  %v1603_v4 = vmul.f32 %v4088_v59, %v1600_v54 }
 0x72d   : > { %1608 = vrot.lane.b32.xlu0 %v1603_v4, %s4922_s18  ;;  %1606 = vrot.lane.b32.xlu2 %v1602_v61, %s4922_s18  ;;  %s3410_s18 = smov 62  }
 0x730   : > { %v1619_v54 = vpop.permute.xlu1 %1618 }
 0x731   : > { %v1620_v4 = vrot.slane %v1619_v54, 4 }
 0x735   : > { %1631 = vperm.xlu2 %3282, %v3102_v19   ;;  %v1622_v19 = vsel %vm1621_vm12, %v1620_v4, %v1619_v54  ;;  %vm1041_vm12 = vcmask 769024  }
 0x73d   : > { %1657 = vperm.xlu2 %3282, %v3103_v18  }
 0x745   : > { %1684 = vperm.xlu2 %3282, %v3104_v21   ;;  %v1625_v21 = vmul.f32 %v4094_v46, %v1622_v19 }
 0x74d   : > { %1707 = vrot.lane.b32.xlu2 %v3584_v33, %s3400_s20  ;;  %v1626_v33 = vmul.f32 %v4088_v59, %v1620_v4  ;;  %s3401_s20 = smov 76  }
 0x75f   : > { %v4119_v34 = vpop.permute.xlu2 %1473 }
 0x760   : > { %4976 = vst [vmem:[#allocation47_spill] sm:$0xff] %v4119_v34 }
 0x767   : > { %v4121_v58 = vpop.permute.xlu2 %1499 }
 0x76f   : > { %v4123_v7 = vpop.permute.xlu2 %1526 }
 0x777   : > { %v4125_v25 = vpop.permute.xlu2 %1553 }
 0x778   : > { %4977 = vst [vmem:[#allocation48_spill] sm:$0xff] %v4125_v25 }
 0x77f   : > { %v4127_v62 = vpop.permute.xlu2 %1579 }
 0x787   : > { %v4129_v61 = vpop.permute.xlu2 %1606 }
 0x78f   : > { %v1632_v18 = vpop.permute.xlu2 %1631 }
 0x790   : > { %v1636_v34 = vperm.slane %v1632_v18, %v3629_v55 }
 0x792   : > { %v1638_v15 = vmul.f32 %v1636_v34, %v1625_v21  ;;  %v1639_v0 = vmul.f32 %v1636_v34, %v1626_v33  ;;  %v693_v34 = vrot.slane %v3802_v16, 4 }
 0x794   : > { %1644 = vrot.lane.b32.xlu1 %v1639_v0, %s3401_s20  ;;  %1642 = vrot.lane.b32.xlu0 %v1638_v15, %s3401_s20  ;;  %v3105_v0 = vld [vmem:[%s4868_s4 + $0x68] sm:$0xf] }
 0x797   : > { %v1658_v25 = vpop.permute.xlu2 %1657 }
 0x798   : > { %v1662_v26 = vperm.slane %v1658_v25, %v3629_v55  ;;  %v633_v25 = vperm.slane %v3679_v39, %v3629_v55 }
 0x79a   : > { %v1664_v11 = vmul.f32 %v1662_v26, %v1625_v21  ;;  %v1665_v2 = vmul.f32 %v1662_v26, %v1626_v33  ;;  %v635_v39 = vmul.f32 %v633_v25, %v3661_v23 }
 0x79c   : > { %1670 = vrot.lane.b32.xlu1 %v1665_v2, %s3386_s17  ;;  %1668 = vrot.lane.b32.xlu0 %v1664_v11, %s3386_s17  ;;  %v3106_v2 = vld [vmem:[%s4867_s3 + $0x38] sm:$0xf]  ;;  %s3402_s17 = smov 54   ;;  %v4149_v11 = vpop.permute.xlu0 %1475 }
 0x79d   : > { %4979 = vst [vmem:[#allocation49_spill] sm:$0xff] %v4149_v11 }
 0x79f   : > { %v1685_v54 = vpop.permute.xlu2 %1684 }
 0x7a0   : > { %v1689_v4 = vperm.slane %v1685_v54, %v3629_v55 }
 0x7a2   : > { %v1691_v19 = vmul.f32 %v1689_v4, %v1625_v21  ;;  %v1692_v18 = vmul.f32 %v1689_v4, %v1626_v33  ;;  %v694_v21 = vrot.slane %v3786_v6, 4  ;;  %v636_v4 = vmul.f32 %v633_v25, %v3658_v22 }
 0x7a3   : > { %v871_v22 = vrot.slane %v3846_v30, 4  ;;  %v1064_v25 = vrot.slane %v3922_v41, 4 }
 0x7a4   : > { %1697 = vrot.lane.b32.xlu1 %v1692_v18, %s4978_s13  ;;  %1695 = vrot.lane.b32.xlu0 %v1691_v19, %s4978_s13  ;;  %v4151_v33 = vpop.permute.xlu0 %1501  ;;  %v695_v54 = vsel %vm301_vm0, %v693_v34, %v694_v21  ;;  %v746_v19 = vrot.slane %v3780_v3, 4  ;;  %v808_v18 = vrot.slane %v3806_v20, 4  ;;  %v809_v34 = vrot.slane %v3831_v53, 4  ;;  %s3409_s13 = smov 68  }
 0x7a5   : > { %v870_v21 = vrot.slane %v3835_v27, 4 }
 0x7a6   : > { %v810_v51 = vsel %vm301_vm0, %v808_v18, %v809_v34 }
 0x7a7   : > { %v872_v23 = vsel %vm301_vm0, %v870_v21, %v871_v22  ;;  %v1220_v22 = vrot.slane %v3987_v13, 4 }
 0x7a8   : > { %v873_v34 = vsel %vm467_vm1, %v3835_v27, %v872_v23 }
 0x7ac   : > { %1720 = vperm.xlu0 %3280, %v3105_v0   ;;  %v4153_v26 = vpop.permute.xlu0 %1528  ;;  %v747_v0 = vrot.slane %v3764_v48, 4 }
 0x7ae   : > { %v748_v11 = vsel %vm301_vm0, %v746_v19, %v747_v0 }
 0x7b4   : > { %1746 = vperm.xlu0 %3280, %v3106_v2   ;;  %v4155_v15 = vpop.permute.xlu0 %1555  ;;  %v700_v2 = vadd.f32 %v3786_v6, %v636_v4  ;;  %v1003_v6 = vrot.slane %v3918_v36, 4  ;;  %v749_v4 = vsel %vm399_vm14, %v3780_v3, %v748_v11 }
 0x7b5   : > { %4980 = vst [vmem:[#allocation50_spill] sm:$0xff] %v4155_v15 }
 0x7bc   : > { %1769 = vrot.lane.b32.xlu0 %v3592_v38, %s3402_s17  ;;  %v696_v38 = vsel %vm357_vm13, %v3802_v16, %v695_v54  ;;  %v4169_v15 = vpop.permute.xlu0 %1581  ;;  %v1002_v16 = vrot.slane %v3888_v24, 4  ;;  %v753_v54 = vadd.f32 %v3764_v48, %v700_v2  ;;  %v1132_v48 = vrot.slane %v3981_v49, 4  ;;  %s3406_s17 = smov 65  }
 0x7bd   : > { %v699_v8 = vadd.f32 %v696_v38, %v635_v39  ;;  %v811_v38 = vsel %vm425_vm15, %v3806_v20, %v810_v51  ;;  %v1065_v39 = vrot.slane %v3951_v28, 4  ;;  %v1221_v51 = vrot.slane %v4004_v29, 4 }
 0x7be   : > { %v815_v19 = vadd.f32 %v3831_v53, %v753_v54  ;;  %v1004_v0 = vsel %vm301_vm0, %v1002_v16, %v1003_v6  ;;  %v1131_v53 = vrot.slane %v3955_v42, 4  ;;  %v1309_v6 = vrot.slane %v4010_v40, 4 }
 0x7bf   : > { %v752_v18 = vadd.f32 %v749_v4, %v699_v8  ;;  %v1066_v11 = vsel %vm301_vm0, %v1064_v25, %v1065_v39  ;;  %v1005_v8 = vsel %vm586_vm2, %v3888_v24, %v1004_v0  ;;  %v1310_v24 = vrot.slane %v4021_v52, 4 }
 0x7c0   : > { %v877_v2 = vadd.f32 %v3846_v30, %v815_v19  ;;  %v1133_v27 = vsel %vm301_vm0, %v1131_v53, %v1132_v48  ;;  %v1222_v4 = vsel %vm301_vm0, %v1220_v22, %v1221_v51  ;;  %v1441_v19 = vrot.slane %v4073_v12, 4 }
 0x7c1   : > { %v814_v3 = vadd.f32 %v811_v38, %v752_v18  ;;  %v1134_v25 = vsel %vm670_vm5, %v3955_v42, %v1133_v27  ;;  %v1311_v18 = vsel %vm301_vm0, %v1309_v6, %v1310_v24  ;;  %v1504_v0 = vrot.slane %v4151_v33, 4 }
 0x7c2   : > { %v1009_v20 = vadd.f32 %v3918_v36, %v877_v2  ;;  %v1067_v36 = vsel %vm621_vm4, %v3922_v41, %v1066_v11  ;;  %v1442_v41 = vrot.slane %v4117_v17, 4  ;;  %v1223_v42 = vsel %vm723_vm6, %v3987_v13, %v1222_v4 }
 0x7c3   : > { %v876_v30 = vadd.f32 %v873_v34, %v814_v3  ;;  %v1312_v48 = vsel %vm785_vm7, %v4010_v40, %v1311_v18  ;;  %v1503_v34 = vrot.slane %v4121_v58, 4  ;;  %v1584_v11 = vrot.slane %v4169_v15, 4 }
 0x7c4   : > { %v4200_v21 = vpop.permute.xlu0 %1608  ;;  %v1071_v16 = vadd.f32 %v3951_v28, %v1009_v20  ;;  %v1443_v2 = vsel %vm301_vm0, %v1441_v19, %v1442_v41  ;;  %v1583_v22 = vrot.slane %v4127_v62, 4  ;;  %v1248_v27 = vrot.slane %v4006_v45, 4 }
 0x7c5   : > { %v1008_v54 = vadd.f32 %v1005_v8, %v876_v30  ;;  %v1159_v8 = vrot.slane %v3983_v31, 4  ;;  %v1444_v40 = vsel %vm944_vm8, %v4073_v12, %v1443_v2  ;;  %v1247_v6 = vrot.slane %v3989_v57, 4 }
 0x7c6   : > { %v1138_v23 = vadd.f32 %v3981_v49, %v1071_v16  ;;  %v1585_v12 = vsel %vm301_vm0, %v1583_v22, %v1584_v11  ;;  %v1531_v19 = vrot.slane %v4153_v26, 4 }
 0x7c7   : > { %v1070_v38 = vadd.f32 %v1067_v36, %v1008_v54  ;;  %v1158_v54 = vrot.slane %v3957_v37, 4  ;;  %v1249_v18 = vsel %vm301_vm0, %v1247_v6, %v1248_v27  ;;  %v1586_v41 = vsel %vm1041_vm12, %v4127_v62, %v1585_v12 }
 0x7c8   : > { %v1227_v28 = vadd.f32 %v4004_v29, %v1138_v23  ;;  %v4244_v23 = vperm.slane %v3977_v14, %v3629_v55  ;;  %v1611_v14 = vrot.slane %v4200_v21, 4 }
 0x7c9   : > { %v1137_v49 = vadd.f32 %v1134_v25, %v1070_v38  ;;  %v1160_v4 = vsel %vm301_vm0, %v1158_v54, %v1159_v8 }
 0x7ca   : > { %v1316_v39 = vadd.f32 %v4021_v52, %v1227_v28  ;;  %v1505_v52 = vsel %vm301_vm0, %v1503_v34, %v1504_v0  ;;  %v1610_v34 = vrot.slane %v4129_v61, 4 }
 0x7cb   : > { %v1226_v13 = vadd.f32 %v1223_v42, %v1137_v49 }
 0x7cc   : > { %v1448_v51 = vadd.f32 %v4117_v17, %v1316_v39  ;;  %v1506_v17 = vsel %vm979_vm11, %v4121_v58, %v1505_v52 }
 0x7cd   : > { %v1315_v16 = vadd.f32 %v1312_v48, %v1226_v13  ;;  %v1082_v48 = vmul.f32 %v4244_v23, %v3891_v32  ;;  %v1612_v32 = vsel %vm301_vm0, %v1610_v34, %v1611_v14  ;;  %v1708_v13 = vpop.permute.xlu2 %1707  ;;  %v304_v14 = vmul.f32 %v4094_v46, %v3588_v35 }
 0x7ce   : > { %v1510_v24 = vadd.f32 %v4151_v33, %v1448_v51  ;;  %v1530_v33 = vrot.slane %v4123_v7, 4  ;;  %v1613_v51 = vsel %vm621_vm4, %v4129_v61, %v1612_v32  ;;  %v1709_v27 = vrot.slane %v1708_v13, 4 }
 0x7cf   : > { %v1447_v25 = vadd.f32 %v1444_v40, %v1315_v16  ;;  %v397_v34 = vrot.slane %v3784_v5, 4  ;;  %v464_v32 = vrot.slane %v3792_v10, 4  ;;  %v507_v5 = vrot.slane %v3821_v44, 4 }
 0x7d0   : > { %v1590_v38 = vadd.f32 %v4169_v15, %v1510_v24  ;;  %v1161_v15 = vsel %vm357_vm13, %v3957_v37, %v1160_v4  ;;  %v1532_v2 = vsel %vm301_vm0, %v1530_v33, %v1531_v19  ;;  %v1711_v24 = vsel %vm1710_vm9, %v1709_v27, %v1708_v13 }
 0x7d1   : > { %v1509_v58 = vadd.f32 %v1506_v17, %v1447_v25  ;;  %v1533_v37 = vsel %vm586_vm2, %v4123_v7, %v1532_v2  ;;  %v1714_v12 = vmul.f32 %v4094_v46, %v1711_v24  ;;  %v1715_v61 = vmul.f32 %v4088_v59, %v1709_v27 }
 0x7d2   : > { %vm509_vm9 = vcmask 1006592  }
 0x806   : > { %v1645_v29 = vpop.permute.xlu1 %1644  ;;  %v1643_v3 = vpop.permute.xlu0 %1642 }
 0x807   : > { %v1647_v53 = vrot.slane %v1645_v29, 4  ;;  %v1646_v20 = vrot.slane %v1643_v3, 4  ;;  %v1589_v29 = vadd.f32 %v1586_v41, %v1509_v58  ;;  %v3107_v58 = vld [vmem:[%s4868_s4 + $0x6c] sm:$0xf]  ;;  %v354_v41 = vrot.slane %v3790_v9, 4 }
 0x809   : > { %v1648_v30 = vsel %vm301_vm0, %v1646_v20, %v1647_v53  ;;  %v1164_v53 = vadd.f32 %v1161_v15, %v1082_v48  ;;  %v396_v48 = vrot.slane %v3827_v47, 4 }
 0x80a   : > { %v4235_v36 = vsel %vm1649_vm10, %v1643_v3, %v1648_v30  ;;  %v1250_v3 = vsel %vm399_vm14, %v3989_v57, %v1249_v18 }
 0x80b   : > { %v1253_v8 = vadd.f32 %v1250_v3, %v1164_v53 }
 0x80d   : > { %v1536_v22 = vadd.f32 %v1533_v37, %v1253_v8  ;;  %v506_v37 = vrot.slane %v3794_v1, 4 }
 0x80e   : > { %v1671_v28 = vpop.permute.xlu1 %1670  ;;  %v1669_v0 = vpop.permute.xlu0 %1668 }
 0x80f   : > { %v1673_v49 = vrot.slane %v1671_v28, 4  ;;  %v4254_v42 = vadd.f32 %v1671_v28, %v1590_v38  ;;  %v1672_v39 = vrot.slane %v1669_v0, 4  ;;  %v1616_v6 = vadd.f32 %v1613_v51, %v1536_v22 }
 0x811   : > { %v1674_v62 = vsel %vm301_vm0, %v1672_v39, %v1673_v49  ;;  %v313_v39 = vperm.slane %v3632_v60, %v3629_v55 }
 0x812   : > { %v1675_v11 = vsel %vm1108_vm3, %v1669_v0, %v1674_v62  ;;  %v355_v0 = vrot.slane %v3771_v56, 4  ;;  %v422_v56 = vrot.slane %v3819_v43, 4  ;;  %v398_v62 = vsel %vm301_vm0, %v396_v48, %v397_v34  ;;  %v4991_v34 = vld [vmem:[#allocation12_spill] sm:$0xff] }
 0x813   : > { %v4266_v20 = vadd.f32 %v1675_v11, %v1589_v29  ;;  %v315_v2 = vmul.f32 %v313_v39, %v304_v14  ;;  %v423_v29 = vrot.slane %v3769_v50, 4  ;;  %v400_v11 = vsel %vm399_vm14, %v3827_v47, %v398_v62  ;;  %v4989_v14 = vld [vmem:[#allocation13_spill] sm:$0xff] }
 0x814   : > { %v356_v49 = vsel %vm301_vm0, %v354_v41, %v355_v0  ;;  %v508_v47 = vsel %vm301_vm0, %v506_v37, %v507_v5  ;;  %v4995_v5 = vld [vmem:[#allocation26_spill] sm:$0xff]  ;;  %vm847_vm14 = vcmask 875520  }
 0x815   : > { %v358_v15 = vsel %vm357_vm13, %v3790_v9, %v356_v49  ;;  %v424_v60 = vsel %vm301_vm0, %v422_v56, %v423_v29  ;;  %v465_v9 = vrot.slane %v3776_v63, 4  ;;  %v510_v63 = vsel %vm509_vm9, %v3794_v1, %v508_v47  ;;  %v4992_v56 = vld [vmem:[#allocation22_spill] sm:$0xff]  ;;  %v4996_v47 = vld [vmem:[#allocation27_spill] sm:$0xff] }
 0x816   : > { %v4271_v52 = vpop.permute.xlu1 %1697  ;;  %v1696_v40 = vpop.permute.xlu0 %1695  ;;  %v360_v3 = vadd.f32 %v358_v15, %v315_v2  ;;  %v426_v50 = vsel %vm425_vm15, %v3819_v43, %v424_v60  ;;  %vm551_vm13 = vcmask 998400   ;;  %v720_v49 = vrot.slane %v4989_v14, 4  ;;  %v4990_v15 = vld [vmem:[#allocation20_spill] sm:$0xff] }
 0x817   : > { %v1700_v57 = vrot.slane %v4271_v52, 4  ;;  %v1699_v30 = vrot.slane %v1696_v40, 4  ;;  %v466_v13 = vsel %vm301_vm0, %v464_v32, %v465_v9  ;;  %v782_v2 = vrot.slane %v4990_v15, 4  ;;  %v4994_v60 = vld [vmem:[#allocation24_spill] sm:$0xff] }
 0x818   : > { %v402_v53 = vadd.f32 %v400_v11, %v360_v3  ;;  %v468_v51 = vsel %vm467_vm1, %v3792_v10, %v466_v13  ;;  %v721_v29 = vrot.slane %v4991_v34, 4  ;;  %v783_v62 = vrot.slane %v4992_v56, 4  ;;  %v4993_v3 = vld [vmem:[#allocation25_spill] sm:$0xff] }
 0x819   : > { %v1701_v16 = vsel %vm301_vm0, %v1699_v30, %v1700_v57  ;;  %v4981_v57 = vld [vmem:[#allocation23_spill] sm:$0xff]  ;;  %v4982_v30 = vld [vmem:[#allocation16_spill] sm:$0xff]  ;;  %v845_v11 = vrot.slane %v4993_v3, 4  ;;  %vm909_vm15 = vcmask 867328   ;;  %vm1197_vm1 = vcmask 752640  }
 0x81a   : > { %v1702_v54 = vsel %vm670_vm5, %v1696_v40, %v1701_v16  ;;  %v428_v8 = vadd.f32 %v426_v50, %v402_v53  ;;  %v548_v22 = vrot.slane %v4981_v57, 4  ;;  %v549_v27 = vrot.slane %v4982_v30, 4 }
 0x81b   : > { %v4278_v7 = vadd.f32 %v1702_v54, %v1616_v6  ;;  %v4983_v6 = vld [vmem:[#allocation17_spill] sm:$0xff]  ;;  %v4984_v54 = vld [vmem:[#allocation18_spill] sm:$0xff]  ;;  %v844_v53 = vrot.slane %v4994_v60, 4  ;;  %v722_v9 = vsel %vm301_vm0, %v720_v49, %v721_v29  ;;  %v784_v50 = vsel %vm301_vm0, %v782_v2, %v783_v62  ;;  %v5007_v62 = vld [vmem:[#allocation39_spill] sm:$0xff] }
 0x81c   : > { %v470_v40 = vadd.f32 %v468_v51, %v428_v8  ;;  %v550_v43 = vsel %vm301_vm0, %v548_v22, %v549_v27  ;;  %v583_v16 = vrot.slane %v4983_v6, 4  ;;  %v618_v24 = vrot.slane %v4984_v54, 4  ;;  %v4997_v22 = vld [vmem:[#allocation29_spill] sm:$0xff] }
 0x81d   : > { %v552_v10 = vsel %vm551_vm13, %v4981_v57, %v550_v43  ;;  %v906_v8 = vrot.slane %v4995_v5, 4  ;;  %v846_v13 = vsel %vm301_vm0, %v844_v53, %v845_v11  ;;  %v907_v51 = vrot.slane %v4996_v47, 4 }
 0x81e   : > { %v1721_v17 = vpop.permute.xlu0 %1720  ;;  %v512_v44 = vadd.f32 %v510_v63, %v470_v40  ;;  %v724_v40 = vsel %vm723_vm6, %v4989_v14, %v722_v9  ;;  %v786_v57 = vsel %vm785_vm7, %v4990_v15, %v784_v50  ;;  %v942_v63 = vrot.slane %v4997_v22, 4  ;;  %v5004_v14 = vld [vmem:[#allocation35_spill] sm:$0xff]  ;;  %v5006_v15 = vld [vmem:[#allocation37_spill] sm:$0xff] }
 0x81f   : > { %v1725_v25 = vperm.slane %v1721_v17, %v3629_v55  ;;  %v4985_v17 = vld [vmem:[#allocation21_spill] sm:$0xff]  ;;  %v908_v27 = vsel %vm301_vm0, %v906_v8, %v907_v51  ;;  %v848_v43 = vsel %vm847_vm14, %v4994_v60, %v846_v13  ;;  %v1105_v49 = vrot.slane %v5004_v14, 4 }
 0x820   : > { %v1194_v2 = vrot.slane %v5006_v15, 4  ;;  %v1283_v3 = vrot.slane %v5007_v62, 4  ;;  %v5010_v51 = vld [vmem:[#allocation41_spill] sm:$0xff]  ;;  %vm1418_vm6 = vcmask 646144   ;;  %vm1480_vm7 = vcmask 637952  }
 0x821   : > { %v1727_v4 = vmul.f32 %v1725_v25, %v1714_v12  ;;  %v1728_v19 = vmul.f32 %v1725_v25, %v1715_v61  ;;  %vm1560_vm9 = vcmask 629760   ;;  %vm1738_vm13 = vcmask 613376  }
 0x822   : > { %vm1772_vm14 = vcmask 441344  }
 0x823   : > { %1733 = vrot.lane.b32.xlu2 %v1728_v19, %s3403_s9  ;;  %1731 = vrot.lane.b32.xlu1 %v1727_v4, %s3403_s9  ;;  %v554_v4 = vadd.f32 %v552_v10, %v512_v44  ;;  %v4998_v44 = vld [vmem:[#allocation28_spill] sm:$0xff]  ;;  %v5001_v10 = vld [vmem:[#allocation33_spill] sm:$0xff]  ;;  %s3415_s9 = smov 59  }
 0x826   : > { %v1747_v38 = vpop.permute.xlu0 %1746 }
 0x827   : > { %v1751_v18 = vperm.slane %v1747_v38, %v3629_v55  ;;  %v4987_v38 = vld [vmem:[#allocation19_spill] sm:$0xff] }
 0x829   : > { %v1753_v33 = vmul.f32 %v1751_v18, %v1714_v12  ;;  %v1754_v28 = vmul.f32 %v1751_v18, %v1715_v61  ;;  %v619_v12 = vrot.slane %v4985_v17, 4  ;;  %v4986_v61 = vld [vmem:[#allocation14_spill] sm:$0xff]  ;;  %v667_v18 = vrot.slane %v4987_v38, 4 }
 0x82a   : > { %v584_v25 = vrot.slane %v4986_v61, 4  ;;  %v910_v61 = vsel %vm909_vm15, %v4995_v5, %v908_v27  ;;  %vm1807_vm15 = vcmask 523264  }
 0x82b   : > { %1759 = vrot.lane.b32.xlu2 %v1754_v28, %s3388_s21  ;;  %1757 = vrot.lane.b32.xlu1 %v1753_v33, %s3388_s21  ;;  %v620_v1 = vsel %vm301_vm0, %v618_v24, %v619_v12  ;;  %v5000_v24 = vld [vmem:[#allocation30_spill] sm:$0xff]  ;;  %s3405_s21 = smov 74  }
 0x82c   : > { %v585_v19 = vsel %vm301_vm0, %v583_v16, %v584_v25  ;;  %v622_v28 = vsel %vm621_vm4, %v4984_v54, %v620_v1  ;;  %v4999_v16 = vld [vmem:[#allocation32_spill] sm:$0xff]  ;;  %v976_v17 = vrot.slane %v5000_v24, 4 }
 0x82d   : > { %v587_v33 = vsel %vm586_vm2, %v4983_v6, %v585_v19  ;;  %v941_v6 = vrot.slane %v4998_v44, 4  ;;  %v977_v54 = vrot.slane %v4999_v16, 4  ;;  %vm1286_vm2 = vcmask 744448  }
 0x82e   : > { %v589_v0 = vadd.f32 %v587_v33, %v554_v4  ;;  %v1038_v4 = vrot.slane %v5001_v10, 4  ;;  %v5003_v33 = vld [vmem:[#allocation36_spill] sm:$0xff] }
 0x82f   : > { %v943_v25 = vsel %vm301_vm0, %v941_v6, %v942_v63  ;;  %v978_v1 = vsel %vm301_vm0, %v976_v17, %v977_v54  ;;  %v5012_v63 = vld [vmem:[#allocation43_spill] sm:$0xff]  ;;  %v5013_v6 = vld [vmem:[#allocation45_spill] sm:$0xff]  ;;  %v5014_v17 = vld [vmem:[#allocation46_spill] sm:$0xff] }
 0x830   : > { %v624_v39 = vadd.f32 %v622_v28, %v589_v0  ;;  %v1106_v28 = vrot.slane %v5003_v33, 4  ;;  %v980_v34 = vsel %vm979_vm11, %v5000_v24, %v978_v1  ;;  %v1415_v16 = vrot.slane %v5013_v6, 4  ;;  %v5016_v1 = vld [vmem:[#allocation47_spill] sm:$0xff] }
 0x832   : > { %v1107_v56 = vsel %vm301_vm0, %v1105_v49, %v1106_v28 }
 0x833   : > { %1782 = vperm.xlu1 %3281, %v3107_v58   ;;  %v4988_v58 = vld [vmem:[#allocation15_spill] sm:$0xff]  ;;  %v1109_v5 = vsel %vm1108_vm3, %v5004_v14, %v1107_v56  ;;  %vm1383_vm3 = vcmask 654336  }
 0x834   : > { %v668_v41 = vrot.slane %v4988_v58, 4 }
 0x836   : > { %v669_v48 = vsel %vm301_vm0, %v667_v18, %v668_v41  ;;  %v945_v41 = vsel %vm944_vm8, %v4998_v44, %v943_v25 }
 0x837   : > { %v671_v32 = vsel %vm670_vm5, %v4987_v38, %v669_v48  ;;  %v5002_v38 = vld [vmem:[#allocation34_spill] sm:$0xff]  ;;  %vm1348_vm5 = vcmask 736256  }
 0x838   : > { %v673_v37 = vadd.f32 %v671_v32, %v624_v39  ;;  %v1039_v18 = vrot.slane %v5002_v38, 4  ;;  %v5005_v39 = vld [vmem:[#allocation38_spill] sm:$0xff]  ;;  %v5008_v32 = vld [vmem:[#allocation40_spill] sm:$0xff]  ;;  %v1477_v38 = vrot.slane %v5016_v1, 4 }
 0x839   : > { %v1195_v48 = vrot.slane %v5005_v39, 4  ;;  %v1284_v9 = vrot.slane %v5008_v32, 4 }
 0x83a   : > { %v726_v30 = vadd.f32 %v724_v40, %v673_v37  ;;  %v1040_v0 = vsel %vm301_vm0, %v1038_v4, %v1039_v18  ;;  %v5009_v37 = vld [vmem:[#allocation42_spill] sm:$0xff]  ;;  %v1345_v40 = vrot.slane %v5010_v51, 4 }
 0x83b   : > { %1804 = vrot.lane.b32.xlu1 %v3588_v35, %s4924_s8  ;;  %v1042_v11 = vsel %vm1041_vm12, %v5001_v10, %v1040_v0  ;;  %v1196_v53 = vsel %vm301_vm0, %v1194_v2, %v1195_v48  ;;  %v1346_v50 = vrot.slane %v5009_v37, 4  ;;  %v1285_v13 = vsel %vm301_vm0, %v1283_v3, %v1284_v9  ;;  %v5017_v18 = vld [vmem:[#allocation50_spill] sm:$0xff] }
 0x83c   : > { %v788_v12 = vadd.f32 %v786_v57, %v726_v30  ;;  %v1198_v47 = vsel %vm1197_vm1, %v5006_v15, %v1196_v53  ;;  %v5011_v57 = vld [vmem:[#allocation44_spill] sm:$0xff]  ;;  %v1380_v30 = vrot.slane %v5012_v63, 4  ;;  %v1558_v33 = vrot.slane %v5017_v18, 4 }
 0x83d   : > { %v1381_v22 = vrot.slane %v5011_v57, 4  ;;  %v1347_v44 = vsel %vm301_vm0, %v1345_v40, %v1346_v50 }
 0x83e   : > { %v850_v19 = vadd.f32 %v848_v43, %v788_v12  ;;  %v1287_v43 = vsel %vm1286_vm2, %v5007_v62, %v1285_v13  ;;  %v1416_v12 = vrot.slane %v5014_v17, 4  ;;  %v1349_v10 = vsel %vm1348_vm5, %v5010_v51, %v1347_v44 }
 0x83f   : > { %v1382_v24 = vsel %vm301_vm0, %v1380_v30, %v1381_v22  ;;  %vm1841_vm2 = vcmask 531456   ;;  %vm1869_vm5 = vcmask 515072  }
 0x840   : > { %v912_v58 = vadd.f32 %v910_v61, %v850_v19  ;;  %v5015_v61 = vld [vmem:[#allocation49_spill] sm:$0xff]  ;;  %v1417_v19 = vsel %vm301_vm0, %v1415_v16, %v1416_v12  ;;  %v1384_v28 = vsel %vm1383_vm3, %v5012_v63, %v1382_v24  ;;  %v3108_v16 = vld [vmem:[%s4868_s4 + $0x70] sm:$0xf] }
 0x841   : > { %v1478_v25 = vrot.slane %v5015_v61, 4  ;;  %v1419_v49 = vsel %vm1418_vm6, %v5013_v6, %v1417_v19 }
 0x842   : > { %v947_v29 = vadd.f32 %v945_v41, %v912_v58  ;;  %v5018_v41 = vld [vmem:[#allocation48_spill] sm:$0xff] }
 0x843   : > { %v1479_v58 = vsel %vm301_vm0, %v1477_v38, %v1478_v25  ;;  %v1557_v0 = vrot.slane %v5018_v41, 4  ;;  %v3109_v38 = vld [vmem:[%s4868_s4 + $0x74] sm:$0xf] }
 0x844   : > { %v982_v60 = vadd.f32 %v980_v34, %v947_v29  ;;  %v1481_v15 = vsel %vm1480_vm7, %v5016_v1, %v1479_v58  ;;  %v3110_v58 = vld [vmem:[%s4867_s3 + $0x3c] sm:$0xf] }
 0x845   : > { %v1559_v39 = vsel %vm301_vm0, %v1557_v0, %v1558_v33 }
 0x846   : > { %v1044_v8 = vadd.f32 %v1042_v11, %v982_v60  ;;  %v1561_v29 = vsel %vm1560_vm9, %v5018_v41, %v1559_v39 }
 0x848   : > { %v1111_v27 = vadd.f32 %v1109_v5, %v1044_v8  ;;  %v1770_v5 = vpop.permute.xlu0 %1769 }
 0x849   : > { %v1771_v51 = vrot.slane %v1770_v5, 4 }
 0x84a   : > { %v1200_v54 = vadd.f32 %v1198_v47, %v1111_v27 }
 0x84b   : > { %v1777_v27 = vmul.f32 %v4088_v59, %v1771_v51 }
 0x84c   : > { %v1289_v4 = vadd.f32 %v1287_v43, %v1200_v54 }
 0x84e   : > { %v1351_v14 = vadd.f32 %v1349_v10, %v1289_v4 }
 0x850   : > { %v1386_v48 = vadd.f32 %v1384_v28, %v1351_v14 }
 0x852   : > { %v1421_v34 = vadd.f32 %v1419_v49, %v1386_v48  ;;  %v5020_v49 = vld [vmem:[#allocation9_spill] sm:$0xff] }
 0x854   : > { %v1483_v56 = vadd.f32 %v1481_v15, %v1421_v34 }
 0x856   : > { %v1563_v3 = vadd.f32 %v1561_v29, %v1483_v56 }
 0x858   : > { %v1652_v53 = vadd.f32 %v4235_v36, %v1563_v3  ;;  %v1773_v36 = vsel %vm1772_vm14, %v1771_v51, %v1770_v5  ;;  %vm1931_vm14 = vcmask 506880  }
 0x859   : > { %v1776_v30 = vmul.f32 %v4094_v46, %v1773_v36  ;;  %v3113_v36 = vld [vmem:[%s4866_s2 + $0x18] sm:$0xf] }
 0x87d   : > { %v1734_v2 = vpop.permute.xlu2 %1733 }
 0x87e   : > { %v1736_v11 = vrot.slane %v1734_v2, 4 }
 0x885   : > { %v4411_v50 = vpop.permute.xlu2 %1759 }
 0x886   : > { %v1762_v13 = vrot.slane %v4411_v50, 4 }
 0x895   : > { %v1732_v62 = vpop.permute.xlu1 %1731 }
 0x896   : > { %v1735_v60 = vrot.slane %v1732_v62, 4 }
 0x898   : > { %v1737_v32 = vsel %vm301_vm0, %v1735_v60, %v1736_v11 }
 0x899   : > { %v1739_v9 = vsel %vm1738_vm13, %v1732_v62, %v1737_v32  ;;  %vm1903_vm13 = vcmask 539648  }
 0x89a   : > { %v1741_v37 = vadd.f32 %v1739_v9, %v1652_v53 }
 0x89d   : > { %v1758_v8 = vpop.permute.xlu1 %1757 }
 0x89e   : > { %v1761_v47 = vrot.slane %v1758_v8, 4 }
 0x8a0   : > { %v1763_v40 = vsel %vm301_vm0, %v1761_v47, %v1762_v13 }
 0x8a1   : > { %v1764_v57 = vsel %vm1197_vm1, %v1758_v8, %v1763_v40  ;;  %vm1800_vm1 = vcmask 605184   ;;  %v3111_v40 = vld [vmem:[%s4868_s4 + $0x78] sm:$0xf] }
 0x8a2   : > { %v4417_v22 = vadd.f32 %v1764_v57, %v4266_v20  ;;  %v5019_v20 = vld [vmem:[#allocation7_spill] sm:$0xff]  ;;  %v3112_v57 = vld [vmem:[%s4867_s3 + $0x40] sm:$0xf] }
 0x8a5   : > { %v1783_v63 = vpop.permute.xlu1 %1782 }
 0x8a6   : > { %v1787_v43 = vperm.slane %v1783_v63, %v3629_v55  ;;  %v3114_v63 = vld [vmem:[%s4868_s4 + $0x7c] sm:$0xf] }
 0x8a8   : > { %v1789_v44 = vmul.f32 %v1787_v43, %v1776_v30  ;;  %v1790_v6 = vmul.f32 %v1787_v43, %v1777_v27  ;;  %v3115_v30 = vld [vmem:[%s4867_s3 + $0x44] sm:$0xf]  ;;  %v3116_v27 = vld [vmem:[%s4866_s2 + $0x1c] sm:$0xf]  ;;  %v5021_v43 = vld [vmem:[#allocation8_spill] sm:$0xff] }
 0x8aa   : > { %1795 = vrot.lane.b32.xlu0 %v1790_v6, %s3405_s21  ;;  %1793 = vrot.lane.b32.xlu2 %v1789_v44, %s3405_s21  ;;  %s3419_s21 = smov 98  }
 0x8ad   : > { %v1805_v54 = vpop.permute.xlu1 %1804 }
 0x8ae   : > { %v1806_v17 = vrot.slane %v1805_v54, 4 }
 0x8b0   : > { %v1808_v12 = vsel %vm1807_vm15, %v1806_v17, %v1805_v54  ;;  %v1812_v10 = vmul.f32 %v4088_v59, %v1806_v17 }
 0x8b1   : > { %v1811_v25 = vmul.f32 %v4094_v46, %v1808_v12 }
 0x8b2   : > { %1817 = vperm.xlu2 %3282, %v3108_v16  }
 0x8ba   : > { %1838 = vrot.lane.b32.xlu2 %v5019_v20, %s3406_s17  ;;  %s3414_s17 = smov 70  }
 0x904   : > { %v1794_v24 = vpop.permute.xlu2 %1793 }
 0x905   : > { %v1797_v33 = vrot.slane %v1794_v24, 4 }
 0x90c   : > { %v1818_v61 = vpop.permute.xlu2 %1817 }
 0x90d   : > { %v1822_v4 = vperm.slane %v1818_v61, %v3629_v55 }
 0x90f   : > { %v1824_v19 = vmul.f32 %v1822_v4, %v1811_v25  ;;  %v1825_v1 = vmul.f32 %v1822_v4, %v1812_v10 }
 0x911   : > { %1830 = vrot.lane.b32.xlu1 %v1825_v1, %s4924_s8  ;;  %1828 = vrot.lane.b32.xlu0 %v1824_v19, %s4924_s8  ;;  %s5023_s8 = smov 96  }
 0x914   : > { %v1839_v39 = vpop.permute.xlu2 %1838 }
 0x915   : > { %v1840_v29 = vrot.slane %v1839_v39, 4 }
 0x917   : > { %v1842_v11 = vsel %vm1841_vm2, %v1840_v29, %v1839_v39  ;;  %v1846_v32 = vmul.f32 %v4088_v59, %v1840_v29  ;;  %vm2223_vm2 = vcmask 572416  }
 0x918   : > { %v1845_v53 = vmul.f32 %v4094_v46, %v1842_v11 }
 0x919   : > { %1851 = vperm.xlu0 %3280, %v3109_v38  }
 0x91c   : > { %v1796_v18 = vpop.permute.xlu0 %1795 }
 0x91d   : > { %v1798_v28 = vrot.slane %v1796_v18, 4 }
 0x91f   : > { %v1799_v41 = vsel %vm301_vm0, %v1797_v33, %v1798_v28 }
 0x920   : > { %v1801_v0 = vsel %vm1800_vm1, %v1794_v24, %v1799_v41  ;;  %vm2072_vm1 = vcmask 556032  }
 0x921   : > { %1877 = vperm.xlu0 %3280, %v3110_v58   ;;  %v1803_v14 = vadd.f32 %v1801_v0, %v1741_v37 }
 0x929   : > { %1900 = vrot.lane.b32.xlu0 %v5020_v49, %s3407_s15  ;;  %s3420_s15 = smov 100  }
 0x983   : > { %v1831_v48 = vpop.permute.xlu1 %1830  ;;  %v1829_v15 = vpop.permute.xlu0 %1828 }
 0x984   : > { %v1833_v2 = vrot.slane %v1831_v48, 4  ;;  %v1832_v34 = vrot.slane %v1829_v15, 4 }
 0x986   : > { %v1834_v56 = vsel %vm301_vm0, %v1832_v34, %v1833_v2 }
 0x987   : > { %v1835_v62 = vsel %vm1807_vm15, %v1829_v15, %v1834_v56 }
 0x988   : > { %v1837_v3 = vadd.f32 %v1835_v62, %v1803_v14 }
 0x98b   : > { %v1852_v60 = vpop.permute.xlu0 %1851 }
 0x98c   : > { %v1856_v9 = vperm.slane %v1852_v60, %v3629_v55 }
 0x98e   : > { %v1858_v37 = vmul.f32 %v1856_v9, %v1845_v53  ;;  %v1859_v5 = vmul.f32 %v1856_v9, %v1846_v32 }
 0x990   : > { %1864 = vrot.lane.b32.xlu2 %v1859_v5, %s4926_s19  ;;  %1862 = vrot.lane.b32.xlu1 %v1858_v37, %s4926_s19  ;;  %s4929_s19 = smov 61  }
 0x993   : > { %v1878_v8 = vpop.permute.xlu0 %1877 }
 0x994   : > { %v1882_v13 = vperm.slane %v1878_v8, %v3629_v55 }
 0x996   : > { %v1884_v47 = vmul.f32 %v1882_v13, %v1845_v53  ;;  %v1885_v51 = vmul.f32 %v1882_v13, %v1846_v32 }
 0x998   : > { %1890 = vrot.lane.b32.xlu2 %v1885_v51, %s4928_s23  ;;  %1888 = vrot.lane.b32.xlu1 %v1884_v47, %s4928_s23  ;;  %s5022_s23 = smov 79  }
 0x99b   : > { %v1901_v25 = vpop.permute.xlu0 %1900 }
 0x99c   : > { %v1902_v1 = vrot.slane %v1901_v25, 4 }
 0x99e   : > { %v1904_v28 = vsel %vm1903_vm13, %v1902_v1, %v1901_v25  ;;  %v1908_v0 = vmul.f32 %v4088_v59, %v1902_v1  ;;  %vm2291_vm13 = vcmask 662528  }
 0x99f   : > { %v1907_v41 = vmul.f32 %v4094_v46, %v1904_v28 }
 0x9a0   : > { %1913 = vperm.xlu1 %3281, %v3111_v40   ;;  %v4504_v40 = vld [vmem:[#allocation2 + $0x8] sm:$0xf] }
 0x9a8   : > { %1939 = vperm.xlu1 %3281, %v3112_v57  }
 0x9b0   : > { %1966 = vperm.xlu1 %3281, %v3113_v36   ;;  %v3118_v36 = vld [vmem:[%s4867_s3 + $0x48] sm:$0xf] }
 0x9b8   : > { %1993 = vperm.xlu1 %3281, %v3114_v63   ;;  %v5024_v63 = vld [vmem:[#allocation10_spill] sm:$0xff] }
 0x9c0   : > { %2019 = vperm.xlu1 %3281, %v3115_v30  }
 0x9c8   : > { %2046 = vperm.xlu1 %3281, %v3116_v27  }
 0x9d0   : > { %2069 = vrot.lane.b32.xlu1 %v5021_v43, %s3409_s13  ;;  %s3412_s13 = smov 69  }
 0x9ea   : > { %v1865_v44 = vpop.permute.xlu2 %1864 }
 0x9eb   : > { %v1867_v16 = vrot.slane %v1865_v44, 4 }
 0x9f2   : > { %v4473_v61 = vpop.permute.xlu2 %1890 }
 0x9f3   : > { %v1893_v4 = vrot.slane %v4473_v61, 4 }
 0xa02   : > { %v1863_v6 = vpop.permute.xlu1 %1862 }
 0xa03   : > { %v1866_v54 = vrot.slane %v1863_v6, 4 }
 0xa05   : > { %v1868_v24 = vsel %vm301_vm0, %v1866_v54, %v1867_v16 }
 0xa06   : > { %v1870_v17 = vsel %vm1869_vm5, %v1863_v6, %v1868_v24 }
 0xa07   : > { %v4471_v12 = vadd.f32 %v1870_v17, %v1837_v3 }
 0xa0a   : > { %v1889_v10 = vpop.permute.xlu1 %1888 }
 0xa0b   : > { %v1892_v19 = vrot.slane %v1889_v10, 4 }
 0xa0d   : > { %v1894_v38 = vsel %vm301_vm0, %v1892_v19, %v1893_v4 }
 0xa0e   : > { %v1895_v18 = vsel %vm1383_vm3, %v1889_v10, %v1894_v38  ;;  %v1768_v10 = vadd.f32 %v4411_v50, %v4254_v42 }
 0xa0f   : > { %v4479_v33 = vadd.f32 %v1895_v18, %v4417_v22 }
 0xa10   : > { %v1899_v19 = vadd.f32 %v4473_v61, %v1768_v10 }
 0xa12   : > { %v1914_v58 = vpop.permute.xlu1 %1913 }
 0xa13   : > { %v1918_v14 = vperm.slane %v1914_v58, %v3629_v55 }
 0xa15   : > { %v1920_v39 = vmul.f32 %v1918_v14, %v1907_v41  ;;  %v1921_v48 = vmul.f32 %v1918_v14, %v1908_v0 }
 0xa17   : > { %1926 = vrot.lane.b32.xlu0 %v1921_v48, %s3410_s18  ;;  %1924 = vrot.lane.b32.xlu2 %v1920_v39, %s3410_s18 }
 0xa1a   : > { %v1940_v15 = vpop.permute.xlu1 %1939 }
 0xa1b   : > { %v1944_v2 = vperm.slane %v1940_v15, %v3629_v55 }
 0xa1d   : > { %v1946_v22 = vmul.f32 %v1944_v2, %v1907_v41  ;;  %v1947_v34 = vmul.f32 %v1944_v2, %v1908_v0 }
 0xa1f   : > { %1952 = vrot.lane.b32.xlu0 %v1947_v34, %s5022_s23  ;;  %1950 = vrot.lane.b32.xlu2 %v1946_v22, %s5022_s23  ;;  %s5025_s23 = smov 77  }
 0xa22   : > { %v1967_v29 = vpop.permute.xlu1 %1966 }
 0xa23   : > { %v1971_v56 = vperm.slane %v1967_v29, %v3629_v55  ;;  %v4534_v29 = vld [vmem:[#allocation2] sm:$0xff] }
 0xa25   : > { %v1973_v62 = vmul.f32 %v1971_v56, %v1907_v41  ;;  %v1974_v3 = vmul.f32 %v1971_v56, %v1908_v0 }
 0xa27   : > { %1979 = vrot.lane.b32.xlu0 %v1974_v3, %s5023_s8  ;;  %1977 = vrot.lane.b32.xlu2 %v1973_v62, %s5023_s8 }
 0xa2a   : > { %v1994_v11 = vpop.permute.xlu1 %1993 }
 0xa2b   : > { %v1998_v60 = vperm.slane %v1994_v11, %v3629_v55 }
 0xa2d   : > { %v2000_v53 = vmul.f32 %v4094_v46, %v1998_v60  ;;  %v2001_v32 = vmul.f32 %v4088_v59, %v1998_v60 }
 0xa2f   : > { %2006 = vrot.lane.b32.xlu0 %v2001_v32, %s4929_s19  ;;  %2004 = vrot.lane.b32.xlu2 %v2000_v53, %s4929_s19  ;;  %s3426_s19 = smov 101  }
 0xa32   : > { %v2020_v9 = vpop.permute.xlu1 %2019 }
 0xa33   : > { %v2024_v37 = vperm.slane %v2020_v9, %v3629_v55 }
 0xa35   : > { %v2026_v5 = vmul.f32 %v4094_v46, %v2024_v37  ;;  %v2027_v8 = vmul.f32 %v4088_v59, %v2024_v37  ;;  %v3117_v59 = vld [vmem:[%s4868_s4 + $0x80] sm:$0xf] }
 0xa37   : > { %2032 = vrot.lane.b32.xlu0 %v2027_v8, %s3398_s14  ;;  %2030 = vrot.lane.b32.xlu2 %v2026_v5, %s3398_s14  ;;  %s3417_s14 = smov 85  }
 0xa3a   : > { %v2047_v13 = vpop.permute.xlu1 %2046 }
 0xa3b   : > { %v2051_v47 = vperm.slane %v2047_v13, %v3629_v55 }
 0xa3d   : > { %v2053_v51 = vmul.f32 %v4094_v46, %v2051_v47  ;;  %v2054_v57 = vmul.f32 %v4504_v40, %v2051_v47  ;;  %v3119_v46 = vld [vmem:[%s4866_s2 + $0x20] sm:$0xf] }
 0xa3f   : > { %2059 = vrot.lane.b32.xlu0 %v2054_v57, %s4972_s16  ;;  %2057 = vrot.lane.b32.xlu2 %v2053_v51, %s4972_s16  ;;  %s3413_s16 = smov 60  }
 0xa42   : > { %v2070_v39 = vpop.permute.xlu1 %2069 }
 0xa43   : > { %v2071_v42 = vrot.slane %v2070_v39, 4 }
 0xa45   : > { %v2073_v22 = vsel %vm2072_vm1, %v2071_v42, %v2070_v39  ;;  %v2077_v56 = vmul.f32 %v4504_v40, %v2071_v42  ;;  %vm2353_vm1 = vcmask 670720  }
 0xa47   : > { %2082 = vperm.xlu2 %3282, %v3117_v59  }
 0xa4f   : > { %2108 = vperm.xlu2 %3282, %v3118_v36  }
 0xa57   : > { %2135 = vperm.xlu2 %3282, %v3119_v46  }
 0xa5f   : > { %2158 = vrot.lane.b32.xlu2 %v5024_v63, %s3412_s13  ;;  %s3418_s13 = smov 86  }
 0xa71   : > { %v1925_v30 = vpop.permute.xlu2 %1924 }
 0xa72   : > { %v1928_v54 = vrot.slane %v1925_v30, 4 }
 0xa79   : > { %v1951_v27 = vpop.permute.xlu2 %1950 }
 0xa7a   : > { %v1954_v18 = vrot.slane %v1951_v27, 4 }
 0xa81   : > { %v1978_v44 = vpop.permute.xlu2 %1977 }
 0xa82   : > { %v1981_v50 = vrot.slane %v1978_v44, 4 }
 0xa89   : > { %v1927_v6 = vpop.permute.xlu0 %1926  ;;  %v2005_v16 = vpop.permute.xlu2 %2004 }
 0xa8a   : > { %v1929_v24 = vrot.slane %v1927_v6, 4  ;;  %v2008_v11 = vrot.slane %v2005_v16, 4 }
 0xa8c   : > { %v1930_v17 = vsel %vm301_vm0, %v1928_v54, %v1929_v24 }
 0xa8d   : > { %v1932_v25 = vsel %vm1931_vm14, %v1925_v30, %v1930_v17 }
 0xa8e   : > { %v1934_v4 = vadd.f32 %v1932_v25, %v4471_v12 }
 0xa91   : > { %v1953_v1 = vpop.permute.xlu0 %1952  ;;  %v2031_v38 = vpop.permute.xlu2 %2030 }
 0xa92   : > { %v1955_v28 = vrot.slane %v1953_v1, 4  ;;  %v1961_v58 = vadd.f32 %v1953_v1, %v1899_v19  ;;  %v2034_v47 = vrot.slane %v2031_v38, 4 }
 0xa94   : > { %v1956_v41 = vsel %vm301_vm0, %v1954_v18, %v1955_v28  ;;  %v3121_v18 = vld [vmem:[%s4867_s3 + $0x4c] sm:$0xf]  ;;  %v5026_v28 = vld [vmem:[#allocation11_spill] sm:$0xff] }
 0xa95   : > { %v1957_v0 = vsel %vm1418_vm6, %v1951_v27, %v1956_v41  ;;  %vm2011_vm6 = vcmask 498688  }
 0xa96   : > { %v1960_v14 = vadd.f32 %v1957_v0, %v4479_v33  ;;  %v2076_v33 = vmul.f32 %v4534_v29, %v2073_v22  ;;  %v5027_v0 = vld [vmem:[#allocation31_spill] sm:$0xff] }
 0xa99   : > { %v4528_v48 = vpop.permute.xlu0 %1979  ;;  %v2058_v15 = vpop.permute.xlu2 %2057 }
 0xa9a   : > { %v1982_v12 = vrot.slane %v4528_v48, 4  ;;  %v2061_v54 = vrot.slane %v2058_v15, 4 }
 0xa9c   : > { %v1983_v61 = vsel %vm301_vm0, %v1981_v50, %v1982_v12 }
 0xa9d   : > { %v1984_v2 = vsel %vm944_vm8, %v1978_v44, %v1983_v61 }
 0xa9e   : > { %v1987_v34 = vadd.f32 %v1984_v2, %v4278_v7 }
 0xaa1   : > { %v2007_v62 = vpop.permute.xlu0 %2006  ;;  %v2083_v3 = vpop.permute.xlu2 %2082 }
 0xaa2   : > { %v2009_v60 = vrot.slane %v2007_v62, 4  ;;  %v2087_v53 = vperm.slane %v2083_v3, %v3629_v55 }
 0xaa4   : > { %v2010_v32 = vsel %vm301_vm0, %v2008_v11, %v2009_v60  ;;  %v2089_v9 = vmul.f32 %v2087_v53, %v2076_v33  ;;  %v2090_v37 = vmul.f32 %v2087_v53, %v2077_v56 }
 0xaa5   : > { %v2012_v5 = vsel %vm2011_vm6, %v2005_v16, %v2010_v32 }
 0xaa6   : > { %2095 = vrot.lane.b32.xlu1 %v2090_v37, %s3413_s16  ;;  %2093 = vrot.lane.b32.xlu0 %v2089_v9, %s3413_s16  ;;  %v2014_v7 = vadd.f32 %v2012_v5, %v1934_v4 }
 0xaa9   : > { %v2033_v8 = vpop.permute.xlu0 %2032  ;;  %v2109_v13 = vpop.permute.xlu2 %2108 }
 0xaaa   : > { %v2035_v51 = vrot.slane %v2033_v8, 4  ;;  %v2041_v57 = vadd.f32 %v2033_v8, %v1961_v58  ;;  %v2113_v59 = vperm.slane %v2109_v13, %v3629_v55 }
 0xaac   : > { %v2036_v36 = vsel %vm301_vm0, %v2034_v47, %v2035_v51  ;;  %v2115_v46 = vmul.f32 %v2113_v59, %v2076_v33  ;;  %v2116_v30 = vmul.f32 %v2113_v59, %v2077_v56 }
 0xaad   : > { %v2037_v27 = vsel %vm1480_vm7, %v2031_v38, %v2036_v36  ;;  %v3120_v38 = vld [vmem:[%s4868_s4 + $0x84] sm:$0xf]  ;;  %vm2161_vm7 = vcmask 564224  }
 0xaae   : > { %2121 = vrot.lane.b32.xlu1 %v2116_v30, %s5025_s23  ;;  %2119 = vrot.lane.b32.xlu0 %v2115_v46, %s5025_s23  ;;  %v2040_v44 = vadd.f32 %v2037_v27, %v1960_v14  ;;  %v1083_v14 = vmul.f32 %v4244_v23, %v5027_v0  ;;  %s5033_s23 = smov 32  }
 0xab0   : > { %v1165_v42 = vadd.f32 %v3983_v31, %v1083_v14 }
 0xab1   : > { %v2060_v6 = vpop.permute.xlu0 %2059  ;;  %v2136_v16 = vpop.permute.xlu2 %2135 }
 0xab2   : > { %v2062_v24 = vrot.slane %v2060_v6, 4  ;;  %v2140_v17 = vperm.slane %v2136_v16, %v3629_v55  ;;  %v1254_v61 = vadd.f32 %v4006_v45, %v1165_v42 }
 0xab4   : > { %v2063_v25 = vsel %vm301_vm0, %v2061_v54, %v2062_v24  ;;  %v2142_v10 = vmul.f32 %v2140_v17, %v2076_v33  ;;  %v2143_v4 = vmul.f32 %v2140_v17, %v2077_v56  ;;  %v1537_v22 = vadd.f32 %v4153_v26, %v1254_v61  ;;  %v3122_v54 = vld [vmem:[%s4868_s4 + $0x88] sm:$0xf]  ;;  %v3127_v24 = vld [vmem:[%s4867_s3 + $0x54] sm:$0xf] }
 0xab5   : > { %v2064_v19 = vsel %vm979_vm11, %v2058_v15, %v2063_v25  ;;  %vm2100_vm11 = vcmask 490496   ;;  %v3126_v17 = vld [vmem:[%s4868_s4 + $0x94] sm:$0xf]  ;;  %v3134_v25 = vld [vmem:[%s4868_s4 + $0xa4] sm:$0xf] }
 0xab6   : > { %2148 = vrot.lane.b32.xlu1 %v2143_v4, %s4974_s29  ;;  %2146 = vrot.lane.b32.xlu0 %v2142_v10, %s4974_s29  ;;  %v2067_v1 = vadd.f32 %v2064_v19, %v1987_v34  ;;  %v1617_v56 = vadd.f32 %v4200_v21, %v1537_v22  ;;  %v3139_v10 = vld [vmem:[%s4868_s4 + $0xb8] sm:$0xf] }
 0xab8   : > { %v1706_v31 = vadd.f32 %v4271_v52, %v1617_v56 }
 0xab9   : > { %v2159_v26 = vpop.permute.xlu2 %2158 }
 0xaba   : > { %v1988_v45 = vadd.f32 %v4528_v48, %v1706_v31  ;;  %v2160_v8 = vrot.slane %v2159_v26, 4  ;;  %v3125_v31 = vld [vmem:[%s4867_s3 + $0x50] sm:$0xf] }
 0xabc   : > { %v2068_v32 = vadd.f32 %v2060_v6, %v1988_v45  ;;  %v2162_v51 = vsel %vm2161_vm7, %v2160_v8, %v2159_v26  ;;  %v2166_v59 = vmul.f32 %v4504_v40, %v2160_v8  ;;  %v3131_v45 = vld [vmem:[%s4867_s3 + $0x5c] sm:$0xf]  ;;  %v3132_v26 = vld [vmem:[%s4868_s4 + $0xa0] sm:$0xf]  ;;  %vm2530_vm7 = vcmask 695296  }
 0xabe   : > { %2171 = vperm.xlu0 %3280, %v3120_v38  }
 0xac6   : > { %2197 = vperm.xlu0 %3280, %v3121_v18  }
 0xace   : > { %2220 = vrot.lane.b32.xlu0 %v5026_v28, %s3414_s17  ;;  %s5028_s17 = smov 80  }
 0xb18   : > { %v2096_v58 = vpop.permute.xlu1 %2095  ;;  %v2094_v41 = vpop.permute.xlu0 %2093 }
 0xb19   : > { %v2098_v39 = vrot.slane %v2096_v58, 4  ;;  %v2097_v15 = vrot.slane %v2094_v41, 4 }
 0xb1b   : > { %v2099_v50 = vsel %vm301_vm0, %v2097_v15, %v2098_v39 }
 0xb1c   : > { %v2101_v12 = vsel %vm2100_vm11, %v2094_v41, %v2099_v50 }
 0xb1d   : > { %v4566_v2 = vadd.f32 %v2101_v12, %v2014_v7 }
 0xb20   : > { %v2122_v34 = vpop.permute.xlu1 %2121  ;;  %v2120_v33 = vpop.permute.xlu0 %2119 }
 0xb21   : > { %v2124_v23 = vrot.slane %v2122_v34, 4  ;;  %v4570_v62 = vadd.f32 %v2122_v34, %v2041_v57  ;;  %v2123_v3 = vrot.slane %v2120_v33, 4  ;;  %v2165_v57 = vmul.f32 %v4534_v29, %v2162_v51 }
 0xb23   : > { %v2125_v11 = vsel %vm301_vm0, %v2123_v3, %v2124_v23 }
 0xb24   : > { %v2126_v60 = vsel %vm1560_vm9, %v2120_v33, %v2125_v11  ;;  %vm2189_vm9 = vcmask 482304   ;;  %v3129_v11 = vld [vmem:[%s4867_s3 + $0x58] sm:$0xf] }
 0xb25   : > { %v4576_v53 = vadd.f32 %v2126_v60, %v2040_v44  ;;  %v3133_v60 = vld [vmem:[%s4867_s3 + $0x60] sm:$0xf] }
 0xb28   : > { %v2149_v9 = vpop.permute.xlu1 %2148  ;;  %v2147_v37 = vpop.permute.xlu0 %2146 }
 0xb29   : > { %v2151_v5 = vrot.slane %v2149_v9, 4  ;;  %v2157_v21 = vadd.f32 %v2149_v9, %v2068_v32  ;;  %v2150_v7 = vrot.slane %v2147_v37, 4  ;;  %v3128_v32 = vld [vmem:[%s4868_s4 + $0x98] sm:$0xf]  ;;  %v3135_v9 = vld [vmem:[%s4868_s4 + $0xa8] sm:$0xf] }
 0xb2b   : > { %2862 = vst [vmem:[#allocation1 + $0x10] ss:$2 sm:$0xff] %v2157_v21  ;;  %v2152_v52 = vsel %vm301_vm0, %v2150_v7, %v2151_v5  ;;  %v3136_v5 = vld [vmem:[%s4868_s4 + $0xac] sm:$0xf] }
 0xb2c   : > { %v2153_v13 = vsel %vm1041_vm12, %v2147_v37, %v2152_v52  ;;  %v3137_v37 = vld [vmem:[%s4868_s4 + $0xb0] sm:$0xf] }
 0xb2d   : > { %v2156_v47 = vadd.f32 %v2153_v13, %v2067_v1 }
 0xb2f   : > { %2860 = vst [vmem:[#allocation1] ss:$2 sm:$0xff] %v2156_v47 }
 0xb30   : > { %v2172_v48 = vpop.permute.xlu0 %2171 }
 0xb31   : > { %v2176_v36 = vperm.slane %v2172_v48, %v3629_v55 }
 0xb33   : > { %v2178_v46 = vmul.f32 %v2176_v36, %v2165_v57  ;;  %v2179_v30 = vmul.f32 %v2176_v36, %v2166_v59 }
 0xb35   : > { %2184 = vrot.lane.b32.xlu2 %v2179_v30, %s3415_s9  ;;  %2182 = vrot.lane.b32.xlu1 %v2178_v46, %s3415_s9  ;;  %s3422_s9 = smov 58  }
 0xb38   : > { %v2198_v27 = vpop.permute.xlu0 %2197 }
 0xb39   : > { %v2202_v44 = vperm.slane %v2198_v27, %v3629_v55 }
 0xb3b   : > { %v2204_v6 = vmul.f32 %v2202_v44, %v2165_v57  ;;  %v2205_v16 = vmul.f32 %v2202_v44, %v2166_v59 }
 0xb3d   : > { %2210 = vrot.lane.b32.xlu2 %v2205_v16, %s3401_s20  ;;  %2208 = vrot.lane.b32.xlu1 %v2204_v6, %s3401_s20  ;;  %s3421_s20 = smov 102  }
 0xb40   : > { %v2221_v14 = vpop.permute.xlu0 %2220 }
 0xb41   : > { %v2222_v50 = vrot.slane %v2221_v14, 4 }
 0xb43   : > { %v2224_v22 = vsel %vm2223_vm2, %v2222_v50, %v2221_v14  ;;  %v2228_v33 = vmul.f32 %v4504_v40, %v2222_v50  ;;  %vm2592_vm2 = vcmask 703488  }
 0xb45   : > { %2233 = vperm.xlu1 %3281, %v3122_v54  }
 0xb4d   : > { %2288 = vrot.lane.b32.xlu1 %v5019_v20, %s3416_s22  ;;  %s3423_s22 = smov 82  }
 0xb55   : > { %2389 = vperm.xlu1 %3281, %v3127_v24  }
 0xb5d   : > { %2527 = vrot.lane.b32.xlu1 %v5024_v63, %s3417_s14  ;;  %s3424_s14 = smov 84  }
 0xb65   : > { %2255 = vrot.lane.b32.xlu1 %v3588_v35, %s5028_s17  ;;  %s5032_s17 = smov 48  }
 0xb6d   : > { %2363 = vperm.xlu1 %3281, %v3126_v17  }
 0xb75   : > { %2589 = vrot.lane.b32.xlu1 %v5026_v28, %s3418_s13  ;;  %s5030_s13 = smov 64  }
 0xb7d   : > { %2602 = vperm.xlu1 %3281, %v3134_v25  }
 0xb85   : > { %2692 = vrot.lane.b32.xlu1 %v5020_v49, %s3419_s21  ;;  %s3435_s21 = smov 28  }
 0xb8d   : > { %2753 = vrot.lane.b32.xlu1 %v5021_v43, %s3420_s15  ;;  %s3436_s15 = smov 29  }
 0xb8f   : > { %v2185_v4 = vpop.permute.xlu2 %2184 }
 0xb90   : > { %v2187_v1 = vrot.slane %v2185_v4, 4 }
 0xb95   : > { %2766 = vperm.xlu1 %3281, %v3139_v10  }
 0xb97   : > { %v4613_v0 = vpop.permute.xlu2 %2210 }
 0xb98   : > { %v2213_v15 = vrot.slane %v4613_v0, 4 }
 0xb9d   : > { %2823 = vrot.lane.b32.xlu1 %v5026_v28, %s3421_s20  ;;  %s3429_s20 = smov 45  }
 0xba7   : > { %v2183_v19 = vpop.permute.xlu1 %2182 }
 0xba8   : > { %v2186_v38 = vrot.slane %v2183_v19, 4 }
 0xbaa   : > { %v2188_v18 = vsel %vm301_vm0, %v2186_v38, %v2187_v1 }
 0xbab   : > { %v2190_v58 = vsel %vm2189_vm9, %v2183_v19, %v2188_v18  ;;  %vm2468_vm9 = vcmask 687104  }
 0xbac   : > { %v4611_v41 = vadd.f32 %v2190_v58, %v4566_v2  ;;  %v2227_v2 = vmul.f32 %v4534_v29, %v2224_v22 }
 0xbaf   : > { %v2209_v39 = vpop.permute.xlu1 %2208 }
 0xbb0   : > { %v2212_v42 = vrot.slane %v2209_v39, 4 }
 0xbb2   : > { %v2214_v28 = vsel %vm301_vm0, %v2212_v42, %v2213_v15 }
 0xbb3   : > { %v2215_v12 = vsel %vm1649_vm10, %v2209_v39, %v2214_v28  ;;  %vm2251_vm10 = vcmask 474112  }
 0xbb4   : > { %v4619_v61 = vadd.f32 %v2215_v12, %v4576_v53  ;;  %v3123_v53 = vld [vmem:[%s4868_s4 + $0x8c] sm:$0xf] }
 0xbb7   : > { %v2234_v34 = vpop.permute.xlu1 %2233 }
 0xbb8   : > { %v2238_v56 = vperm.slane %v2234_v34, %v3629_v55  ;;  %v3141_v34 = vld [vmem:[%s4868_s4 + $0xc0] sm:$0xf] }
 0xbba   : > { %v2240_v23 = vmul.f32 %v2238_v56, %v2227_v2  ;;  %v2241_v3 = vmul.f32 %v2238_v56, %v2228_v33 }
 0xbbc   : > { %2246 = vrot.lane.b32.xlu0 %v2241_v3, %s3422_s9  ;;  %2244 = vrot.lane.b32.xlu2 %v2240_v23, %s3422_s9  ;;  %s5029_s9 = smov 63  }
 0xbbf   : > { %v2289_v21 = vpop.permute.xlu1 %2288 }
 0xbc4   : > { %2327 = vperm.xlu0 %3280, %v3125_v31   ;;  %2350 = vrot.lane.b32.xlu2 %v5020_v49, %s3423_s22  ;;  %v3124_v49 = vld [vmem:[%s4868_s4 + $0x90] sm:$0xf]  ;;  %s3425_s22 = smov 97  }
 0xbc7   : > { %v2390_v7 = vpop.permute.xlu1 %2389 }
 0xbc8   : > { %v2394_v13 = vperm.slane %v2390_v7, %v3629_v55 }
 0xbcc   : > { %2442 = vperm.xlu0 %3280, %v3129_v11   ;;  %2465 = vrot.lane.b32.xlu2 %v5021_v43, %s3424_s14  ;;  %v3130_v43 = vld [vmem:[%s4868_s4 + $0x9c] sm:$0xf]  ;;  %s5031_s14 = smov 61  }
 0xbcf   : > { %v2528_v4 = vpop.permute.xlu1 %2527 }
 0xbd0   : > { %v2529_v18 = vrot.slane %v2528_v4, 4 }
 0xbd2   : > { %v2531_v15 = vsel %vm2530_vm7, %v2529_v18, %v2528_v4  ;;  %vm2558_vm7 = vcmask 351232  }
 0xbd3   : > { %v2534_v28 = vmul.f32 %v4534_v29, %v2531_v15 }
 0xbd4   : > { %2566 = vperm.xlu0 %3280, %v3133_v60   ;;  %2504 = vperm.xlu2 %3282, %v3131_v45  }
 0xbd7   : > { %v2256_v42 = vpop.permute.xlu1 %2255 }
 0xbd8   : > { %v2257_v23 = vrot.slane %v2256_v42, 4 }
 0xbda   : > { %v2262_v60 = vmul.f32 %v4504_v40, %v2257_v23 }
 0xbdc   : > { %2301 = vperm.xlu0 %3280, %v3124_v49   ;;  %2267 = vperm.xlu2 %3282, %v3123_v53  }
 0xbdf   : > { %v2364_v49 = vpop.permute.xlu1 %2363 }
 0xbe4   : > { %2478 = vperm.xlu0 %3280, %v3130_v43   ;;  %2416 = vperm.xlu2 %3282, %v3128_v32  }
 0xbec   : > { %2624 = vrot.lane.b32.xlu0 %v3588_v35, %s5023_s8  ;;  %2540 = vperm.xlu2 %3282, %v3132_v26   ;;  %v3138_v35 = vld [vmem:[%s4868_s4 + $0xb4] sm:$0xf]  ;;  %s3428_s8 = smov 47  }
 0xbf4   : > { %2636 = vperm.xlu0 %3280, %v3135_v9   ;;  %2657 = vrot.lane.b32.xlu2 %v5019_v20, %s3425_s22  ;;  %s3434_s22 = smov 30  }
 0xbfc   : > { %2705 = vperm.xlu0 %3280, %v3137_v37   ;;  %2670 = vperm.xlu2 %3282, %v3136_v5   ;;  %v2258_v5 = vsel %vm1383_vm3, %v2257_v23, %v2256_v42  ;;  %vm2660_vm3 = vcmask 793600  }
 0xc04   : > { %2788 = vrot.lane.b32.xlu0 %v5024_v63, %s3426_s19  ;;  %2731 = vperm.xlu2 %3282, %v3138_v35   ;;  %v2290_v63 = vrot.slane %v2289_v21, 4  ;;  %v2535_v35 = vmul.f32 %v4504_v40, %v2529_v18  ;;  %s3431_s19 = smov 44  }
 0xc06   : > { %v2292_v27 = vsel %vm2291_vm13, %v2290_v63, %v2289_v21  ;;  %v4683_v54 = vmul.f32 %v4504_v40, %v2290_v63  ;;  %v2368_v21 = vperm.slane %v2364_v49, %v3629_v55  ;;  %vm2695_vm13 = vcmask 801792  }
 0xc07   : > { %v4680_v16 = vmul.f32 %v4534_v29, %v2292_v27 }
 0xc16   : > { %v2245_v20 = vpop.permute.xlu2 %2244 }
 0xc17   : > { %v2248_v57 = vrot.slane %v2245_v20, 4 }
 0xc1e   : > { %v2351_v8 = vpop.permute.xlu2 %2350 }
 0xc1f   : > { %v2352_v52 = vrot.slane %v2351_v8, 4 }
 0xc21   : > { %v4671_v47 = vmul.f32 %v4504_v40, %v2352_v52  ;;  %v2354_v10 = vsel %vm2353_vm1, %v2352_v52, %v2351_v8  ;;  %v2590_v52 = vpop.permute.xlu1 %2589  ;;  %vm2826_vm1 = vcmask 834560  }
 0xc22   : > { %v2357_v19 = vmul.f32 %v4534_v29, %v2354_v10  ;;  %v2591_v4 = vrot.slane %v2590_v52, 4 }
 0xc23   : > { %v2397_v51 = vmul.f32 %v2394_v13, %v4671_v47 }
 0xc24   : > { %v2396_v39 = vmul.f32 %v2394_v13, %v2357_v19  ;;  %v2370_v7 = vmul.f32 %v2368_v21, %v2357_v19  ;;  %v2593_v15 = vsel %vm2592_vm2, %v2591_v4, %v2590_v52  ;;  %vm2688_vm2 = vcmask 252928  }
 0xc25   : > { %2402 = vrot.lane.b32.xlu1 %v2397_v51, %s5029_s9 }
 0xc26   : > { %v2466_v44 = vpop.permute.xlu2 %2465 }
 0xc27   : > { %v2467_v22 = vrot.slane %v2466_v44, 4 }
 0xc29   : > { %v2469_v3 = vsel %vm2468_vm9, %v2467_v22, %v2466_v44  ;;  %v2473_v53 = vmul.f32 %v4504_v40, %v2467_v22  ;;  %v2603_v27 = vpop.permute.xlu1 %2602  ;;  %vm2620_vm9 = vcmask 343040  }
 0xc2a   : > { %v2472_v45 = vmul.f32 %v4534_v29, %v2469_v3 }
 0xc2e   : > { %v2247_v48 = vpop.permute.xlu0 %2246  ;;  %v2505_v58 = vpop.permute.xlu2 %2504 }
 0xc2f   : > { %v2249_v59 = vrot.slane %v2247_v48, 4  ;;  %v2509_v31 = vperm.slane %v2505_v58, %v3629_v55 }
 0xc31   : > { %v2250_v36 = vsel %vm301_vm0, %v2248_v57, %v2249_v59  ;;  %v2511_v43 = vmul.f32 %v2509_v31, %v2472_v45  ;;  %v2512_v26 = vmul.f32 %v2509_v31, %v2473_v53  ;;  %v2693_v19 = vpop.permute.xlu1 %2692 }
 0xc32   : > { %v2252_v46 = vsel %vm2251_vm10, %v2245_v20, %v2250_v36  ;;  %v2261_v20 = vmul.f32 %v4534_v29, %v2258_v5  ;;  %v2694_v23 = vrot.slane %v2693_v19, 4  ;;  %vm2756_vm10 = vcmask 818176  }
 0xc33   : > { %v4677_v30 = vadd.f32 %v2252_v46, %v4611_v41  ;;  %v3140_v41 = vld [vmem:[%s4868_s4 + $0xbc] sm:$0xf] }
 0xc34   : > { %v2696_v5 = vsel %vm2695_vm13, %v2694_v23, %v2693_v19  ;;  %vm2749_vm13 = vcmask 236544  }
 0xc36   : > { %v2328_v6 = vpop.permute.xlu0 %2327  ;;  %v2268_v33 = vpop.permute.xlu2 %2267 }
 0xc37   : > { %v2332_v24 = vperm.slane %v2328_v6, %v3629_v55  ;;  %v2272_v11 = vperm.slane %v2268_v33, %v3629_v55 }
 0xc39   : > { %v2334_v17 = vmul.f32 %v2332_v24, %v4680_v16  ;;  %v2335_v25 = vmul.f32 %v2332_v24, %v4683_v54  ;;  %v2275_v32 = vmul.f32 %v2272_v11, %v2262_v60  ;;  %v2274_v13 = vmul.f32 %v2272_v11, %v2261_v20 }
 0xc3a   : > { %v2700_v60 = vmul.f32 %v4504_v40, %v2694_v23 }
 0xc3b   : > { %2340 = vrot.lane.b32.xlu0 %v2335_v25, %s5030_s13  ;;  %2338 = vrot.lane.b32.xlu2 %v2334_v17, %s5030_s13  ;;  %v2371_v17 = vmul.f32 %v2368_v21, %v4671_v47  ;;  %s3433_s13 = smov 31  }
 0xc3e   : > { %v2443_v1 = vpop.permute.xlu0 %2442  ;;  %v2417_v37 = vpop.permute.xlu2 %2416 }
 0xc3f   : > { %v2447_v38 = vperm.slane %v2443_v1, %v3629_v55  ;;  %v2421_v48 = vperm.slane %v2417_v37, %v3629_v55  ;;  %v2597_v1 = vmul.f32 %v4504_v40, %v2591_v4 }
 0xc41   : > { %v2450_v14 = vmul.f32 %v4504_v40, %v2447_v38  ;;  %v2449_v56 = vmul.f32 %v4534_v29, %v2447_v38  ;;  %v2424_v63 = vmul.f32 %v4504_v40, %v2421_v48  ;;  %v2423_v10 = vmul.f32 %v4534_v29, %v2421_v48 }
 0xc43   : > { %2801 = vperm.xlu2 %3282, %v3140_v41   ;;  %2455 = vrot.lane.b32.xlu1 %v2450_v14, %s3410_s18 }
 0xc44   : > { %2400 = vrot.lane.b32.xlu0 %v2396_v39, %s5029_s9  ;;  %s3432_s9 = smov 42  }
 0xc46   : > { %v2567_v50 = vpop.permute.xlu0 %2566  ;;  %v2541_v59 = vpop.permute.xlu2 %2540 }
 0xc47   : > { %v2571_v12 = vperm.slane %v2567_v50, %v3629_v55  ;;  %v2545_v44 = vperm.slane %v2541_v59, %v3629_v55 }
 0xc49   : > { %v2573_v2 = vmul.f32 %v2571_v12, %v2534_v28  ;;  %v2574_v8 = vmul.f32 %v2571_v12, %v2535_v35  ;;  %v2547_v25 = vmul.f32 %v2545_v44, %v2534_v28  ;;  %v2596_v28 = vmul.f32 %v4534_v29, %v2593_v15  ;;  %v2754_v12 = vpop.permute.xlu1 %2753 }
 0xc4a   : > { %v2755_v49 = vrot.slane %v2754_v12, 4 }
 0xc4b   : > { %2836 = vperm.xlu2 %3282, %v3141_v34   ;;  %2577 = vrot.lane.b32.xlu1 %v2573_v2, %s3413_s16  ;;  %v2548_v34 = vmul.f32 %v2545_v44, %v2535_v35 }
 0xc4c   : > { %2453 = vrot.lane.b32.xlu0 %v2449_v56, %s3410_s18  ;;  %s3427_s18 = smov 46   ;;  %v2757_v37 = vsel %vm2756_vm10, %v2755_v49, %v2754_v12  ;;  %vm2723_vm10 = vcmask 244736  }
 0xc4d   : > { %v2760_v21 = vmul.f32 %v4534_v29, %v2757_v37 }
 0xc4e   : > { %v2302_v9 = vpop.permute.xlu0 %2301  ;;  %v4726_v24 = vpop.permute.xlu2 %2657 }
 0xc4f   : > { %v2306_v57 = vperm.slane %v2302_v9, %v3629_v55  ;;  %v2659_v38 = vrot.slane %v4726_v24, 4 }
 0xc51   : > { %v2308_v36 = vmul.f32 %v2306_v57, %v4680_v16  ;;  %v2309_v46 = vmul.f32 %v2306_v57, %v4683_v54  ;;  %v2607_v16 = vperm.slane %v2603_v27, %v3629_v55  ;;  %v2661_v39 = vsel %vm2660_vm3, %v2659_v38, %v4726_v24 }
 0xc52   : > { %v2664_v50 = vmul.f32 %v4534_v29, %v2661_v39  ;;  %v2665_v20 = vmul.f32 %v4504_v40, %v2659_v38  ;;  %v2864_v39 = vld.sshfl [vmem:[#allocation1 + $0x8] sm:$0xff pattern:$0x75316420]  ;;  %vm5036_vm3 = vcmask 261120  }
 0xc53   : > { %2515 = vrot.lane.b32.xlu2 %v2511_v43, %s5031_s14  ;;  %2280 = vrot.lane.b32.xlu1 %v2275_v32, %s5032_s17  ;;  %v2610_v47 = vmul.f32 %v2607_v16, %v2597_v1  ;;  %v2609_v33 = vmul.f32 %v2607_v16, %v2596_v28  ;;  %v2865_v28 = vld.sshfl [vmem:[#allocation1 + $0x10] sm:$0xff pattern:$0x75316420] }
 0xc54   : > { %2517 = vrot.lane.b32.xlu0 %v2512_v26, %s5031_s14  ;;  %v2767_v26 = vpop.permute.xlu1 %2766  ;;  %s3437_s14 = smov 27  }
 0xc55   : > { %v2771_v35 = vperm.slane %v2767_v26, %v3629_v55 }
 0xc56   : > { %v2479_v51 = vpop.permute.xlu0 %2478  ;;  %v2671_v14 = vpop.permute.xlu2 %2670 }
 0xc57   : > { %v2483_v54 = vperm.slane %v2479_v51, %v3629_v55  ;;  %v2675_v42 = vperm.slane %v2671_v14, %v3629_v55 }
 0xc59   : > { %v2485_v58 = vmul.f32 %v2483_v54, %v2472_v45  ;;  %v2486_v41 = vmul.f32 %v2483_v54, %v2473_v53  ;;  %v2677_v2 = vmul.f32 %v2675_v42, %v2664_v50  ;;  %v2678_v52 = vmul.f32 %v2675_v42, %v2665_v20 }
 0xc5b   : > { %2579 = vrot.lane.b32.xlu2 %v2574_v8, %s3413_s16  ;;  %2374 = vrot.lane.b32.xlu1 %v2370_v7, %s3427_s18  ;;  %s3430_s16 = smov 43   ;;  %v2699_v7 = vmul.f32 %v4534_v29, %v2696_v5  ;;  %v2773_v8 = vmul.f32 %v2771_v35, %v2760_v21 }
 0xc5c   : > { %2278 = vrot.lane.b32.xlu0 %v2274_v13, %s5032_s17  ;;  %v2824_v24 = vpop.permute.xlu1 %2823  ;;  %s3438_s17 = smov 26  }
 0xc5d   : > { %v2825_v16 = vrot.slane %v2824_v24, 4 }
 0xc5e   : > { %v2625_v6 = vpop.permute.xlu0 %2624  ;;  %v2732_v13 = vpop.permute.xlu2 %2731 }
 0xc5f   : > { %v2626_v22 = vrot.slane %v2625_v6, 4  ;;  %v2736_v48 = vperm.slane %v2732_v13, %v3629_v55  ;;  %v2827_v1 = vsel %vm2826_vm1, %v2825_v16, %v2824_v24  ;;  %vm2819_vm1 = vcmask 220160  }
 0xc61   : > { %v2627_v3 = vsel %vm944_vm8, %v2626_v22, %v2625_v6  ;;  %v2631_v53 = vmul.f32 %v4504_v40, %v2626_v22  ;;  %v2738_v57 = vmul.f32 %v4534_v29, %v2736_v48  ;;  %v2739_v59 = vmul.f32 %v4504_v40, %v2736_v48 }
 0xc62   : > { %v2630_v45 = vmul.f32 %v4534_v29, %v2627_v3  ;;  %vm2791_vm8 = vcmask 826368  }
 0xc63   : > { %2312 = vrot.lane.b32.xlu2 %v2308_v36, %s3428_s8  ;;  %2429 = vrot.lane.b32.xlu1 %v2424_v63, %s3429_s20 }
 0xc64   : > { %2314 = vrot.lane.b32.xlu0 %v2309_v46, %s3428_s8  ;;  %v2761_v46 = vmul.f32 %v4504_v40, %v2755_v49 }
 0xc66   : > { %v2637_v18 = vpop.permute.xlu0 %2636  ;;  %v2774_v44 = vmul.f32 %v2771_v35, %v2761_v46 }
 0xc67   : > { %v2641_v31 = vperm.slane %v2637_v18, %v3629_v55  ;;  %v2830_v18 = vmul.f32 %v4534_v29, %v2827_v1 }
 0xc69   : > { %v2643_v43 = vmul.f32 %v2641_v31, %v2630_v45  ;;  %v2644_v9 = vmul.f32 %v2641_v31, %v2631_v53 }
 0xc6b   : > { %2376 = vrot.lane.b32.xlu2 %v2371_v17, %s3427_s18  ;;  %2551 = vrot.lane.b32.xlu1 %v2547_v25, %s3430_s16 }
 0xc6c   : > { %2427 = vrot.lane.b32.xlu0 %v2423_v10, %s3429_s20 }
 0xc6e   : > { %v2706_v56 = vpop.permute.xlu0 %2705 }
 0xc6f   : > { %v2710_v11 = vperm.slane %v2706_v56, %v3629_v55 }
 0xc71   : > { %v2713_v32 = vmul.f32 %v2710_v11, %v2700_v60  ;;  %v2712_v51 = vmul.f32 %v2710_v11, %v2699_v7 }
 0xc73   : > { %2489 = vrot.lane.b32.xlu2 %v2485_v58, %s3431_s19  ;;  %2615 = vrot.lane.b32.xlu1 %v2610_v47, %s3432_s9  ;;  %v2831_v47 = vmul.f32 %v4504_v40, %v2825_v16  ;;  %v2912_v16 = vld [vmem:[%s4870_s6] sm:$0xf] }
 0xc74   : > { %2491 = vrot.lane.b32.xlu0 %v2486_v41, %s3431_s19  ;;  %s269_s19 = sand.u32 1, %s3341_s25  }
 0xc76   : > { %v2789_v63 = vpop.permute.xlu0 %2788 }
 0xc77   : > { %v2790_v27 = vrot.slane %v2789_v63, 4 }
 0xc79   : > { %v2792_v6 = vsel %vm2791_vm8, %v2790_v27, %v2789_v63  ;;  %v2796_v10 = vmul.f32 %v4504_v40, %v2790_v27  ;;  %v2863_v40 = vld.sshfl [vmem:[#allocation1] sm:$0xff pattern:$0x75316420]  ;;  %vm2784_vm8 = vcmask 228352  }
 0xc7a   : > { %v2795_v25 = vmul.f32 %v4534_v29, %v2792_v6 }
 0xc7b   : > { %2553 = vrot.lane.b32.xlu2 %v2548_v34, %s3430_s16  ;;  %2681 = vrot.lane.b32.xlu1 %v2677_v2, %s3433_s13  ;;  %s3307_s16 = scalar_lea.hbm %s4871_s7, 16 }
 0xc7c   : > { %2613 = vrot.lane.b32.xlu0 %v2609_v33, %s3432_s9  ;;  %s3054_s9 = sshll.u32 %s269_s19, 3 }
 0xc83   : > { %2647 = vrot.lane.b32.xlu2 %v2643_v43, %s5033_s23  ;;  %2718 = vrot.lane.b32.xlu1 %v2713_v32, %s3434_s22 }
 0xc84   : > { %2649 = vrot.lane.b32.xlu0 %v2644_v9, %s5033_s23 }
 0xc8b   : > { %2683 = vrot.lane.b32.xlu2 %v2678_v52, %s3433_s13  ;;  %2777 = vrot.lane.b32.xlu1 %v2773_v8, %s3435_s21  ;;  %s3152_s13 = sshll.u32 %s3500_s28, 3  ;;  %s2975_s28 = scalar_lea.sflag [#allocation5], %s269_s19 }
 0xc8c   : > { %2716 = vrot.lane.b32.xlu0 %v2712_v51, %s3434_s22 }
 0xc93   : > { %2742 = vrot.lane.b32.xlu2 %v2738_v57, %s3436_s15 }
 0xc94   : > { %2744 = vrot.lane.b32.xlu0 %v2739_v59, %s3436_s15  ;;  %s271_s15 = scalar_lea.vmem [#allocation4], %s3054_s9 }
 0xc95   : > { %v2339_v36 = vpop.permute.xlu2 %2338 }
 0xc96   : > { %v2342_v2 = vrot.slane %v2339_v36, 4 }
 0xc97   : > { %v2403_v15 = vpop.permute.xlu1 %2402 }
 0xc98   : > { %v2405_v31 = vrot.slane %v2403_v15, 4 }
 0xc9b   : > { %2779 = vrot.lane.b32.xlu2 %v2774_v44, %s3435_s21  ;;  %s2986_s21 = scalar_lea.hbm %s4871_s7, %s3152_s13 }
 0xc9d   : > { %v2802_v17 = vpop.permute.xlu2 %2801 }
 0xc9e   : > { %v2806_v4 = vperm.slane %v2802_v17, %v3629_v55 }
 0xca0   : > { %v2808_v54 = vmul.f32 %v2806_v4, %v2795_v25  ;;  %v2809_v19 = vmul.f32 %v2806_v4, %v2796_v10 }
 0xca2   : > { %2814 = vrot.lane.b32.xlu1 %v2809_v19, %s3437_s14  ;;  %2812 = vrot.lane.b32.xlu0 %v2808_v54, %s3437_s14  ;;  %s2988_s14 = sshll.u32 %s271_s15, 4  ;;  %s2989_s14 = int_to_ptr.vmem [resolvable:$true] %s2988_s14 }
 0xca5   : > { %v2837_v38 = vpop.permute.xlu2 %2836 }
 0xca6   : > { %v2841_v58 = vperm.slane %v2837_v38, %v3629_v55  ;;  %v2219_v55 = vadd.f32 %v4613_v0, %v4570_v62 }
 0xca8   : > { %v2843_v41 = vmul.f32 %v2841_v58, %v2830_v18  ;;  %v2844_v14 = vmul.f32 %v2841_v58, %v2831_v47 }
 0xcaa   : > { %2868 = vrot.lane.b32.xlu1 %v2864_v39, %s4974_s29  ;;  %2849 = vrot.lane.b32.xlu0 %v2844_v14, %s3438_s17 }
 0xcab   : > { %2847 = vrot.lane.b32.xlu2 %v2843_v41, %s3438_s17  ;;  %s2990_s17 = sshll.u32 %s2986_s21, 4  ;;  %s2991_s17 = int_to_ptr.hbm [resolvable:$true] %s2990_s17 }
 0xcad   : > { %v2341_v42 = vpop.permute.xlu0 %2340  ;;  %v2516_v50 = vpop.permute.xlu2 %2515 }
 0xcae   : > { %v2343_v34 = vrot.slane %v2341_v42, 4  ;;  %v2349_v60 = vadd.f32 %v2341_v42, %v2219_v55  ;;  %v2519_v35 = vrot.slane %v2516_v50, 4 }
 0xcb0   : > { %v2344_v11 = vsel %vm301_vm0, %v2342_v2, %v2343_v34  ;;  %v2411_v32 = vadd.f32 %v2403_v15, %v2349_v60 }
 0xcb1   : > { %v2345_v43 = vsel %vm1807_vm15, %v2339_v36, %v2344_v11  ;;  %vm2319_vm15 = vcmask 384000  }
 0xcb2   : > { %v2348_v9 = vadd.f32 %v2345_v43, %v4619_v61 }
 0xcb3   : > { %2870 = vrot.lane.b32.xlu2 %v2865_v28, %s4974_s29 }
 0xcb5   : > { %v2456_v12 = vpop.permute.xlu1 %2455  ;;  %v2580_v29 = vpop.permute.xlu2 %2579 }
 0xcb6   : > { %v2401_v22 = vpop.permute.xlu0 %2400  ;;  %v2458_v49 = vrot.slane %v2456_v12, 4  ;;  %v2464_v0 = vadd.f32 %v2456_v12, %v2411_v32  ;;  %v2582_v52 = vrot.slane %v2580_v29, 4 }
 0xcb7   : > { %v2404_v33 = vrot.slane %v2401_v22, 4 }
 0xcb9   : > { %v2406_v53 = vsel %vm301_vm0, %v2404_v33, %v2405_v31 }
 0xcba   : > { %v2407_v62 = vsel %vm1869_vm5, %v2401_v22, %v2406_v53  ;;  %vm5035_vm5 = vcmask 392192  }
 0xcbb   : > { %2866 = vrot.lane.b32.xlu2 %v2863_v40, %s4974_s29  ;;  %v2410_v8 = vadd.f32 %v2407_v62, %v2348_v9  ;;  %s5034_s29 = smov 111  }
 0xcbd   : > { %v2578_v56 = vpop.permute.xlu1 %2577  ;;  %v4767_v23 = vpop.permute.xlu2 %2312 }
 0xcbe   : > { %v2454_v3 = vpop.permute.xlu0 %2453  ;;  %v2581_v37 = vrot.slane %v2578_v56, 4 }
 0xcbf   : > { %v2457_v45 = vrot.slane %v2454_v3, 4 }
 0xcc0   : > { %v2583_v48 = vsel %vm301_vm0, %v2581_v37, %v2582_v52 }
 0xcc1   : > { %v2459_v26 = vsel %vm301_vm0, %v2457_v45, %v2458_v49  ;;  %v2584_v46 = vsel %vm2100_vm11, %v2578_v56, %v2583_v48  ;;  %vm2496_vm11 = vcmask 359424  }
 0xcc2   : > { %v2460_v21 = vsel %vm1931_vm14, %v2454_v3, %v2459_v26  ;;  %vm2381_vm14 = vcmask 375808  }
 0xcc3   : > { %v2463_v57 = vadd.f32 %v2460_v21, %v2410_v8 }
 0xcc5   : > { %v4775_v5 = vpop.permute.xlu2 %2376  ;;  %v2281_v7 = vpop.permute.xlu1 %2280 }
 0xcc6   : > { %v2518_v20 = vpop.permute.xlu0 %2517  ;;  %v2283_v42 = vrot.slane %v2281_v7, 4  ;;  %v2379_v56 = vrot.slane %v4775_v5, 4 }
 0xcc7   : > { %v2520_v13 = vrot.slane %v2518_v20, 4  ;;  %v2526_v51 = vadd.f32 %v2518_v20, %v2464_v0 }
 0xcc9   : > { %v2521_v59 = vsel %vm301_vm0, %v2519_v35, %v2520_v13  ;;  %v2588_v63 = vadd.f32 %v2580_v29, %v2526_v51  ;;  %v2316_v29 = vrot.slane %v4767_v23, 4 }
 0xcca   : > { %v2522_v61 = vsel %vm2011_vm6, %v2516_v50, %v2521_v59  ;;  %vm2434_vm6 = vcmask 367616  }
 0xccb   : > { %v2525_v36 = vadd.f32 %v2522_v61, %v2463_v57  ;;  %2883 = vst [vmem:[#allocation1 + $0x11] ss:$2 sm:$0xff] %v2588_v63 }
 0xccd   : > { %v2587_v27 = vadd.f32 %v2584_v46, %v2525_v36  ;;  %v2490_v44 = vpop.permute.xlu2 %2489  ;;  %v2375_v24 = vpop.permute.xlu1 %2374 }
 0xcce   : > { %v2279_v6 = vpop.permute.xlu0 %2278  ;;  %v2378_v55 = vrot.slane %v2375_v24, 4  ;;  %v2493_v49 = vrot.slane %v2490_v44, 4 }
 0xccf   : > { %2881 = vst [vmem:[#allocation1 + $0x1] ss:$2 sm:$0xff] %v2587_v27  ;;  %v2282_v39 = vrot.slane %v2279_v6, 4 }
 0xcd0   : > { %v2380_v45 = vsel %vm301_vm0, %v2378_v55, %v2379_v56 }
 0xcd1   : > { %v2284_v22 = vsel %vm301_vm0, %v2282_v39, %v2283_v42  ;;  %v2382_v62 = vsel %vm2381_vm14, %v2375_v24, %v2380_v45 }
 0xcd2   : > { %v2886_v17 = vld.sshfl [vmem:[#allocation1 + $0x10] sm:$0xff pattern:$0x75316420]  ;;  %v2285_v34 = vsel %vm5035_vm5, %v2279_v6, %v2284_v22 }
 0xcd3   : > { %2891 = vrot.lane.b32.xlu1 %v2886_v17, %s5034_s29  ;;  %v2287_v3 = vadd.f32 %v2285_v34, %v4677_v30 }
 0xcd5   : > { %v2554_v4 = vpop.permute.xlu2 %2553  ;;  %v2430_v54 = vpop.permute.xlu1 %2429 }
 0xcd6   : > { %v2315_v25 = vpop.permute.xlu0 %2314  ;;  %v2885_v10 = vld.sshfl [vmem:[#allocation1 + $0x8] sm:$0xff pattern:$0x75316420]  ;;  %v2884_v1 = vld.sshfl [vmem:[#allocation1] sm:$0xff pattern:$0x75316420] }
 0xcd7   : > { %2889 = vrot.lane.b32.xlu0 %v2885_v10, %s5034_s29  ;;  %v2317_v50 = vrot.slane %v2315_v25, 4  ;;  %v2432_v31 = vrot.slane %v2430_v54, 4  ;;  %v2556_v35 = vrot.slane %v2554_v4, 4 }
 0xcd9   : > { %v2318_v40 = vsel %vm301_vm0, %v2316_v29, %v2317_v50 }
 0xcda   : > { %v2320_v33 = vsel %vm2319_vm15, %v4767_v23, %v2318_v40  ;;  %vm2854_vm15 = vcmask 211968  }
 0xcdb   : > { %2915 = vperm.xlu1 %3281, %v2912_v16   ;;  %v2322_v53 = vadd.f32 %v2320_v33, %v2287_v3 }
 0xcdd   : > { %v2648_v38 = vpop.permute.xlu2 %2647  ;;  %v2552_v18 = vpop.permute.xlu1 %2551  ;;  %v2384_v30 = vadd.f32 %v2382_v62, %v2322_v53 }
 0xcde   : > { %v2428_v19 = vpop.permute.xlu0 %2427  ;;  %v2555_v9 = vrot.slane %v2552_v18, 4  ;;  %v2651_v13 = vrot.slane %v2648_v38, 4 }
 0xcdf   : > { %2887 = vrot.lane.b32.xlu0 %v2884_v1, %s5034_s29  ;;  %v2431_v2 = vrot.slane %v2428_v19, 4  ;;  %s3301_s29 = sshra.s32 %s2991_s17, 4  ;;  %s3302_s29 = int_to_ptr.hbm [resolvable:$true] %s3301_s29 }
 0xce0   : > { %v2557_v52 = vsel %vm301_vm0, %v2555_v9, %v2556_v35  ;;  %v2907_v35 = vld [vmem:[%s4869_s5] sm:$0xf]  ;;  %s3303_s18 = scalar_lea.hbm %s3302_s29, 8  ;;  %p3308_p0 = scmp.lt.s32.totalorder %s3302_s29, %s4871_s7 }
 0xce1   : > { %v2433_v43 = vsel %vm301_vm0, %v2431_v2, %v2432_v31  ;;  %v2559_v59 = vsel %vm2558_vm7, %v2552_v18, %v2557_v52  ;;  %p3304_p11 = scmp.ne.s32.totalorder %s3302_s29, %s3303_s18  ;;  %p3309_p1 = scmp.lt.s32.totalorder %s3307_s16, %s3303_s18 }
 0xce2   : > { %v2435_v0 = vsel %vm2434_vm6, %v2428_v19, %v2433_v43 }
 0xce3   : > { %v2437_v21 = vadd.f32 %v2435_v0, %v2384_v30  ;;  %p3305_p12 = pnand %p3304_p11, %p3517_p5  ;;  %p3310_p2 = por %p3309_p1, %p3308_p0 }
 0xce5   : > { %v4788_v58 = vpop.permute.xlu2 %2683  ;;  %v2616_v41 = vpop.permute.xlu1 %2615  ;;  %p3306_p13 = pneg %p3305_p12 }
 0xce6   : > { %v2492_v47 = vpop.permute.xlu0 %2491  ;;  %v2618_v20 = vrot.slane %v2616_v41, 4  ;;  %v2686_v24 = vrot.slane %v4788_v58, 4 }
 0xce7   : > { %v2494_v11 = vrot.slane %v2492_v47, 4  ;;  %p3311_p3 = pnand %p3310_p2, %p3306_p13 }
 0xce9   : > { %v2495_v23 = vsel %vm301_vm0, %v2493_v49, %v2494_v11 }
 0xcea   : > { %v2497_v5 = vsel %vm2496_vm11, %v2490_v44, %v2495_v23 }
 0xceb   : > { %v2499_v51 = vadd.f32 %v2497_v5, %v2437_v21 }
 0xced   : > { %v4790_v15 = vpop.permute.xlu2 %2742  ;;  %v4792_v28 = vpop.permute.xlu1 %2681  ;;  %v2561_v46 = vadd.f32 %v2559_v59, %v2499_v51 }
 0xcee   : > { %v2614_v14 = vpop.permute.xlu0 %2613  ;;  %v2685_v27 = vrot.slane %v4792_v28, 4  ;;  %v2746_v16 = vrot.slane %v4790_v15, 4 }
 0xcef   : > { %v2617_v37 = vrot.slane %v2614_v14, 4 }
 0xcf0   : > { %v2687_v4 = vsel %vm301_vm0, %v2685_v27, %v2686_v24 }
 0xcf1   : > { %v2619_v48 = vsel %vm301_vm0, %v2617_v37, %v2618_v20 }
 0xcf2   : > { %v2621_v63 = vsel %vm2620_vm9, %v2614_v14, %v2619_v48 }
 0xcf3   : > { %v2623_v17 = vadd.f32 %v2621_v63, %v2561_v46 }
 0xcf5   : > { %v4801_v60 = vpop.permute.xlu2 %2779  ;;  %v2719_v32 = vpop.permute.xlu1 %2718 }
 0xcf6   : > { %v2650_v12 = vpop.permute.xlu0 %2649  ;;  %v2721_v25 = vrot.slane %v2719_v32, 4  ;;  %v2782_v29 = vrot.slane %v4801_v60, 4 }
 0xcf7   : > { %v2652_v7 = vrot.slane %v2650_v12, 4 }
 0xcf9   : > { %v2653_v57 = vsel %vm301_vm0, %v2651_v13, %v2652_v7 }
 0xcfa   : > { %v2654_v6 = vsel %vm5036_vm3, %v2648_v38, %v2653_v57  ;;  %v2689_v38 = vsel %vm2688_vm2, %v4792_v28, %v2687_v4 }
 0xcfb   : > { %v2656_v54 = vadd.f32 %v2654_v6, %v2623_v17 }
 0xcfd   : > { %v2778_v61 = vpop.permute.xlu1 %2777  ;;  %v2691_v14 = vadd.f32 %v2689_v38, %v2656_v54 }
 0xcfe   : > { %v2717_v26 = vpop.permute.xlu0 %2716  ;;  %v2781_v39 = vrot.slane %v2778_v61, 4 }
 0xcff   : > { %v2720_v44 = vrot.slane %v2717_v26, 4 }
 0xd00   : > { %v2783_v40 = vsel %vm301_vm0, %v2781_v39, %v2782_v29 }
 0xd01   : > { %v2722_v19 = vsel %vm301_vm0, %v2720_v44, %v2721_v25  ;;  %v2785_v2 = vsel %vm2784_vm8, %v2778_v61, %v2783_v40 }
 0xd02   : > { %v2724_v47 = vsel %vm2723_vm10, %v2717_v26, %v2722_v19 }
 0xd03   : > { %v2726_v22 = vadd.f32 %v2724_v47, %v2691_v14 }
 0xd05   : > { %v2848_v8 = vpop.permute.xlu2 %2847 }
 0xd06   : > { %v2745_v36 = vpop.permute.xlu0 %2744  ;;  %v2851_v33 = vrot.slane %v2848_v8, 4 }
 0xd07   : > { %v2747_v10 = vrot.slane %v2745_v36, 4 }
 0xd09   : > { %v2748_v18 = vsel %vm301_vm0, %v2746_v16, %v2747_v10 }
 0xd0a   : > { %v2750_v12 = vsel %vm2749_vm13, %v4790_v15, %v2748_v18 }
 0xd0b   : > { %v2752_v34 = vadd.f32 %v2750_v12, %v2726_v22 }
 0xd0d   : > { %v2871_v1 = vpop.permute.xlu2 %2870  ;;  %v2787_v11 = vadd.f32 %v2785_v2, %v2752_v34 }
 0xd14   : > { %v2815_v58 = vpop.permute.xlu1 %2814  ;;  %v2813_v41 = vpop.permute.xlu0 %2812 }
 0xd15   : > { %v2817_v42 = vrot.slane %v2815_v58, 4  ;;  %v2816_v50 = vrot.slane %v2813_v41, 4  ;;  %v2867_v28 = vpop.permute.xlu2 %2866 }
 0xd17   : > { %v2818_v55 = vsel %vm301_vm0, %v2816_v50, %v2817_v42 }
 0xd18   : > { %v2820_v56 = vsel %vm2819_vm1, %v2813_v41, %v2818_v55 }
 0xd19   : > { %v2822_v49 = vadd.f32 %v2820_v56, %v2787_v11 }
 0xd1c   : > { %v2869_v3 = vpop.permute.xlu1 %2868  ;;  %v2850_v31 = vpop.permute.xlu0 %2849 }
 0xd1d   : > { %v2872_v15 = vsel %vm1041_vm12, %v2867_v28, %v2869_v3  ;;  %v2873_v60 = vsel %vm1041_vm12, %v2869_v3, %v2871_v1  ;;  %v2852_v45 = vrot.slane %v2850_v31, 4  ;;  %vm2918_vm12 = vcmask 97280  }
 0xd1e   : > { %2876 = vst [vmem:[#allocation3 + $0x10] sm:$0xf] %v2872_v15 }
 0xd1f   : > { %2877 = vst [vmem:[#allocation3] sm:$0xf] %v2873_v60  ;;  %v2853_v53 = vsel %vm301_vm0, %v2851_v33, %v2852_v45 }
 0xd20   : > { %v2855_v43 = vsel %vm2854_vm15, %v2848_v8, %v2853_v53 }
 0xd21   : > { %v2857_v32 = vadd.f32 %v2855_v43, %v2822_v49 }
 0xd23   : > { %2900 = vst [vmem:[#allocation1] ss:$2 sm:$0xff] %v2857_v32 }
 0xd2a   : > { %v2901_v26 = vld.sshfl [vmem:[#allocation1] sm:$0xff pattern:$0x75316420]  ;;  %v2902_v23 = vld.sshfl [vmem:[#allocation1 + $0x8] sm:$0xff pattern:$0x75316420] }
 0xd2b   : > { %2905 = vst [vmem:[#allocation3 + $0x18] sm:$0xf] %v2901_v26 }
 0xd2c   : > { %2906 = vst [vmem:[#allocation3 + $0x8] sm:$0xf] %v2902_v23 }
 0xd32   : > { %v2910_v62 = vld [vmem:[#allocation3 + $0x18] sm:$0xf] }
 0xd33   : > { %3142 = vmatpush.msk.msra.mxu0 %vm301_vm0, %v2910_v62  ;;  %v2911_v0 = vld [vmem:[#allocation3 + $0x8] sm:$0xf] }
 0xd34   : > { %3144 = vmatpush.msk.msra.mxu1 %vm301_vm0, %v2911_v0 }
 0xd45   : > { %v2892_v30 = vpop.permute.xlu1 %2891 }
 0xd49   : > { %v2890_v9 = vpop.permute.xlu0 %2889 }
 0xd4a   : > { %v2894_v37 = vsel %vm621_vm4, %v2890_v9, %v2892_v30 }
 0xd4b   : > { %2898 = vst [vmem:[#allocation3] sm:$0xf0] %v2894_v37 }
 0xd4d   : > { %v2916_v52 = vpop.permute.xlu1 %2915 }
 0xd51   : > { %v2888_v5 = vpop.permute.xlu0 %2887 }
 0xd52   : > { %v2893_v21 = vsel %vm621_vm4, %v2888_v5, %v2890_v9  ;;  %v2909_v20 = vld [vmem:[#allocation3] sm:$0xff] }
 0xd53   : > { %2897 = vst [vmem:[#allocation3 + $0x10] sm:$0xf0] %v2893_v21  ;;  %2963 = vmatpush.msra.mxu1 %v2909_v20 }
 0xd54   : > { %3145 = vmatmul.msk.f32.vlgmr.msra.gmra.mxu1 %vm2918_vm12, %v2907_v35 }
 0xd5a   : > { %v2908_v7 = vld [vmem:[#allocation3 + $0x10] sm:$0xff] }
 0xd5b   : > { %2943 = vmatpush.msra.mxu0 %v2908_v7 }
 0xd5c   : > { %3143 = vmatmul.msk.f32.vlgmr.msra.gmra.mxu0 %vm2918_vm12, %v2907_v35 }
 0xdd1   : > { %v2965_v8 = vpop.f32.mrf.mxu1 }
 0xdd2   : > { %v2966_v13 = vadd.f32 %v2965_v8, %v2916_v52 }
 0xdd4   : > { %v2970_v48 = vrot.slane %v2966_v13, 4 }
 0xdd9   : > { %v2945_v51 = vpop.f32.mrf.mxu0 }
 0xdda   : > { %v2946_v57 = vadd.f32 %v2945_v51, %v2916_v52 }
 0xddc   : > { %v2971_v59 = vsel %vm301_vm0, %v2946_v57, %v2970_v48 }
 0xddd   : > { %2973 = vst [vmem:[%s271_s15] sm:$0xff] %v2971_v59 }
 0xdde   : > { %3314 = shalt.err (!%p3311_p3)
}
 0xddf   : > { %3153 = dma.vmem_to_hbm [thread:$0]  (%p3517_p5), %s2989_s14, 128, %s2991_s17, %s2975_s28  }
 0xde0 PF: > { %p3159_p4 = scmp.ge.s32.totalorder %s3349_s27, 2  ;;  %s3002_s19 = sand.u32 1, %s3337_s24  }
 0xde1   : > { %s3003_s23 = scalar_lea.sflag [#allocation5], %s3002_s19 }
 0xde2   : > { %p3156_p7 = pnand %p3159_p4, %p3521_p6 }
 0xde4   : > { %p3157_p8 = pneg %p3156_p7 }
 0xde6   : > { %3332 = dma.done.wait (%p3157_p8), %s3003_s23, 128  }
 0xde7   : > { %3334 = vsyncadd (%p3157_p8), %s3003_s23, 4294967168  ;;  %p17_p9 = scmp.ge.s32.totalorder %s3504_s30, 4   ;;  %s5037_s24 = smov %s3341_s25 }
 0xde8   : > { %s5038_s25 = smov %s3345_s26  ;;  %s5039_s26 = smov %s3515_s10 }
 0xde9   : > { %s5040_s27 = smov %s3504_s30  ;;  %19 = sbr.rel (!%p17_p9) target bundleno = 3 (0x3), region = 171 }
 0xdee   :  { %3009 = vsyncpa [#allocation5], 1 }
 0xdef   :  { %3011 = vsyncpa [#allocation5 + $0x1], 1 }

</bundles_post_ra>
